<compile_context>
chip_gen: v7x
topology: tpu7x:2x2x1
jax: 0.10.0
libtpu: 0.0.40
codegen_flags: <defaults>
</compile_context>

<pallas_src>
import functools

import numpy as np

import jax
import jax.numpy as jnp
from jax.experimental import pallas as pl
from jax.experimental.pallas import tpu as pltpu


# ---------------------------------------------------------------------------
# Fused LeNet-5 kernel (one grid step = one batch tile of `tb` images)
# ---------------------------------------------------------------------------

def _lenet5_kernel(xq_ref, e1_ref, b1_ref, f2_ref, b2_ref, f3_ref, b3_ref,
                   w4_ref, b4_ref, w5_ref, b5_ref, out_ref, *, tb):
    bf16 = jnp.bfloat16
    f32 = jnp.float32

    # Weights stay in VMEM for the whole grid step; load once.
    e1 = e1_ref[...]      # [160, 168]  conv1 matrix (taps x W-shift folded in)
    f2 = f2_ref[...]      # [420, 160]  conv2 matrix
    f3 = f3_ref[...]      # [400, 120]  conv3 matrix (= HWIO reshape)
    w4 = w4_ref[...]      # [120,  84]
    w5 = w5_ref[...]      # [ 84,  10]
    b1 = b1_ref[...]      # [1, 84]  conv1 bias tiled over the 14 pooled cols
    b2 = b2_ref[...]      # [1, 80]  conv2 bias tiled over the 5 pooled cols
    b3 = b3_ref[...]      # [1, 120]
    b4 = b4_ref[...]      # [1, 84]
    b5 = b5_ref[...]      # [1, 10]

    for b in range(tb):   # static unroll over the batch tile
        # ---- Conv1 (1->6, 5x5, pad 2) + MaxPool(2,2) + ReLU ---------------
        # xq_ref[b, q, m, :] holds padded input row (4*m + q), 32 lanes wide.
        def conv1_quarter(r):
            # conv-output rows h = 4*m + r, m = 0..6; width is handled in-lane.
            slabs = []
            for di in range(5):
                t = r + di
                q, off = t % 4, t // 4
                slabs.append(xq_ref[b, q, off:off + 7, :])        # [7, 32]
            x = jnp.concatenate(slabs, axis=-1).astype(bf16)       # [7, 160]
            y = jnp.dot(x, e1, preferred_element_type=f32)         # [7, 168]
            # columns 0:84 = even output w, 84:168 = odd output w -> W-pool
            return jnp.maximum(y[:, :84], y[:, 84:])               # [7, 84]

        ys = [conv1_quarter(r) for r in range(4)]
        # H-pool pairs rows (4m, 4m+1) and (4m+2, 4m+3); bias+ReLU after pool.
        p1 = (jnp.maximum(jnp.maximum(ys[0], ys[1]) + b1, 0.0),    # rows i = 2m
              jnp.maximum(jnp.maximum(ys[2], ys[3]) + b1, 0.0))    # rows i = 2m+1
        # p1[s][m, j*6 + c] = pooled activation at (i = 2m+s, j, c), 14x14x6.

        # ---- Conv2 (6->16, 5x5, valid) + MaxPool(2,2) + ReLU --------------
        def conv2_half(ph):
            # conv-output rows h2 = 2*i2 + ph, i2 = 0..4
            slabs = []
            for di in range(5):
                t = ph + di
                s, off = t % 2, t // 2
                slabs.append(p1[s][off:off + 5, :])                # [5, 84]
            x = jnp.concatenate(slabs, axis=-1).astype(bf16)        # [5, 420]
            y = jnp.dot(x, f2, preferred_element_type=f32)          # [5, 160]
            return jnp.maximum(y[:, :80], y[:, 80:])                # [5, 80]

        p2 = jnp.maximum(
            jnp.maximum(conv2_half(0), conv2_half(1)) + b2, 0.0)    # [5, 80]
        # p2[i2, j2*16 + c] = pooled activation at (i2, j2, c), 5x5x16.

        # ---- Conv3 (16->120, 5x5, valid -> 1x1), no ReLU ------------------
        x3 = jnp.concatenate([p2[di:di + 1, :] for di in range(5)],
                             axis=-1).astype(bf16)                  # [1, 400]
        z = jnp.dot(x3, f3, preferred_element_type=f32) + b3        # [1, 120]

        # ---- FC head: Linear(120,84)+ReLU -> Linear(84,10) -> Softmax -----
        h = jnp.maximum(
            jnp.dot(z.astype(bf16), w4, preferred_element_type=f32) + b4, 0.0)
        logits = jnp.dot(h.astype(bf16), w5,
                         preferred_element_type=f32) + b5           # [1, 10]
        m = jnp.max(logits, axis=-1, keepdims=True)
        e = jnp.exp(logits - m)
        inv = pl.reciprocal(jnp.sum(e, axis=-1, keepdims=True), approx=False)
        out_ref[b] = e * inv                                        # [1, 10]


# ---------------------------------------------------------------------------
# Host-side parameter packing (done ONCE at init, not per forward)
# ---------------------------------------------------------------------------

def _conv1_matrix(w1):
    # E1[di*32 + v, pw*84 + j*6 + c] = w1[di, v - (2j+pw), 0, c]
    e = np.zeros((5 * 32, 2 * 14 * 6), np.float32)
    for di in range(5):
        for pw in range(2):
            for j in range(14):
                w = 2 * j + pw
                for dj in range(5):
                    e[di * 32 + w + dj,
                      pw * 84 + j * 6: pw * 84 + j * 6 + 6] = w1[di, dj, 0, :]
    return e


def _conv2_matrix(w2):
    # F2[di*84 + j*6 + cin, pw*80 + j2*16 + cout] = w2[di, j-(2*j2+pw), cin, cout]
    f = np.zeros((5 * 14 * 6, 2 * 5 * 16), np.float32)
    for di in range(5):
        for pw in range(2):
            for j2 in range(5):
                wo = 2 * j2 + pw
                for dj in range(5):
                    j = wo + dj
                    f[di * 84 + j * 6: di * 84 + j * 6 + 6,
                      pw * 80 + j2 * 16: pw * 80 + j2 * 16 + 16] = w2[di, dj]
    return f


def init_params(key):
    ks = jax.random.split(key, 10)
    scale = 0.1

    def n(k, shape):
        return scale * jax.random.normal(k, shape, dtype=jnp.float32)

    return {
        # conv weights in HWIO: [kh, kw, Cin, Cout]
        "conv1_w": n(ks[0], (5, 5, 1, 6)),    "conv1_b": n(ks[1], (6,)),
        "conv2_w": n(ks[2], (5, 5, 6, 16)),   "conv2_b": n(ks[3], (16,)),
        "conv3_w": n(ks[4], (5, 5, 16, 120)), "conv3_b": n(ks[5], (120,)),
        # fc weights: [In, Out]
        "fc1_w": n(ks[6], (120, 84)),         "fc1_b": n(ks[7], (84,)),
        "fc2_w": n(ks[8], (84, 10)),          "fc2_b": n(ks[9], (10,)),
    }


def pack_params(params):
    g = lambda k: np.asarray(params[k], np.float32)
    bf = lambda a: jnp.asarray(a, jnp.bfloat16)
    f32 = lambda a: jnp.asarray(a, jnp.float32)
    return {
        "e1": bf(_conv1_matrix(g("conv1_w"))),                   # [160, 168]
        "b1": f32(np.tile(g("conv1_b"), 14).reshape(1, 84)),
        "f2": bf(_conv2_matrix(g("conv2_w"))),                   # [420, 160]
        "b2": f32(np.tile(g("conv2_b"), 5).reshape(1, 80)),
        "f3": bf(g("conv3_w").reshape(400, 120)),
        "b3": f32(g("conv3_b").reshape(1, 120)),
        "fc1_w": bf(g("fc1_w")), "fc1_b": f32(g("fc1_b").reshape(1, 84)),
        "fc2_w": bf(g("fc2_w")), "fc2_b": f32(g("fc2_b").reshape(1, 10)),
    }


# ---------------------------------------------------------------------------
# Forward wrapper
# ---------------------------------------------------------------------------

def lenet5_forward(x_nchw, packed, *, tb=4):
    # x_nchw: [B, 1, 28, 28] float32
    B = x_nchw.shape[0]
    assert B % tb == 0, (B, tb)

    x = x_nchw.reshape(B, 28, 28).astype(jnp.float32)
    xp = jnp.pad(x, ((0, 0), (2, 2), (2, 2)))                  # [B, 32, 32]
    # split padded rows by (row mod 4): xq[b, q, m, :] = row 4*m + q
    xq = xp.reshape(B, 8, 4, 32).transpose(0, 2, 1, 3)         # [B, 4, 8, 32]

    def full(a):
        return pl.BlockSpec(a.shape, lambda i, nd=a.ndim: (0,) * nd)

    weights = (packed["e1"], packed["b1"], packed["f2"], packed["b2"],
               packed["f3"], packed["b3"], packed["fc1_w"], packed["fc1_b"],
               packed["fc2_w"], packed["fc2_b"])

    out = pl.pallas_call(
        functools.partial(_lenet5_kernel, tb=tb),
        out_shape=jax.ShapeDtypeStruct((B, 1, 10), jnp.float32),
        grid=(B // tb,),
        in_specs=[pl.BlockSpec((tb, 4, 8, 32), lambda i: (i, 0, 0, 0))]
                 + [full(a) for a in weights],
        out_specs=pl.BlockSpec((tb, 1, 10), lambda i: (i, 0, 0)),
        compiler_params=pltpu.CompilerParams(
            dimension_semantics=("parallel",)),
    )(xq, *weights)
    return out.reshape(B, 10)


# ---------------------------------------------------------------------------
# Pure-JAX reference (uses the same bf16-rounded weights)
# ---------------------------------------------------------------------------

def _maxpool2_ref(y):
    B, H, W, C = y.shape
    return y.reshape(B, H // 2, 2, W // 2, 2, C).max(axis=(2, 4))


def lenet5_reference(x_nchw, params):
    q = lambda k: params[k].astype(jnp.bfloat16).astype(jnp.float32)
    dn = ("NHWC", "HWIO", "NHWC")
    x = jnp.transpose(x_nchw, (0, 2, 3, 1)).astype(jnp.float32)
    y = jax.lax.conv_general_dilated(x, q("conv1_w"), (1, 1),
                                     ((2, 2), (2, 2)), dimension_numbers=dn)
    y = jnp.maximum(_maxpool2_ref(y + params["conv1_b"]), 0.0)
    y = jax.lax.conv_general_dilated(y, q("conv2_w"), (1, 1), "VALID",
                                     dimension_numbers=dn)
    y = jnp.maximum(_maxpool2_ref(y + params["conv2_b"]), 0.0)
    y = jax.lax.conv_general_dilated(y, q("conv3_w"), (1, 1), "VALID",
                                     dimension_numbers=dn) + params["conv3_b"]
    y = y.reshape(y.shape[0], 120)
    y = jnp.maximum(y @ q("fc1_w") + params["fc1_b"], 0.0)
    logits = y @ q("fc2_w") + params["fc2_b"]
    return jax.nn.softmax(logits, axis=1)


if __name__ == "__main__":
    key = jax.random.PRNGKey(0)
    kx, kp = jax.random.split(key)

    B = 8
    x = jax.random.normal(kx, (B, 1, 28, 28), dtype=jnp.float32)
    params = init_params(kp)
    packed = pack_params(params)

    fwd = jax.jit(lambda xx: lenet5_forward(xx, packed, tb=4))
    out = jax.block_until_ready(fwd(x))

    assert out.shape == (B, 10), out.shape
    # softmax rows must sum to 1
    assert bool(jnp.all(jnp.abs(jnp.sum(out, axis=1) - 1.0) < 1e-5))
    # match the pure-JAX reference (bf16 weight rounding in both paths)
    ref = jax.block_until_ready(lenet5_reference(x, params))
    err = float(jnp.max(jnp.abs(out - ref)))
    assert err < 5e-2, err
    print("KERNEL_OK")
</pallas_src>

<mosaic_0001>
module attributes {stable_mosaic.version = 11 : i64} {
  func.func @_lenet5_kernel(%arg0: i32, %arg1: memref<4x4x8x32xf32, #tpu.memory_space<vmem>>, %arg2: memref<160x168xbf16, #tpu.memory_space<vmem>>, %arg3: memref<1x84xf32, #tpu.memory_space<vmem>>, %arg4: memref<420x160xbf16, #tpu.memory_space<vmem>>, %arg5: memref<1x80xf32, #tpu.memory_space<vmem>>, %arg6: memref<400x120xbf16, #tpu.memory_space<vmem>>, %arg7: memref<1x120xf32, #tpu.memory_space<vmem>>, %arg8: memref<120x84xbf16, #tpu.memory_space<vmem>>, %arg9: memref<1x84xf32, #tpu.memory_space<vmem>>, %arg10: memref<84x10xbf16, #tpu.memory_space<vmem>>, %arg11: memref<1x10xf32, #tpu.memory_space<vmem>>, %arg12: memref<4x1x10xf32, #tpu.memory_space<vmem>>) attributes {dimension_semantics = [#tpu.dimension_semantics<parallel>], iteration_bounds = array<i64: 2>, scalar_prefetch = 0 : i64, scratch_operands = 0 : i64, tpu.core_type = #tpu.core_type<tc>, window_params = [{transform_indices = @transform_0, window_bounds = array<i64: 4, 4, 8, 32>}, {pipeline_mode = #tpu.pipeline_mode<synchronous>, transform_indices = @transform_1, window_bounds = array<i64: 160, 168>}, {pipeline_mode = #tpu.pipeline_mode<synchronous>, transform_indices = @transform_2, window_bounds = array<i64: 1, 84>}, {pipeline_mode = #tpu.pipeline_mode<synchronous>, transform_indices = @transform_3, window_bounds = array<i64: 420, 160>}, {pipeline_mode = #tpu.pipeline_mode<synchronous>, transform_indices = @transform_4, window_bounds = array<i64: 1, 80>}, {pipeline_mode = #tpu.pipeline_mode<synchronous>, transform_indices = @transform_5, window_bounds = array<i64: 400, 120>}, {pipeline_mode = #tpu.pipeline_mode<synchronous>, transform_indices = @transform_6, window_bounds = array<i64: 1, 120>}, {pipeline_mode = #tpu.pipeline_mode<synchronous>, transform_indices = @transform_7, window_bounds = array<i64: 120, 84>}, {pipeline_mode = #tpu.pipeline_mode<synchronous>, transform_indices = @transform_8, window_bounds = array<i64: 1, 84>}, {pipeline_mode = #tpu.pipeline_mode<synchronous>, transform_indices = @transform_9, window_bounds = array<i64: 84, 10>}, {pipeline_mode = #tpu.pipeline_mode<synchronous>, transform_indices = @transform_10, window_bounds = array<i64: 1, 10>}, {transform_indices = @transform_11, window_bounds = array<i64: 4, 1, 10>}]} {
    %c0 = arith.constant 0 : index
    %c0_0 = arith.constant 0 : index
    %0 = vector.load %arg2[%c0, %c0_0] : memref<160x168xbf16, #tpu.memory_space<vmem>>, vector<160x168xbf16>
    %c0_1 = arith.constant 0 : index
    %c0_2 = arith.constant 0 : index
    %1 = vector.load %arg4[%c0_1, %c0_2] : memref<420x160xbf16, #tpu.memory_space<vmem>>, vector<420x160xbf16>
    %c0_3 = arith.constant 0 : index
    %c0_4 = arith.constant 0 : index
    %2 = vector.load %arg6[%c0_3, %c0_4] : memref<400x120xbf16, #tpu.memory_space<vmem>>, vector<400x120xbf16>
    %c0_5 = arith.constant 0 : index
    %c0_6 = arith.constant 0 : index
    %3 = vector.load %arg8[%c0_5, %c0_6] : memref<120x84xbf16, #tpu.memory_space<vmem>>, vector<120x84xbf16>
    %c0_7 = arith.constant 0 : index
    %c0_8 = arith.constant 0 : index
    %4 = vector.load %arg10[%c0_7, %c0_8] : memref<84x10xbf16, #tpu.memory_space<vmem>>, vector<84x10xbf16>
    %c0_9 = arith.constant 0 : index
    %c0_10 = arith.constant 0 : index
    %5 = vector.load %arg3[%c0_9, %c0_10] : memref<1x84xf32, #tpu.memory_space<vmem>>, vector<1x84xf32>
    %c0_11 = arith.constant 0 : index
    %c0_12 = arith.constant 0 : index
    %6 = vector.load %arg5[%c0_11, %c0_12] : memref<1x80xf32, #tpu.memory_space<vmem>>, vector<1x80xf32>
    %c0_13 = arith.constant 0 : index
    %c0_14 = arith.constant 0 : index
    %7 = vector.load %arg7[%c0_13, %c0_14] : memref<1x120xf32, #tpu.memory_space<vmem>>, vector<1x120xf32>
    %c0_15 = arith.constant 0 : index
    %c0_16 = arith.constant 0 : index
    %8 = vector.load %arg9[%c0_15, %c0_16] : memref<1x84xf32, #tpu.memory_space<vmem>>, vector<1x84xf32>
    %c0_17 = arith.constant 0 : index
    %c0_18 = arith.constant 0 : index
    %9 = vector.load %arg11[%c0_17, %c0_18] : memref<1x10xf32, #tpu.memory_space<vmem>>, vector<1x10xf32>
    %c0_19 = arith.constant 0 : index
    %c0_20 = arith.constant 0 : index
    %c0_21 = arith.constant 0 : index
    %c0_22 = arith.constant 0 : index
    %10 = vector.load %arg1[%c0_19, %c0_20, %c0_21, %c0_22] : memref<4x4x8x32xf32, #tpu.memory_space<vmem>>, vector<1x1x7x32xf32>
    %11 = vector.shape_cast %10 : vector<1x1x7x32xf32> to vector<7x32xf32>
    %c0_23 = arith.constant 0 : index
    %c1 = arith.constant 1 : index
    %c0_24 = arith.constant 0 : index
    %c0_25 = arith.constant 0 : index
    %12 = vector.load %arg1[%c0_23, %c1, %c0_24, %c0_25] : memref<4x4x8x32xf32, #tpu.memory_space<vmem>>, vector<1x1x7x32xf32>
    %13 = vector.shape_cast %12 : vector<1x1x7x32xf32> to vector<7x32xf32>
    %c0_26 = arith.constant 0 : index
    %c2 = arith.constant 2 : index
    %c0_27 = arith.constant 0 : index
    %c0_28 = arith.constant 0 : index
    %14 = vector.load %arg1[%c0_26, %c2, %c0_27, %c0_28] : memref<4x4x8x32xf32, #tpu.memory_space<vmem>>, vector<1x1x7x32xf32>
    %15 = vector.shape_cast %14 : vector<1x1x7x32xf32> to vector<7x32xf32>
    %c0_29 = arith.constant 0 : index
    %c3 = arith.constant 3 : index
    %c0_30 = arith.constant 0 : index
    %c0_31 = arith.constant 0 : index
    %16 = vector.load %arg1[%c0_29, %c3, %c0_30, %c0_31] : memref<4x4x8x32xf32, #tpu.memory_space<vmem>>, vector<1x1x7x32xf32>
    %17 = vector.shape_cast %16 : vector<1x1x7x32xf32> to vector<7x32xf32>
    %c0_32 = arith.constant 0 : index
    %c0_33 = arith.constant 0 : index
    %c1_34 = arith.constant 1 : index
    %c0_35 = arith.constant 0 : index
    %18 = vector.load %arg1[%c0_32, %c0_33, %c1_34, %c0_35] : memref<4x4x8x32xf32, #tpu.memory_space<vmem>>, vector<1x1x7x32xf32>
    %19 = vector.shape_cast %18 : vector<1x1x7x32xf32> to vector<7x32xf32>
    %20 = tpu.concatenate %11, %13, %15, %17, %19 in 1 : vector<7x32xf32>, vector<7x32xf32>, vector<7x32xf32>, vector<7x32xf32>, vector<7x32xf32> -> vector<7x160xf32>
    %21 = arith.truncf %20 : vector<7x160xf32> to vector<7x160xbf16>
    %cst = arith.constant dense<0.000000e+00> : vector<7x168xf32>
    %22 = tpu.matmul %21, %0, %cst {dimension_numbers = #tpu.dot_dimension_numbers<[1], [0], [0], [1], [0, 0, 1, 1], [], []>} : vector<7x160xbf16>, vector<160x168xbf16>, vector<7x168xf32> -> vector<7x168xf32>
    %23 = vector.extract_strided_slice %22 {offsets = [0, 0], sizes = [7, 84], strides = [1, 1]} : vector<7x168xf32> to vector<7x84xf32>
    %24 = vector.extract_strided_slice %22 {offsets = [0, 84], sizes = [7, 84], strides = [1, 1]} : vector<7x168xf32> to vector<7x84xf32>
    %25 = arith.maximumf %23, %24 : vector<7x84xf32>
    %c0_36 = arith.constant 0 : index
    %c1_37 = arith.constant 1 : index
    %c0_38 = arith.constant 0 : index
    %c0_39 = arith.constant 0 : index
    %26 = vector.load %arg1[%c0_36, %c1_37, %c0_38, %c0_39] : memref<4x4x8x32xf32, #tpu.memory_space<vmem>>, vector<1x1x7x32xf32>
    %27 = vector.shape_cast %26 : vector<1x1x7x32xf32> to vector<7x32xf32>
    %c0_40 = arith.constant 0 : index
    %c2_41 = arith.constant 2 : index
    %c0_42 = arith.constant 0 : index
    %c0_43 = arith.constant 0 : index
    %28 = vector.load %arg1[%c0_40, %c2_41, %c0_42, %c0_43] : memref<4x4x8x32xf32, #tpu.memory_space<vmem>>, vector<1x1x7x32xf32>
    %29 = vector.shape_cast %28 : vector<1x1x7x32xf32> to vector<7x32xf32>
    %c0_44 = arith.constant 0 : index
    %c3_45 = arith.constant 3 : index
    %c0_46 = arith.constant 0 : index
    %c0_47 = arith.constant 0 : index
    %30 = vector.load %arg1[%c0_44, %c3_45, %c0_46, %c0_47] : memref<4x4x8x32xf32, #tpu.memory_space<vmem>>, vector<1x1x7x32xf32>
    %31 = vector.shape_cast %30 : vector<1x1x7x32xf32> to vector<7x32xf32>
    %c0_48 = arith.constant 0 : index
    %c0_49 = arith.constant 0 : index
    %c1_50 = arith.constant 1 : index
    %c0_51 = arith.constant 0 : index
    %32 = vector.load %arg1[%c0_48, %c0_49, %c1_50, %c0_51] : memref<4x4x8x32xf32, #tpu.memory_space<vmem>>, vector<1x1x7x32xf32>
    %33 = vector.shape_cast %32 : vector<1x1x7x32xf32> to vector<7x32xf32>
    %c0_52 = arith.constant 0 : index
    %c1_53 = arith.constant 1 : index
    %c1_54 = arith.constant 1 : index
    %c0_55 = arith.constant 0 : index
    %34 = vector.load %arg1[%c0_52, %c1_53, %c1_54, %c0_55] : memref<4x4x8x32xf32, #tpu.memory_space<vmem>>, vector<1x1x7x32xf32>
    %35 = vector.shape_cast %34 : vector<1x1x7x32xf32> to vector<7x32xf32>
    %36 = tpu.concatenate %27, %29, %31, %33, %35 in 1 : vector<7x32xf32>, vector<7x32xf32>, vector<7x32xf32>, vector<7x32xf32>, vector<7x32xf32> -> vector<7x160xf32>
    %37 = arith.truncf %36 : vector<7x160xf32> to vector<7x160xbf16>
    %cst_56 = arith.constant dense<0.000000e+00> : vector<7x168xf32>
    %38 = tpu.matmul %37, %0, %cst_56 {dimension_numbers = #tpu.dot_dimension_numbers<[1], [0], [0], [1], [0, 0, 1, 1], [], []>} : vector<7x160xbf16>, vector<160x168xbf16>, vector<7x168xf32> -> vector<7x168xf32>
    %39 = vector.extract_strided_slice %38 {offsets = [0, 0], sizes = [7, 84], strides = [1, 1]} : vector<7x168xf32> to vector<7x84xf32>
    %40 = vector.extract_strided_slice %38 {offsets = [0, 84], sizes = [7, 84], strides = [1, 1]} : vector<7x168xf32> to vector<7x84xf32>
    %41 = arith.maximumf %39, %40 : vector<7x84xf32>
    %c0_57 = arith.constant 0 : index
    %c2_58 = arith.constant 2 : index
    %c0_59 = arith.constant 0 : index
    %c0_60 = arith.constant 0 : index
    %42 = vector.load %arg1[%c0_57, %c2_58, %c0_59, %c0_60] : memref<4x4x8x32xf32, #tpu.memory_space<vmem>>, vector<1x1x7x32xf32>
    %43 = vector.shape_cast %42 : vector<1x1x7x32xf32> to vector<7x32xf32>
    %c0_61 = arith.constant 0 : index
    %c3_62 = arith.constant 3 : index
    %c0_63 = arith.constant 0 : index
    %c0_64 = arith.constant 0 : index
    %44 = vector.load %arg1[%c0_61, %c3_62, %c0_63, %c0_64] : memref<4x4x8x32xf32, #tpu.memory_space<vmem>>, vector<1x1x7x32xf32>
    %45 = vector.shape_cast %44 : vector<1x1x7x32xf32> to vector<7x32xf32>
    %c0_65 = arith.constant 0 : index
    %c0_66 = arith.constant 0 : index
    %c1_67 = arith.constant 1 : index
    %c0_68 = arith.constant 0 : index
    %46 = vector.load %arg1[%c0_65, %c0_66, %c1_67, %c0_68] : memref<4x4x8x32xf32, #tpu.memory_space<vmem>>, vector<1x1x7x32xf32>
    %47 = vector.shape_cast %46 : vector<1x1x7x32xf32> to vector<7x32xf32>
    %c0_69 = arith.constant 0 : index
    %c1_70 = arith.constant 1 : index
    %c1_71 = arith.constant 1 : index
    %c0_72 = arith.constant 0 : index
    %48 = vector.load %arg1[%c0_69, %c1_70, %c1_71, %c0_72] : memref<4x4x8x32xf32, #tpu.memory_space<vmem>>, vector<1x1x7x32xf32>
    %49 = vector.shape_cast %48 : vector<1x1x7x32xf32> to vector<7x32xf32>
    %c0_73 = arith.constant 0 : index
    %c2_74 = arith.constant 2 : index
    %c1_75 = arith.constant 1 : index
    %c0_76 = arith.constant 0 : index
    %50 = vector.load %arg1[%c0_73, %c2_74, %c1_75, %c0_76] : memref<4x4x8x32xf32, #tpu.memory_space<vmem>>, vector<1x1x7x32xf32>
    %51 = vector.shape_cast %50 : vector<1x1x7x32xf32> to vector<7x32xf32>
    %52 = tpu.concatenate %43, %45, %47, %49, %51 in 1 : vector<7x32xf32>, vector<7x32xf32>, vector<7x32xf32>, vector<7x32xf32>, vector<7x32xf32> -> vector<7x160xf32>
    %53 = arith.truncf %52 : vector<7x160xf32> to vector<7x160xbf16>
    %cst_77 = arith.constant dense<0.000000e+00> : vector<7x168xf32>
    %54 = tpu.matmul %53, %0, %cst_77 {dimension_numbers = #tpu.dot_dimension_numbers<[1], [0], [0], [1], [0, 0, 1, 1], [], []>} : vector<7x160xbf16>, vector<160x168xbf16>, vector<7x168xf32> -> vector<7x168xf32>
    %55 = vector.extract_strided_slice %54 {offsets = [0, 0], sizes = [7, 84], strides = [1, 1]} : vector<7x168xf32> to vector<7x84xf32>
    %56 = vector.extract_strided_slice %54 {offsets = [0, 84], sizes = [7, 84], strides = [1, 1]} : vector<7x168xf32> to vector<7x84xf32>
    %57 = arith.maximumf %55, %56 : vector<7x84xf32>
    %c0_78 = arith.constant 0 : index
    %c3_79 = arith.constant 3 : index
    %c0_80 = arith.constant 0 : index
    %c0_81 = arith.constant 0 : index
    %58 = vector.load %arg1[%c0_78, %c3_79, %c0_80, %c0_81] : memref<4x4x8x32xf32, #tpu.memory_space<vmem>>, vector<1x1x7x32xf32>
    %59 = vector.shape_cast %58 : vector<1x1x7x32xf32> to vector<7x32xf32>
    %c0_82 = arith.constant 0 : index
    %c0_83 = arith.constant 0 : index
    %c1_84 = arith.constant 1 : index
    %c0_85 = arith.constant 0 : index
    %60 = vector.load %arg1[%c0_82, %c0_83, %c1_84, %c0_85] : memref<4x4x8x32xf32, #tpu.memory_space<vmem>>, vector<1x1x7x32xf32>
    %61 = vector.shape_cast %60 : vector<1x1x7x32xf32> to vector<7x32xf32>
    %c0_86 = arith.constant 0 : index
    %c1_87 = arith.constant 1 : index
    %c1_88 = arith.constant 1 : index
    %c0_89 = arith.constant 0 : index
    %62 = vector.load %arg1[%c0_86, %c1_87, %c1_88, %c0_89] : memref<4x4x8x32xf32, #tpu.memory_space<vmem>>, vector<1x1x7x32xf32>
    %63 = vector.shape_cast %62 : vector<1x1x7x32xf32> to vector<7x32xf32>
    %c0_90 = arith.constant 0 : index
    %c2_91 = arith.constant 2 : index
    %c1_92 = arith.constant 1 : index
    %c0_93 = arith.constant 0 : index
    %64 = vector.load %arg1[%c0_90, %c2_91, %c1_92, %c0_93] : memref<4x4x8x32xf32, #tpu.memory_space<vmem>>, vector<1x1x7x32xf32>
    %65 = vector.shape_cast %64 : vector<1x1x7x32xf32> to vector<7x32xf32>
    %c0_94 = arith.constant 0 : index
    %c3_95 = arith.constant 3 : index
    %c1_96 = arith.constant 1 : index
    %c0_97 = arith.constant 0 : index
    %66 = vector.load %arg1[%c0_94, %c3_95, %c1_96, %c0_97] : memref<4x4x8x32xf32, #tpu.memory_space<vmem>>, vector<1x1x7x32xf32>
    %67 = vector.shape_cast %66 : vector<1x1x7x32xf32> to vector<7x32xf32>
    %68 = tpu.concatenate %59, %61, %63, %65, %67 in 1 : vector<7x32xf32>, vector<7x32xf32>, vector<7x32xf32>, vector<7x32xf32>, vector<7x32xf32> -> vector<7x160xf32>
    %69 = arith.truncf %68 : vector<7x160xf32> to vector<7x160xbf16>
    %cst_98 = arith.constant dense<0.000000e+00> : vector<7x168xf32>
    %70 = tpu.matmul %69, %0, %cst_98 {dimension_numbers = #tpu.dot_dimension_numbers<[1], [0], [0], [1], [0, 0, 1, 1], [], []>} : vector<7x160xbf16>, vector<160x168xbf16>, vector<7x168xf32> -> vector<7x168xf32>
    %71 = vector.extract_strided_slice %70 {offsets = [0, 0], sizes = [7, 84], strides = [1, 1]} : vector<7x168xf32> to vector<7x84xf32>
    %72 = vector.extract_strided_slice %70 {offsets = [0, 84], sizes = [7, 84], strides = [1, 1]} : vector<7x168xf32> to vector<7x84xf32>
    %73 = arith.maximumf %71, %72 : vector<7x84xf32>
    %74 = arith.maximumf %25, %41 : vector<7x84xf32>
    %75 = vector.broadcast %5 : vector<1x84xf32> to vector<7x84xf32>
    %76 = arith.addf %74, %75 : vector<7x84xf32>
    %cst_99 = arith.constant 0.000000e+00 : f32
    %77 = vector.broadcast %cst_99 : f32 to vector<7x84xf32>
    %78 = arith.maximumf %76, %77 : vector<7x84xf32>
    %79 = arith.maximumf %57, %73 : vector<7x84xf32>
    %80 = vector.broadcast %5 : vector<1x84xf32> to vector<7x84xf32>
    %81 = arith.addf %79, %80 : vector<7x84xf32>
    %cst_100 = arith.constant 0.000000e+00 : f32
    %82 = vector.broadcast %cst_100 : f32 to vector<7x84xf32>
    %83 = arith.maximumf %81, %82 : vector<7x84xf32>
    %84 = vector.extract_strided_slice %78 {offsets = [0, 0], sizes = [5, 84], strides = [1, 1]} : vector<7x84xf32> to vector<5x84xf32>
    %85 = vector.extract_strided_slice %83 {offsets = [0, 0], sizes = [5, 84], strides = [1, 1]} : vector<7x84xf32> to vector<5x84xf32>
    %86 = vector.extract_strided_slice %78 {offsets = [1, 0], sizes = [5, 84], strides = [1, 1]} : vector<7x84xf32> to vector<5x84xf32>
    %87 = vector.extract_strided_slice %83 {offsets = [1, 0], sizes = [5, 84], strides = [1, 1]} : vector<7x84xf32> to vector<5x84xf32>
    %88 = vector.extract_strided_slice %78 {offsets = [2, 0], sizes = [5, 84], strides = [1, 1]} : vector<7x84xf32> to vector<5x84xf32>
    %89 = tpu.concatenate %84, %85, %86, %87, %88 in 1 : vector<5x84xf32>, vector<5x84xf32>, vector<5x84xf32>, vector<5x84xf32>, vector<5x84xf32> -> vector<5x420xf32>
    %90 = arith.truncf %89 : vector<5x420xf32> to vector<5x420xbf16>
    %cst_101 = arith.constant dense<0.000000e+00> : vector<5x160xf32>
    %91 = tpu.matmul %90, %1, %cst_101 {dimension_numbers = #tpu.dot_dimension_numbers<[1], [0], [0], [1], [0, 0, 1, 1], [], []>} : vector<5x420xbf16>, vector<420x160xbf16>, vector<5x160xf32> -> vector<5x160xf32>
    %92 = vector.extract_strided_slice %91 {offsets = [0, 0], sizes = [5, 80], strides = [1, 1]} : vector<5x160xf32> to vector<5x80xf32>
    %93 = vector.extract_strided_slice %91 {offsets = [0, 80], sizes = [5, 80], strides = [1, 1]} : vector<5x160xf32> to vector<5x80xf32>
    %94 = arith.maximumf %92, %93 : vector<5x80xf32>
    %95 = vector.extract_strided_slice %83 {offsets = [0, 0], sizes = [5, 84], strides = [1, 1]} : vector<7x84xf32> to vector<5x84xf32>
    %96 = vector.extract_strided_slice %78 {offsets = [1, 0], sizes = [5, 84], strides = [1, 1]} : vector<7x84xf32> to vector<5x84xf32>
    %97 = vector.extract_strided_slice %83 {offsets = [1, 0], sizes = [5, 84], strides = [1, 1]} : vector<7x84xf32> to vector<5x84xf32>
    %98 = vector.extract_strided_slice %78 {offsets = [2, 0], sizes = [5, 84], strides = [1, 1]} : vector<7x84xf32> to vector<5x84xf32>
    %99 = vector.extract_strided_slice %83 {offsets = [2, 0], sizes = [5, 84], strides = [1, 1]} : vector<7x84xf32> to vector<5x84xf32>
    %100 = tpu.concatenate %95, %96, %97, %98, %99 in 1 : vector<5x84xf32>, vector<5x84xf32>, vector<5x84xf32>, vector<5x84xf32>, vector<5x84xf32> -> vector<5x420xf32>
    %101 = arith.truncf %100 : vector<5x420xf32> to vector<5x420xbf16>
    %cst_102 = arith.constant dense<0.000000e+00> : vector<5x160xf32>
    %102 = tpu.matmul %101, %1, %cst_102 {dimension_numbers = #tpu.dot_dimension_numbers<[1], [0], [0], [1], [0, 0, 1, 1], [], []>} : vector<5x420xbf16>, vector<420x160xbf16>, vector<5x160xf32> -> vector<5x160xf32>
    %103 = vector.extract_strided_slice %102 {offsets = [0, 0], sizes = [5, 80], strides = [1, 1]} : vector<5x160xf32> to vector<5x80xf32>
    %104 = vector.extract_strided_slice %102 {offsets = [0, 80], sizes = [5, 80], strides = [1, 1]} : vector<5x160xf32> to vector<5x80xf32>
    %105 = arith.maximumf %103, %104 : vector<5x80xf32>
    %106 = arith.maximumf %94, %105 : vector<5x80xf32>
    %107 = vector.broadcast %6 : vector<1x80xf32> to vector<5x80xf32>
    %108 = arith.addf %106, %107 : vector<5x80xf32>
    %cst_103 = arith.constant 0.000000e+00 : f32
    %109 = vector.broadcast %cst_103 : f32 to vector<5x80xf32>
    %110 = arith.maximumf %108, %109 : vector<5x80xf32>
    %111 = vector.extract_strided_slice %110 {offsets = [0, 0], sizes = [1, 80], strides = [1, 1]} : vector<5x80xf32> to vector<1x80xf32>
    %112 = vector.extract_strided_slice %110 {offsets = [1, 0], sizes = [1, 80], strides = [1, 1]} : vector<5x80xf32> to vector<1x80xf32>
    %113 = vector.extract_strided_slice %110 {offsets = [2, 0], sizes = [1, 80], strides = [1, 1]} : vector<5x80xf32> to vector<1x80xf32>
    %114 = vector.extract_strided_slice %110 {offsets = [3, 0], sizes = [1, 80], strides = [1, 1]} : vector<5x80xf32> to vector<1x80xf32>
    %115 = vector.extract_strided_slice %110 {offsets = [4, 0], sizes = [1, 80], strides = [1, 1]} : vector<5x80xf32> to vector<1x80xf32>
    %116 = tpu.concatenate %111, %112, %113, %114, %115 in 1 : vector<1x80xf32>, vector<1x80xf32>, vector<1x80xf32>, vector<1x80xf32>, vector<1x80xf32> -> vector<1x400xf32>
    %117 = arith.truncf %116 : vector<1x400xf32> to vector<1x400xbf16>
    %cst_104 = arith.constant dense<0.000000e+00> : vector<1x120xf32>
    %118 = tpu.matmul %117, %2, %cst_104 {dimension_numbers = #tpu.dot_dimension_numbers<[1], [0], [0], [1], [0, 0, 1, 1], [], []>} : vector<1x400xbf16>, vector<400x120xbf16>, vector<1x120xf32> -> vector<1x120xf32>
    %119 = arith.addf %118, %7 : vector<1x120xf32>
    %120 = arith.truncf %119 : vector<1x120xf32> to vector<1x120xbf16>
    %cst_105 = arith.constant dense<0.000000e+00> : vector<1x84xf32>
    %121 = tpu.matmul %120, %3, %cst_105 {dimension_numbers = #tpu.dot_dimension_numbers<[1], [0], [0], [1], [0, 0, 1, 1], [], []>} : vector<1x120xbf16>, vector<120x84xbf16>, vector<1x84xf32> -> vector<1x84xf32>
    %122 = arith.addf %121, %8 : vector<1x84xf32>
    %cst_106 = arith.constant 0.000000e+00 : f32
    %123 = vector.broadcast %cst_106 : f32 to vector<1x84xf32>
    %124 = arith.maximumf %122, %123 : vector<1x84xf32>
    %125 = arith.truncf %124 : vector<1x84xf32> to vector<1x84xbf16>
    %cst_107 = arith.constant dense<0.000000e+00> : vector<1x10xf32>
    %126 = tpu.matmul %125, %4, %cst_107 {dimension_numbers = #tpu.dot_dimension_numbers<[1], [0], [0], [1], [0, 0, 1, 1], [], []>} : vector<1x84xbf16>, vector<84x10xbf16>, vector<1x10xf32> -> vector<1x10xf32>
    %127 = arith.addf %126, %9 : vector<1x10xf32>
    %cst_108 = arith.constant dense<0xFF800000> : vector<1xf32>
    %128 = vector.multi_reduction <maximumf>, %127, %cst_108 [1] : vector<1x10xf32> to vector<1xf32>
    %129 = vector.shape_cast %128 : vector<1xf32> to vector<1x1xf32>
    %130 = vector.broadcast %129 : vector<1x1xf32> to vector<1x10xf32>
    %131 = arith.subf %127, %130 : vector<1x10xf32>
    %132 = math.exp %131 : vector<1x10xf32>
    %cst_109 = arith.constant dense<0.000000e+00> : vector<1xf32>
    %133 = vector.multi_reduction <add>, %132, %cst_109 [1] : vector<1x10xf32> to vector<1xf32>
    %134 = vector.shape_cast %133 : vector<1xf32> to vector<1x1xf32>
    %135 = tpu.reciprocal %134 : vector<1x1xf32> -> vector<1x1xf32>
    %136 = vector.broadcast %135 : vector<1x1xf32> to vector<1x10xf32>
    %137 = arith.mulf %132, %136 : vector<1x10xf32>
    %c0_110 = arith.constant 0 : index
    %c0_111 = arith.constant 0 : index
    %c0_112 = arith.constant 0 : index
    %138 = vector.load %arg12[%c0_110, %c0_111, %c0_112] : memref<4x1x10xf32, #tpu.memory_space<vmem>>, vector<1x1x10xf32>
    %139 = vector.shape_cast %138 : vector<1x1x10xf32> to vector<1x10xf32>
    %140 = vector.shape_cast %137 : vector<1x10xf32> to vector<1x1x10xf32>
    tpu.vector_store %arg12[%c0_110, %c0_111, %c0_112], %140 {strides = array<i32>} : memref<4x1x10xf32, #tpu.memory_space<vmem>>, vector<1x1x10xf32>,
    %c1_113 = arith.constant 1 : index
    %c0_114 = arith.constant 0 : index
    %c0_115 = arith.constant 0 : index
    %c0_116 = arith.constant 0 : index
    %141 = vector.load %arg1[%c1_113, %c0_114, %c0_115, %c0_116] : memref<4x4x8x32xf32, #tpu.memory_space<vmem>>, vector<1x1x7x32xf32>
    %142 = vector.shape_cast %141 : vector<1x1x7x32xf32> to vector<7x32xf32>
    %c1_117 = arith.constant 1 : index
    %c1_118 = arith.constant 1 : index
    %c0_119 = arith.constant 0 : index
    %c0_120 = arith.constant 0 : index
    %143 = vector.load %arg1[%c1_117, %c1_118, %c0_119, %c0_120] : memref<4x4x8x32xf32, #tpu.memory_space<vmem>>, vector<1x1x7x32xf32>
    %144 = vector.shape_cast %143 : vector<1x1x7x32xf32> to vector<7x32xf32>
    %c1_121 = arith.constant 1 : index
    %c2_122 = arith.constant 2 : index
    %c0_123 = arith.constant 0 : index
    %c0_124 = arith.constant 0 : index
    %145 = vector.load %arg1[%c1_121, %c2_122, %c0_123, %c0_124] : memref<4x4x8x32xf32, #tpu.memory_space<vmem>>, vector<1x1x7x32xf32>
    %146 = vector.shape_cast %145 : vector<1x1x7x32xf32> to vector<7x32xf32>
    %c1_125 = arith.constant 1 : index
    %c3_126 = arith.constant 3 : index
    %c0_127 = arith.constant 0 : index
    %c0_128 = arith.constant 0 : index
    %147 = vector.load %arg1[%c1_125, %c3_126, %c0_127, %c0_128] : memref<4x4x8x32xf32, #tpu.memory_space<vmem>>, vector<1x1x7x32xf32>
    %148 = vector.shape_cast %147 : vector<1x1x7x32xf32> to vector<7x32xf32>
    %c1_129 = arith.constant 1 : index
    %c0_130 = arith.constant 0 : index
    %c1_131 = arith.constant 1 : index
    %c0_132 = arith.constant 0 : index
    %149 = vector.load %arg1[%c1_129, %c0_130, %c1_131, %c0_132] : memref<4x4x8x32xf32, #tpu.memory_space<vmem>>, vector<1x1x7x32xf32>
    %150 = vector.shape_cast %149 : vector<1x1x7x32xf32> to vector<7x32xf32>
    %151 = tpu.concatenate %142, %144, %146, %148, %150 in 1 : vector<7x32xf32>, vector<7x32xf32>, vector<7x32xf32>, vector<7x32xf32>, vector<7x32xf32> -> vector<7x160xf32>
    %152 = arith.truncf %151 : vector<7x160xf32> to vector<7x160xbf16>
    %cst_133 = arith.constant dense<0.000000e+00> : vector<7x168xf32>
    %153 = tpu.matmul %152, %0, %cst_133 {dimension_numbers = #tpu.dot_dimension_numbers<[1], [0], [0], [1], [0, 0, 1, 1], [], []>} : vector<7x160xbf16>, vector<160x168xbf16>, vector<7x168xf32> -> vector<7x168xf32>
    %154 = vector.extract_strided_slice %153 {offsets = [0, 0], sizes = [7, 84], strides = [1, 1]} : vector<7x168xf32> to vector<7x84xf32>
    %155 = vector.extract_strided_slice %153 {offsets = [0, 84], sizes = [7, 84], strides = [1, 1]} : vector<7x168xf32> to vector<7x84xf32>
    %156 = arith.maximumf %154, %155 : vector<7x84xf32>
    %c1_134 = arith.constant 1 : index
    %c1_135 = arith.constant 1 : index
    %c0_136 = arith.constant 0 : index
    %c0_137 = arith.constant 0 : index
    %157 = vector.load %arg1[%c1_134, %c1_135, %c0_136, %c0_137] : memref<4x4x8x32xf32, #tpu.memory_space<vmem>>, vector<1x1x7x32xf32>
    %158 = vector.shape_cast %157 : vector<1x1x7x32xf32> to vector<7x32xf32>
    %c1_138 = arith.constant 1 : index
    %c2_139 = arith.constant 2 : index
    %c0_140 = arith.constant 0 : index
    %c0_141 = arith.constant 0 : index
    %159 = vector.load %arg1[%c1_138, %c2_139, %c0_140, %c0_141] : memref<4x4x8x32xf32, #tpu.memory_space<vmem>>, vector<1x1x7x32xf32>
    %160 = vector.shape_cast %159 : vector<1x1x7x32xf32> to vector<7x32xf32>
    %c1_142 = arith.constant 1 : index
    %c3_143 = arith.constant 3 : index
    %c0_144 = arith.constant 0 : index
    %c0_145 = arith.constant 0 : index
    %161 = vector.load %arg1[%c1_142, %c3_143, %c0_144, %c0_145] : memref<4x4x8x32xf32, #tpu.memory_space<vmem>>, vector<1x1x7x32xf32>
    %162 = vector.shape_cast %161 : vector<1x1x7x32xf32> to vector<7x32xf32>
    %c1_146 = arith.constant 1 : index
    %c0_147 = arith.constant 0 : index
    %c1_148 = arith.constant 1 : index
    %c0_149 = arith.constant 0 : index
    %163 = vector.load %arg1[%c1_146, %c0_147, %c1_148, %c0_149] : memref<4x4x8x32xf32, #tpu.memory_space<vmem>>, vector<1x1x7x32xf32>
    %164 = vector.shape_cast %163 : vector<1x1x7x32xf32> to vector<7x32xf32>
    %c1_150 = arith.constant 1 : index
    %c1_151 = arith.constant 1 : index
    %c1_152 = arith.constant 1 : index
    %c0_153 = arith.constant 0 : index
    %165 = vector.load %arg1[%c1_150, %c1_151, %c1_152, %c0_153] : memref<4x4x8x32xf32, #tpu.memory_space<vmem>>, vector<1x1x7x32xf32>
    %166 = vector.shape_cast %165 : vector<1x1x7x32xf32> to vector<7x32xf32>
    %167 = tpu.concatenate %158, %160, %162, %164, %166 in 1 : vector<7x32xf32>, vector<7x32xf32>, vector<7x32xf32>, vector<7x32xf32>, vector<7x32xf32> -> vector<7x160xf32>
    %168 = arith.truncf %167 : vector<7x160xf32> to vector<7x160xbf16>
    %cst_154 = arith.constant dense<0.000000e+00> : vector<7x168xf32>
    %169 = tpu.matmul %168, %0, %cst_154 {dimension_numbers = #tpu.dot_dimension_numbers<[1], [0], [0], [1], [0, 0, 1, 1], [], []>} : vector<7x160xbf16>, vector<160x168xbf16>, vector<7x168xf32> -> vector<7x168xf32>
    %170 = vector.extract_strided_slice %169 {offsets = [0, 0], sizes = [7, 84], strides = [1, 1]} : vector<7x168xf32> to vector<7x84xf32>
    %171 = vector.extract_strided_slice %169 {offsets = [0, 84], sizes = [7, 84], strides = [1, 1]} : vector<7x168xf32> to vector<7x84xf32>
    %172 = arith.maximumf %170, %171 : vector<7x84xf32>
    %c1_155 = arith.constant 1 : index
    %c2_156 = arith.constant 2 : index
    %c0_157 = arith.constant 0 : index
    %c0_158 = arith.constant 0 : index
    %173 = vector.load %arg1[%c1_155, %c2_156, %c0_157, %c0_158] : memref<4x4x8x32xf32, #tpu.memory_space<vmem>>, vector<1x1x7x32xf32>
    %174 = vector.shape_cast %173 : vector<1x1x7x32xf32> to vector<7x32xf32>
    %c1_159 = arith.constant 1 : index
    %c3_160 = arith.constant 3 : index
    %c0_161 = arith.constant 0 : index
    %c0_162 = arith.constant 0 : index
    %175 = vector.load %arg1[%c1_159, %c3_160, %c0_161, %c0_162] : memref<4x4x8x32xf32, #tpu.memory_space<vmem>>, vector<1x1x7x32xf32>
    %176 = vector.shape_cast %175 : vector<1x1x7x32xf32> to vector<7x32xf32>
    %c1_163 = arith.constant 1 : index
    %c0_164 = arith.constant 0 : index
    %c1_165 = arith.constant 1 : index
    %c0_166 = arith.constant 0 : index
    %177 = vector.load %arg1[%c1_163, %c0_164, %c1_165, %c0_166] : memref<4x4x8x32xf32, #tpu.memory_space<vmem>>, vector<1x1x7x32xf32>
    %178 = vector.shape_cast %177 : vector<1x1x7x32xf32> to vector<7x32xf32>
    %c1_167 = arith.constant 1 : index
    %c1_168 = arith.constant 1 : index
    %c1_169 = arith.constant 1 : index
    %c0_170 = arith.constant 0 : index
    %179 = vector.load %arg1[%c1_167, %c1_168, %c1_169, %c0_170] : memref<4x4x8x32xf32, #tpu.memory_space<vmem>>, vector<1x1x7x32xf32>
    %180 = vector.shape_cast %179 : vector<1x1x7x32xf32> to vector<7x32xf32>
    %c1_171 = arith.constant 1 : index
    %c2_172 = arith.constant 2 : index
    %c1_173 = arith.constant 1 : index
    %c0_174 = arith.constant 0 : index
    %181 = vector.load %arg1[%c1_171, %c2_172, %c1_173, %c0_174] : memref<4x4x8x32xf32, #tpu.memory_space<vmem>>, vector<1x1x7x32xf32>
    %182 = vector.shape_cast %181 : vector<1x1x7x32xf32> to vector<7x32xf32>
    %183 = tpu.concatenate %174, %176, %178, %180, %182 in 1 : vector<7x32xf32>, vector<7x32xf32>, vector<7x32xf32>, vector<7x32xf32>, vector<7x32xf32> -> vector<7x160xf32>
    %184 = arith.truncf %183 : vector<7x160xf32> to vector<7x160xbf16>
    %cst_175 = arith.constant dense<0.000000e+00> : vector<7x168xf32>
    %185 = tpu.matmul %184, %0, %cst_175 {dimension_numbers = #tpu.dot_dimension_numbers<[1], [0], [0], [1], [0, 0, 1, 1], [], []>} : vector<7x160xbf16>, vector<160x168xbf16>, vector<7x168xf32> -> vector<7x168xf32>
    %186 = vector.extract_strided_slice %185 {offsets = [0, 0], sizes = [7, 84], strides = [1, 1]} : vector<7x168xf32> to vector<7x84xf32>
    %187 = vector.extract_strided_slice %185 {offsets = [0, 84], sizes = [7, 84], strides = [1, 1]} : vector<7x168xf32> to vector<7x84xf32>
    %188 = arith.maximumf %186, %187 : vector<7x84xf32>
    %c1_176 = arith.constant 1 : index
    %c3_177 = arith.constant 3 : index
    %c0_178 = arith.constant 0 : index
    %c0_179 = arith.constant 0 : index
    %189 = vector.load %arg1[%c1_176, %c3_177, %c0_178, %c0_179] : memref<4x4x8x32xf32, #tpu.memory_space<vmem>>, vector<1x1x7x32xf32>
    %190 = vector.shape_cast %189 : vector<1x1x7x32xf32> to vector<7x32xf32>
    %c1_180 = arith.constant 1 : index
    %c0_181 = arith.constant 0 : index
    %c1_182 = arith.constant 1 : index
    %c0_183 = arith.constant 0 : index
    %191 = vector.load %arg1[%c1_180, %c0_181, %c1_182, %c0_183] : memref<4x4x8x32xf32, #tpu.memory_space<vmem>>, vector<1x1x7x32xf32>
    %192 = vector.shape_cast %191 : vector<1x1x7x32xf32> to vector<7x32xf32>
    %c1_184 = arith.constant 1 : index
    %c1_185 = arith.constant 1 : index
    %c1_186 = arith.constant 1 : index
    %c0_187 = arith.constant 0 : index
    %193 = vector.load %arg1[%c1_184, %c1_185, %c1_186, %c0_187] : memref<4x4x8x32xf32, #tpu.memory_space<vmem>>, vector<1x1x7x32xf32>
    %194 = vector.shape_cast %193 : vector<1x1x7x32xf32> to vector<7x32xf32>
    %c1_188 = arith.constant 1 : index
    %c2_189 = arith.constant 2 : index
    %c1_190 = arith.constant 1 : index
    %c0_191 = arith.constant 0 : index
    %195 = vector.load %arg1[%c1_188, %c2_189, %c1_190, %c0_191] : memref<4x4x8x32xf32, #tpu.memory_space<vmem>>, vector<1x1x7x32xf32>
    %196 = vector.shape_cast %195 : vector<1x1x7x32xf32> to vector<7x32xf32>
    %c1_192 = arith.constant 1 : index
    %c3_193 = arith.constant 3 : index
    %c1_194 = arith.constant 1 : index
    %c0_195 = arith.constant 0 : index
    %197 = vector.load %arg1[%c1_192, %c3_193, %c1_194, %c0_195] : memref<4x4x8x32xf32, #tpu.memory_space<vmem>>, vector<1x1x7x32xf32>
    %198 = vector.shape_cast %197 : vector<1x1x7x32xf32> to vector<7x32xf32>
    %199 = tpu.concatenate %190, %192, %194, %196, %198 in 1 : vector<7x32xf32>, vector<7x32xf32>, vector<7x32xf32>, vector<7x32xf32>, vector<7x32xf32> -> vector<7x160xf32>
    %200 = arith.truncf %199 : vector<7x160xf32> to vector<7x160xbf16>
    %cst_196 = arith.constant dense<0.000000e+00> : vector<7x168xf32>
    %201 = tpu.matmul %200, %0, %cst_196 {dimension_numbers = #tpu.dot_dimension_numbers<[1], [0], [0], [1], [0, 0, 1, 1], [], []>} : vector<7x160xbf16>, vector<160x168xbf16>, vector<7x168xf32> -> vector<7x168xf32>
    %202 = vector.extract_strided_slice %201 {offsets = [0, 0], sizes = [7, 84], strides = [1, 1]} : vector<7x168xf32> to vector<7x84xf32>
    %203 = vector.extract_strided_slice %201 {offsets = [0, 84], sizes = [7, 84], strides = [1, 1]} : vector<7x168xf32> to vector<7x84xf32>
    %204 = arith.maximumf %202, %203 : vector<7x84xf32>
    %205 = arith.maximumf %156, %172 : vector<7x84xf32>
    %206 = vector.broadcast %5 : vector<1x84xf32> to vector<7x84xf32>
    %207 = arith.addf %205, %206 : vector<7x84xf32>
    %cst_197 = arith.constant 0.000000e+00 : f32
    %208 = vector.broadcast %cst_197 : f32 to vector<7x84xf32>
    %209 = arith.maximumf %207, %208 : vector<7x84xf32>
    %210 = arith.maximumf %188, %204 : vector<7x84xf32>
    %211 = vector.broadcast %5 : vector<1x84xf32> to vector<7x84xf32>
    %212 = arith.addf %210, %211 : vector<7x84xf32>
    %cst_198 = arith.constant 0.000000e+00 : f32
    %213 = vector.broadcast %cst_198 : f32 to vector<7x84xf32>
    %214 = arith.maximumf %212, %213 : vector<7x84xf32>
    %215 = vector.extract_strided_slice %209 {offsets = [0, 0], sizes = [5, 84], strides = [1, 1]} : vector<7x84xf32> to vector<5x84xf32>
    %216 = vector.extract_strided_slice %214 {offsets = [0, 0], sizes = [5, 84], strides = [1, 1]} : vector<7x84xf32> to vector<5x84xf32>
    %217 = vector.extract_strided_slice %209 {offsets = [1, 0], sizes = [5, 84], strides = [1, 1]} : vector<7x84xf32> to vector<5x84xf32>
    %218 = vector.extract_strided_slice %214 {offsets = [1, 0], sizes = [5, 84], strides = [1, 1]} : vector<7x84xf32> to vector<5x84xf32>
    %219 = vector.extract_strided_slice %209 {offsets = [2, 0], sizes = [5, 84], strides = [1, 1]} : vector<7x84xf32> to vector<5x84xf32>
    %220 = tpu.concatenate %215, %216, %217, %218, %219 in 1 : vector<5x84xf32>, vector<5x84xf32>, vector<5x84xf32>, vector<5x84xf32>, vector<5x84xf32> -> vector<5x420xf32>
    %221 = arith.truncf %220 : vector<5x420xf32> to vector<5x420xbf16>
    %cst_199 = arith.constant dense<0.000000e+00> : vector<5x160xf32>
    %222 = tpu.matmul %221, %1, %cst_199 {dimension_numbers = #tpu.dot_dimension_numbers<[1], [0], [0], [1], [0, 0, 1, 1], [], []>} : vector<5x420xbf16>, vector<420x160xbf16>, vector<5x160xf32> -> vector<5x160xf32>
    %223 = vector.extract_strided_slice %222 {offsets = [0, 0], sizes = [5, 80], strides = [1, 1]} : vector<5x160xf32> to vector<5x80xf32>
    %224 = vector.extract_strided_slice %222 {offsets = [0, 80], sizes = [5, 80], strides = [1, 1]} : vector<5x160xf32> to vector<5x80xf32>
    %225 = arith.maximumf %223, %224 : vector<5x80xf32>
    %226 = vector.extract_strided_slice %214 {offsets = [0, 0], sizes = [5, 84], strides = [1, 1]} : vector<7x84xf32> to vector<5x84xf32>
    %227 = vector.extract_strided_slice %209 {offsets = [1, 0], sizes = [5, 84], strides = [1, 1]} : vector<7x84xf32> to vector<5x84xf32>
    %228 = vector.extract_strided_slice %214 {offsets = [1, 0], sizes = [5, 84], strides = [1, 1]} : vector<7x84xf32> to vector<5x84xf32>
    %229 = vector.extract_strided_slice %209 {offsets = [2, 0], sizes = [5, 84], strides = [1, 1]} : vector<7x84xf32> to vector<5x84xf32>
    %230 = vector.extract_strided_slice %214 {offsets = [2, 0], sizes = [5, 84], strides = [1, 1]} : vector<7x84xf32> to vector<5x84xf32>
    %231 = tpu.concatenate %226, %227, %228, %229, %230 in 1 : vector<5x84xf32>, vector<5x84xf32>, vector<5x84xf32>, vector<5x84xf32>, vector<5x84xf32> -> vector<5x420xf32>
    %232 = arith.truncf %231 : vector<5x420xf32> to vector<5x420xbf16>
    %cst_200 = arith.constant dense<0.000000e+00> : vector<5x160xf32>
    %233 = tpu.matmul %232, %1, %cst_200 {dimension_numbers = #tpu.dot_dimension_numbers<[1], [0], [0], [1], [0, 0, 1, 1], [], []>} : vector<5x420xbf16>, vector<420x160xbf16>, vector<5x160xf32> -> vector<5x160xf32>
    %234 = vector.extract_strided_slice %233 {offsets = [0, 0], sizes = [5, 80], strides = [1, 1]} : vector<5x160xf32> to vector<5x80xf32>
    %235 = vector.extract_strided_slice %233 {offsets = [0, 80], sizes = [5, 80], strides = [1, 1]} : vector<5x160xf32> to vector<5x80xf32>
    %236 = arith.maximumf %234, %235 : vector<5x80xf32>
    %237 = arith.maximumf %225, %236 : vector<5x80xf32>
    %238 = vector.broadcast %6 : vector<1x80xf32> to vector<5x80xf32>
    %239 = arith.addf %237, %238 : vector<5x80xf32>
    %cst_201 = arith.constant 0.000000e+00 : f32
    %240 = vector.broadcast %cst_201 : f32 to vector<5x80xf32>
    %241 = arith.maximumf %239, %240 : vector<5x80xf32>
    %242 = vector.extract_strided_slice %241 {offsets = [0, 0], sizes = [1, 80], strides = [1, 1]} : vector<5x80xf32> to vector<1x80xf32>
    %243 = vector.extract_strided_slice %241 {offsets = [1, 0], sizes = [1, 80], strides = [1, 1]} : vector<5x80xf32> to vector<1x80xf32>
    %244 = vector.extract_strided_slice %241 {offsets = [2, 0], sizes = [1, 80], strides = [1, 1]} : vector<5x80xf32> to vector<1x80xf32>
    %245 = vector.extract_strided_slice %241 {offsets = [3, 0], sizes = [1, 80], strides = [1, 1]} : vector<5x80xf32> to vector<1x80xf32>
    %246 = vector.extract_strided_slice %241 {offsets = [4, 0], sizes = [1, 80], strides = [1, 1]} : vector<5x80xf32> to vector<1x80xf32>
    %247 = tpu.concatenate %242, %243, %244, %245, %246 in 1 : vector<1x80xf32>, vector<1x80xf32>, vector<1x80xf32>, vector<1x80xf32>, vector<1x80xf32> -> vector<1x400xf32>
    %248 = arith.truncf %247 : vector<1x400xf32> to vector<1x400xbf16>
    %cst_202 = arith.constant dense<0.000000e+00> : vector<1x120xf32>
    %249 = tpu.matmul %248, %2, %cst_202 {dimension_numbers = #tpu.dot_dimension_numbers<[1], [0], [0], [1], [0, 0, 1, 1], [], []>} : vector<1x400xbf16>, vector<400x120xbf16>, vector<1x120xf32> -> vector<1x120xf32>
    %250 = arith.addf %249, %7 : vector<1x120xf32>
    %251 = arith.truncf %250 : vector<1x120xf32> to vector<1x120xbf16>
    %cst_203 = arith.constant dense<0.000000e+00> : vector<1x84xf32>
    %252 = tpu.matmul %251, %3, %cst_203 {dimension_numbers = #tpu.dot_dimension_numbers<[1], [0], [0], [1], [0, 0, 1, 1], [], []>} : vector<1x120xbf16>, vector<120x84xbf16>, vector<1x84xf32> -> vector<1x84xf32>
    %253 = arith.addf %252, %8 : vector<1x84xf32>
    %cst_204 = arith.constant 0.000000e+00 : f32
    %254 = vector.broadcast %cst_204 : f32 to vector<1x84xf32>
    %255 = arith.maximumf %253, %254 : vector<1x84xf32>
    %256 = arith.truncf %255 : vector<1x84xf32> to vector<1x84xbf16>
    %cst_205 = arith.constant dense<0.000000e+00> : vector<1x10xf32>
    %257 = tpu.matmul %256, %4, %cst_205 {dimension_numbers = #tpu.dot_dimension_numbers<[1], [0], [0], [1], [0, 0, 1, 1], [], []>} : vector<1x84xbf16>, vector<84x10xbf16>, vector<1x10xf32> -> vector<1x10xf32>
    %258 = arith.addf %257, %9 : vector<1x10xf32>
    %cst_206 = arith.constant dense<0xFF800000> : vector<1xf32>
    %259 = vector.multi_reduction <maximumf>, %258, %cst_206 [1] : vector<1x10xf32> to vector<1xf32>
    %260 = vector.shape_cast %259 : vector<1xf32> to vector<1x1xf32>
    %261 = vector.broadcast %260 : vector<1x1xf32> to vector<1x10xf32>
    %262 = arith.subf %258, %261 : vector<1x10xf32>
    %263 = math.exp %262 : vector<1x10xf32>
    %cst_207 = arith.constant dense<0.000000e+00> : vector<1xf32>
    %264 = vector.multi_reduction <add>, %263, %cst_207 [1] : vector<1x10xf32> to vector<1xf32>
    %265 = vector.shape_cast %264 : vector<1xf32> to vector<1x1xf32>
    %266 = tpu.reciprocal %265 : vector<1x1xf32> -> vector<1x1xf32>
    %267 = vector.broadcast %266 : vector<1x1xf32> to vector<1x10xf32>
    %268 = arith.mulf %263, %267 : vector<1x10xf32>
    %c1_208 = arith.constant 1 : index
    %c0_209 = arith.constant 0 : index
    %c0_210 = arith.constant 0 : index
    %269 = vector.load %arg12[%c1_208, %c0_209, %c0_210] : memref<4x1x10xf32, #tpu.memory_space<vmem>>, vector<1x1x10xf32>
    %270 = vector.shape_cast %269 : vector<1x1x10xf32> to vector<1x10xf32>
    %271 = vector.shape_cast %268 : vector<1x10xf32> to vector<1x1x10xf32>
    tpu.vector_store %arg12[%c1_208, %c0_209, %c0_210], %271 {strides = array<i32>} : memref<4x1x10xf32, #tpu.memory_space<vmem>>, vector<1x1x10xf32>,
    %c2_211 = arith.constant 2 : index
    %c0_212 = arith.constant 0 : index
    %c0_213 = arith.constant 0 : index
    %c0_214 = arith.constant 0 : index
    %272 = vector.load %arg1[%c2_211, %c0_212, %c0_213, %c0_214] : memref<4x4x8x32xf32, #tpu.memory_space<vmem>>, vector<1x1x7x32xf32>
    %273 = vector.shape_cast %272 : vector<1x1x7x32xf32> to vector<7x32xf32>
    %c2_215 = arith.constant 2 : index
    %c1_216 = arith.constant 1 : index
    %c0_217 = arith.constant 0 : index
    %c0_218 = arith.constant 0 : index
    %274 = vector.load %arg1[%c2_215, %c1_216, %c0_217, %c0_218] : memref<4x4x8x32xf32, #tpu.memory_space<vmem>>, vector<1x1x7x32xf32>
    %275 = vector.shape_cast %274 : vector<1x1x7x32xf32> to vector<7x32xf32>
    %c2_219 = arith.constant 2 : index
    %c2_220 = arith.constant 2 : index
    %c0_221 = arith.constant 0 : index
    %c0_222 = arith.constant 0 : index
    %276 = vector.load %arg1[%c2_219, %c2_220, %c0_221, %c0_222] : memref<4x4x8x32xf32, #tpu.memory_space<vmem>>, vector<1x1x7x32xf32>
    %277 = vector.shape_cast %276 : vector<1x1x7x32xf32> to vector<7x32xf32>
    %c2_223 = arith.constant 2 : index
    %c3_224 = arith.constant 3 : index
    %c0_225 = arith.constant 0 : index
    %c0_226 = arith.constant 0 : index
    %278 = vector.load %arg1[%c2_223, %c3_224, %c0_225, %c0_226] : memref<4x4x8x32xf32, #tpu.memory_space<vmem>>, vector<1x1x7x32xf32>
    %279 = vector.shape_cast %278 : vector<1x1x7x32xf32> to vector<7x32xf32>
    %c2_227 = arith.constant 2 : index
    %c0_228 = arith.constant 0 : index
    %c1_229 = arith.constant 1 : index
    %c0_230 = arith.constant 0 : index
    %280 = vector.load %arg1[%c2_227, %c0_228, %c1_229, %c0_230] : memref<4x4x8x32xf32, #tpu.memory_space<vmem>>, vector<1x1x7x32xf32>
    %281 = vector.shape_cast %280 : vector<1x1x7x32xf32> to vector<7x32xf32>
    %282 = tpu.concatenate %273, %275, %277, %279, %281 in 1 : vector<7x32xf32>, vector<7x32xf32>, vector<7x32xf32>, vector<7x32xf32>, vector<7x32xf32> -> vector<7x160xf32>
    %283 = arith.truncf %282 : vector<7x160xf32> to vector<7x160xbf16>
    %cst_231 = arith.constant dense<0.000000e+00> : vector<7x168xf32>
    %284 = tpu.matmul %283, %0, %cst_231 {dimension_numbers = #tpu.dot_dimension_numbers<[1], [0], [0], [1], [0, 0, 1, 1], [], []>} : vector<7x160xbf16>, vector<160x168xbf16>, vector<7x168xf32> -> vector<7x168xf32>
    %285 = vector.extract_strided_slice %284 {offsets = [0, 0], sizes = [7, 84], strides = [1, 1]} : vector<7x168xf32> to vector<7x84xf32>
    %286 = vector.extract_strided_slice %284 {offsets = [0, 84], sizes = [7, 84], strides = [1, 1]} : vector<7x168xf32> to vector<7x84xf32>
    %287 = arith.maximumf %285, %286 : vector<7x84xf32>
    %c2_232 = arith.constant 2 : index
    %c1_233 = arith.constant 1 : index
    %c0_234 = arith.constant 0 : index
    %c0_235 = arith.constant 0 : index
    %288 = vector.load %arg1[%c2_232, %c1_233, %c0_234, %c0_235] : memref<4x4x8x32xf32, #tpu.memory_space<vmem>>, vector<1x1x7x32xf32>
    %289 = vector.shape_cast %288 : vector<1x1x7x32xf32> to vector<7x32xf32>
    %c2_236 = arith.constant 2 : index
    %c2_237 = arith.constant 2 : index
    %c0_238 = arith.constant 0 : index
    %c0_239 = arith.constant 0 : index
    %290 = vector.load %arg1[%c2_236, %c2_237, %c0_238, %c0_239] : memref<4x4x8x32xf32, #tpu.memory_space<vmem>>, vector<1x1x7x32xf32>
    %291 = vector.shape_cast %290 : vector<1x1x7x32xf32> to vector<7x32xf32>
    %c2_240 = arith.constant 2 : index
    %c3_241 = arith.constant 3 : index
    %c0_242 = arith.constant 0 : index
    %c0_243 = arith.constant 0 : index
    %292 = vector.load %arg1[%c2_240, %c3_241, %c0_242, %c0_243] : memref<4x4x8x32xf32, #tpu.memory_space<vmem>>, vector<1x1x7x32xf32>
    %293 = vector.shape_cast %292 : vector<1x1x7x32xf32> to vector<7x32xf32>
    %c2_244 = arith.constant 2 : index
    %c0_245 = arith.constant 0 : index
    %c1_246 = arith.constant 1 : index
    %c0_247 = arith.constant 0 : index
    %294 = vector.load %arg1[%c2_244, %c0_245, %c1_246, %c0_247] : memref<4x4x8x32xf32, #tpu.memory_space<vmem>>, vector<1x1x7x32xf32>
    %295 = vector.shape_cast %294 : vector<1x1x7x32xf32> to vector<7x32xf32>
    %c2_248 = arith.constant 2 : index
    %c1_249 = arith.constant 1 : index
    %c1_250 = arith.constant 1 : index
    %c0_251 = arith.constant 0 : index
    %296 = vector.load %arg1[%c2_248, %c1_249, %c1_250, %c0_251] : memref<4x4x8x32xf32, #tpu.memory_space<vmem>>, vector<1x1x7x32xf32>
    %297 = vector.shape_cast %296 : vector<1x1x7x32xf32> to vector<7x32xf32>
    %298 = tpu.concatenate %289, %291, %293, %295, %297 in 1 : vector<7x32xf32>, vector<7x32xf32>, vector<7x32xf32>, vector<7x32xf32>, vector<7x32xf32> -> vector<7x160xf32>
    %299 = arith.truncf %298 : vector<7x160xf32> to vector<7x160xbf16>
    %cst_252 = arith.constant dense<0.000000e+00> : vector<7x168xf32>
    %300 = tpu.matmul %299, %0, %cst_252 {dimension_numbers = #tpu.dot_dimension_numbers<[1], [0], [0], [1], [0, 0, 1, 1], [], []>} : vector<7x160xbf16>, vector<160x168xbf16>, vector<7x168xf32> -> vector<7x168xf32>
    %301 = vector.extract_strided_slice %300 {offsets = [0, 0], sizes = [7, 84], strides = [1, 1]} : vector<7x168xf32> to vector<7x84xf32>
    %302 = vector.extract_strided_slice %300 {offsets = [0, 84], sizes = [7, 84], strides = [1, 1]} : vector<7x168xf32> to vector<7x84xf32>
    %303 = arith.maximumf %301, %302 : vector<7x84xf32>
    %c2_253 = arith.constant 2 : index
    %c2_254 = arith.constant 2 : index
    %c0_255 = arith.constant 0 : index
    %c0_256 = arith.constant 0 : index
    %304 = vector.load %arg1[%c2_253, %c2_254, %c0_255, %c0_256] : memref<4x4x8x32xf32, #tpu.memory_space<vmem>>, vector<1x1x7x32xf32>
    %305 = vector.shape_cast %304 : vector<1x1x7x32xf32> to vector<7x32xf32>
    %c2_257 = arith.constant 2 : index
    %c3_258 = arith.constant 3 : index
    %c0_259 = arith.constant 0 : index
    %c0_260 = arith.constant 0 : index
    %306 = vector.load %arg1[%c2_257, %c3_258, %c0_259, %c0_260] : memref<4x4x8x32xf32, #tpu.memory_space<vmem>>, vector<1x1x7x32xf32>
    %307 = vector.shape_cast %306 : vector<1x1x7x32xf32> to vector<7x32xf32>
    %c2_261 = arith.constant 2 : index
    %c0_262 = arith.constant 0 : index
    %c1_263 = arith.constant 1 : index
    %c0_264 = arith.constant 0 : index
    %308 = vector.load %arg1[%c2_261, %c0_262, %c1_263, %c0_264] : memref<4x4x8x32xf32, #tpu.memory_space<vmem>>, vector<1x1x7x32xf32>
    %309 = vector.shape_cast %308 : vector<1x1x7x32xf32> to vector<7x32xf32>
    %c2_265 = arith.constant 2 : index
    %c1_266 = arith.constant 1 : index
    %c1_267 = arith.constant 1 : index
    %c0_268 = arith.constant 0 : index
    %310 = vector.load %arg1[%c2_265, %c1_266, %c1_267, %c0_268] : memref<4x4x8x32xf32, #tpu.memory_space<vmem>>, vector<1x1x7x32xf32>
    %311 = vector.shape_cast %310 : vector<1x1x7x32xf32> to vector<7x32xf32>
    %c2_269 = arith.constant 2 : index
    %c2_270 = arith.constant 2 : index
    %c1_271 = arith.constant 1 : index
    %c0_272 = arith.constant 0 : index
    %312 = vector.load %arg1[%c2_269, %c2_270, %c1_271, %c0_272] : memref<4x4x8x32xf32, #tpu.memory_space<vmem>>, vector<1x1x7x32xf32>
    %313 = vector.shape_cast %312 : vector<1x1x7x32xf32> to vector<7x32xf32>
    %314 = tpu.concatenate %305, %307, %309, %311, %313 in 1 : vector<7x32xf32>, vector<7x32xf32>, vector<7x32xf32>, vector<7x32xf32>, vector<7x32xf32> -> vector<7x160xf32>
    %315 = arith.truncf %314 : vector<7x160xf32> to vector<7x160xbf16>
    %cst_273 = arith.constant dense<0.000000e+00> : vector<7x168xf32>
    %316 = tpu.matmul %315, %0, %cst_273 {dimension_numbers = #tpu.dot_dimension_numbers<[1], [0], [0], [1], [0, 0, 1, 1], [], []>} : vector<7x160xbf16>, vector<160x168xbf16>, vector<7x168xf32> -> vector<7x168xf32>
    %317 = vector.extract_strided_slice %316 {offsets = [0, 0], sizes = [7, 84], strides = [1, 1]} : vector<7x168xf32> to vector<7x84xf32>
    %318 = vector.extract_strided_slice %316 {offsets = [0, 84], sizes = [7, 84], strides = [1, 1]} : vector<7x168xf32> to vector<7x84xf32>
    %319 = arith.maximumf %317, %318 : vector<7x84xf32>
    %c2_274 = arith.constant 2 : index
    %c3_275 = arith.constant 3 : index
    %c0_276 = arith.constant 0 : index
    %c0_277 = arith.constant 0 : index
    %320 = vector.load %arg1[%c2_274, %c3_275, %c0_276, %c0_277] : memref<4x4x8x32xf32, #tpu.memory_space<vmem>>, vector<1x1x7x32xf32>
    %321 = vector.shape_cast %320 : vector<1x1x7x32xf32> to vector<7x32xf32>
    %c2_278 = arith.constant 2 : index
    %c0_279 = arith.constant 0 : index
    %c1_280 = arith.constant 1 : index
    %c0_281 = arith.constant 0 : index
    %322 = vector.load %arg1[%c2_278, %c0_279, %c1_280, %c0_281] : memref<4x4x8x32xf32, #tpu.memory_space<vmem>>, vector<1x1x7x32xf32>
    %323 = vector.shape_cast %322 : vector<1x1x7x32xf32> to vector<7x32xf32>
    %c2_282 = arith.constant 2 : index
    %c1_283 = arith.constant 1 : index
    %c1_284 = arith.constant 1 : index
    %c0_285 = arith.constant 0 : index
    %324 = vector.load %arg1[%c2_282, %c1_283, %c1_284, %c0_285] : memref<4x4x8x32xf32, #tpu.memory_space<vmem>>, vector<1x1x7x32xf32>
    %325 = vector.shape_cast %324 : vector<1x1x7x32xf32> to vector<7x32xf32>
    %c2_286 = arith.constant 2 : index
    %c2_287 = arith.constant 2 : index
    %c1_288 = arith.constant 1 : index
    %c0_289 = arith.constant 0 : index
    %326 = vector.load %arg1[%c2_286, %c2_287, %c1_288, %c0_289] : memref<4x4x8x32xf32, #tpu.memory_space<vmem>>, vector<1x1x7x32xf32>
    %327 = vector.shape_cast %326 : vector<1x1x7x32xf32> to vector<7x32xf32>
    %c2_290 = arith.constant 2 : index
    %c3_291 = arith.constant 3 : index
    %c1_292 = arith.constant 1 : index
    %c0_293 = arith.constant 0 : index
    %328 = vector.load %arg1[%c2_290, %c3_291, %c1_292, %c0_293] : memref<4x4x8x32xf32, #tpu.memory_space<vmem>>, vector<1x1x7x32xf32>
    %329 = vector.shape_cast %328 : vector<1x1x7x32xf32> to vector<7x32xf32>
    %330 = tpu.concatenate %321, %323, %325, %327, %329 in 1 : vector<7x32xf32>, vector<7x32xf32>, vector<7x32xf32>, vector<7x32xf32>, vector<7x32xf32> -> vector<7x160xf32>
    %331 = arith.truncf %330 : vector<7x160xf32> to vector<7x160xbf16>
    %cst_294 = arith.constant dense<0.000000e+00> : vector<7x168xf32>
    %332 = tpu.matmul %331, %0, %cst_294 {dimension_numbers = #tpu.dot_dimension_numbers<[1], [0], [0], [1], [0, 0, 1, 1], [], []>} : vector<7x160xbf16>, vector<160x168xbf16>, vector<7x168xf32> -> vector<7x168xf32>
    %333 = vector.extract_strided_slice %332 {offsets = [0, 0], sizes = [7, 84], strides = [1, 1]} : vector<7x168xf32> to vector<7x84xf32>
    %334 = vector.extract_strided_slice %332 {offsets = [0, 84], sizes = [7, 84], strides = [1, 1]} : vector<7x168xf32> to vector<7x84xf32>
    %335 = arith.maximumf %333, %334 : vector<7x84xf32>
    %336 = arith.maximumf %287, %303 : vector<7x84xf32>
    %337 = vector.broadcast %5 : vector<1x84xf32> to vector<7x84xf32>
    %338 = arith.addf %336, %337 : vector<7x84xf32>
    %cst_295 = arith.constant 0.000000e+00 : f32
    %339 = vector.broadcast %cst_295 : f32 to vector<7x84xf32>
    %340 = arith.maximumf %338, %339 : vector<7x84xf32>
    %341 = arith.maximumf %319, %335 : vector<7x84xf32>
    %342 = vector.broadcast %5 : vector<1x84xf32> to vector<7x84xf32>
    %343 = arith.addf %341, %342 : vector<7x84xf32>
    %cst_296 = arith.constant 0.000000e+00 : f32
    %344 = vector.broadcast %cst_296 : f32 to vector<7x84xf32>
    %345 = arith.maximumf %343, %344 : vector<7x84xf32>
    %346 = vector.extract_strided_slice %340 {offsets = [0, 0], sizes = [5, 84], strides = [1, 1]} : vector<7x84xf32> to vector<5x84xf32>
    %347 = vector.extract_strided_slice %345 {offsets = [0, 0], sizes = [5, 84], strides = [1, 1]} : vector<7x84xf32> to vector<5x84xf32>
    %348 = vector.extract_strided_slice %340 {offsets = [1, 0], sizes = [5, 84], strides = [1, 1]} : vector<7x84xf32> to vector<5x84xf32>
    %349 = vector.extract_strided_slice %345 {offsets = [1, 0], sizes = [5, 84], strides = [1, 1]} : vector<7x84xf32> to vector<5x84xf32>
    %350 = vector.extract_strided_slice %340 {offsets = [2, 0], sizes = [5, 84], strides = [1, 1]} : vector<7x84xf32> to vector<5x84xf32>
    %351 = tpu.concatenate %346, %347, %348, %349, %350 in 1 : vector<5x84xf32>, vector<5x84xf32>, vector<5x84xf32>, vector<5x84xf32>, vector<5x84xf32> -> vector<5x420xf32>
    %352 = arith.truncf %351 : vector<5x420xf32> to vector<5x420xbf16>
    %cst_297 = arith.constant dense<0.000000e+00> : vector<5x160xf32>
    %353 = tpu.matmul %352, %1, %cst_297 {dimension_numbers = #tpu.dot_dimension_numbers<[1], [0], [0], [1], [0, 0, 1, 1], [], []>} : vector<5x420xbf16>, vector<420x160xbf16>, vector<5x160xf32> -> vector<5x160xf32>
    %354 = vector.extract_strided_slice %353 {offsets = [0, 0], sizes = [5, 80], strides = [1, 1]} : vector<5x160xf32> to vector<5x80xf32>
    %355 = vector.extract_strided_slice %353 {offsets = [0, 80], sizes = [5, 80], strides = [1, 1]} : vector<5x160xf32> to vector<5x80xf32>
    %356 = arith.maximumf %354, %355 : vector<5x80xf32>
    %357 = vector.extract_strided_slice %345 {offsets = [0, 0], sizes = [5, 84], strides = [1, 1]} : vector<7x84xf32> to vector<5x84xf32>
    %358 = vector.extract_strided_slice %340 {offsets = [1, 0], sizes = [5, 84], strides = [1, 1]} : vector<7x84xf32> to vector<5x84xf32>
    %359 = vector.extract_strided_slice %345 {offsets = [1, 0], sizes = [5, 84], strides = [1, 1]} : vector<7x84xf32> to vector<5x84xf32>
    %360 = vector.extract_strided_slice %340 {offsets = [2, 0], sizes = [5, 84], strides = [1, 1]} : vector<7x84xf32> to vector<5x84xf32>
    %361 = vector.extract_strided_slice %345 {offsets = [2, 0], sizes = [5, 84], strides = [1, 1]} : vector<7x84xf32> to vector<5x84xf32>
    %362 = tpu.concatenate %357, %358, %359, %360, %361 in 1 : vector<5x84xf32>, vector<5x84xf32>, vector<5x84xf32>, vector<5x84xf32>, vector<5x84xf32> -> vector<5x420xf32>
    %363 = arith.truncf %362 : vector<5x420xf32> to vector<5x420xbf16>
    %cst_298 = arith.constant dense<0.000000e+00> : vector<5x160xf32>
    %364 = tpu.matmul %363, %1, %cst_298 {dimension_numbers = #tpu.dot_dimension_numbers<[1], [0], [0], [1], [0, 0, 1, 1], [], []>} : vector<5x420xbf16>, vector<420x160xbf16>, vector<5x160xf32> -> vector<5x160xf32>
    %365 = vector.extract_strided_slice %364 {offsets = [0, 0], sizes = [5, 80], strides = [1, 1]} : vector<5x160xf32> to vector<5x80xf32>
    %366 = vector.extract_strided_slice %364 {offsets = [0, 80], sizes = [5, 80], strides = [1, 1]} : vector<5x160xf32> to vector<5x80xf32>
    %367 = arith.maximumf %365, %366 : vector<5x80xf32>
    %368 = arith.maximumf %356, %367 : vector<5x80xf32>
    %369 = vector.broadcast %6 : vector<1x80xf32> to vector<5x80xf32>
    %370 = arith.addf %368, %369 : vector<5x80xf32>
    %cst_299 = arith.constant 0.000000e+00 : f32
    %371 = vector.broadcast %cst_299 : f32 to vector<5x80xf32>
    %372 = arith.maximumf %370, %371 : vector<5x80xf32>
    %373 = vector.extract_strided_slice %372 {offsets = [0, 0], sizes = [1, 80], strides = [1, 1]} : vector<5x80xf32> to vector<1x80xf32>
    %374 = vector.extract_strided_slice %372 {offsets = [1, 0], sizes = [1, 80], strides = [1, 1]} : vector<5x80xf32> to vector<1x80xf32>
    %375 = vector.extract_strided_slice %372 {offsets = [2, 0], sizes = [1, 80], strides = [1, 1]} : vector<5x80xf32> to vector<1x80xf32>
    %376 = vector.extract_strided_slice %372 {offsets = [3, 0], sizes = [1, 80], strides = [1, 1]} : vector<5x80xf32> to vector<1x80xf32>
    %377 = vector.extract_strided_slice %372 {offsets = [4, 0], sizes = [1, 80], strides = [1, 1]} : vector<5x80xf32> to vector<1x80xf32>
    %378 = tpu.concatenate %373, %374, %375, %376, %377 in 1 : vector<1x80xf32>, vector<1x80xf32>, vector<1x80xf32>, vector<1x80xf32>, vector<1x80xf32> -> vector<1x400xf32>
    %379 = arith.truncf %378 : vector<1x400xf32> to vector<1x400xbf16>
    %cst_300 = arith.constant dense<0.000000e+00> : vector<1x120xf32>
    %380 = tpu.matmul %379, %2, %cst_300 {dimension_numbers = #tpu.dot_dimension_numbers<[1], [0], [0], [1], [0, 0, 1, 1], [], []>} : vector<1x400xbf16>, vector<400x120xbf16>, vector<1x120xf32> -> vector<1x120xf32>
    %381 = arith.addf %380, %7 : vector<1x120xf32>
    %382 = arith.truncf %381 : vector<1x120xf32> to vector<1x120xbf16>
    %cst_301 = arith.constant dense<0.000000e+00> : vector<1x84xf32>
    %383 = tpu.matmul %382, %3, %cst_301 {dimension_numbers = #tpu.dot_dimension_numbers<[1], [0], [0], [1], [0, 0, 1, 1], [], []>} : vector<1x120xbf16>, vector<120x84xbf16>, vector<1x84xf32> -> vector<1x84xf32>
    %384 = arith.addf %383, %8 : vector<1x84xf32>
    %cst_302 = arith.constant 0.000000e+00 : f32
    %385 = vector.broadcast %cst_302 : f32 to vector<1x84xf32>
    %386 = arith.maximumf %384, %385 : vector<1x84xf32>
    %387 = arith.truncf %386 : vector<1x84xf32> to vector<1x84xbf16>
    %cst_303 = arith.constant dense<0.000000e+00> : vector<1x10xf32>
    %388 = tpu.matmul %387, %4, %cst_303 {dimension_numbers = #tpu.dot_dimension_numbers<[1], [0], [0], [1], [0, 0, 1, 1], [], []>} : vector<1x84xbf16>, vector<84x10xbf16>, vector<1x10xf32> -> vector<1x10xf32>
    %389 = arith.addf %388, %9 : vector<1x10xf32>
    %cst_304 = arith.constant dense<0xFF800000> : vector<1xf32>
    %390 = vector.multi_reduction <maximumf>, %389, %cst_304 [1] : vector<1x10xf32> to vector<1xf32>
    %391 = vector.shape_cast %390 : vector<1xf32> to vector<1x1xf32>
    %392 = vector.broadcast %391 : vector<1x1xf32> to vector<1x10xf32>
    %393 = arith.subf %389, %392 : vector<1x10xf32>
    %394 = math.exp %393 : vector<1x10xf32>
    %cst_305 = arith.constant dense<0.000000e+00> : vector<1xf32>
    %395 = vector.multi_reduction <add>, %394, %cst_305 [1] : vector<1x10xf32> to vector<1xf32>
    %396 = vector.shape_cast %395 : vector<1xf32> to vector<1x1xf32>
    %397 = tpu.reciprocal %396 : vector<1x1xf32> -> vector<1x1xf32>
    %398 = vector.broadcast %397 : vector<1x1xf32> to vector<1x10xf32>
    %399 = arith.mulf %394, %398 : vector<1x10xf32>
    %c2_306 = arith.constant 2 : index
    %c0_307 = arith.constant 0 : index
    %c0_308 = arith.constant 0 : index
    %400 = vector.load %arg12[%c2_306, %c0_307, %c0_308] : memref<4x1x10xf32, #tpu.memory_space<vmem>>, vector<1x1x10xf32>
    %401 = vector.shape_cast %400 : vector<1x1x10xf32> to vector<1x10xf32>
    %402 = vector.shape_cast %399 : vector<1x10xf32> to vector<1x1x10xf32>
    tpu.vector_store %arg12[%c2_306, %c0_307, %c0_308], %402 {strides = array<i32>} : memref<4x1x10xf32, #tpu.memory_space<vmem>>, vector<1x1x10xf32>,
    %c3_309 = arith.constant 3 : index
    %c0_310 = arith.constant 0 : index
    %c0_311 = arith.constant 0 : index
    %c0_312 = arith.constant 0 : index
    %403 = vector.load %arg1[%c3_309, %c0_310, %c0_311, %c0_312] : memref<4x4x8x32xf32, #tpu.memory_space<vmem>>, vector<1x1x7x32xf32>
    %404 = vector.shape_cast %403 : vector<1x1x7x32xf32> to vector<7x32xf32>
    %c3_313 = arith.constant 3 : index
    %c1_314 = arith.constant 1 : index
    %c0_315 = arith.constant 0 : index
    %c0_316 = arith.constant 0 : index
    %405 = vector.load %arg1[%c3_313, %c1_314, %c0_315, %c0_316] : memref<4x4x8x32xf32, #tpu.memory_space<vmem>>, vector<1x1x7x32xf32>
    %406 = vector.shape_cast %405 : vector<1x1x7x32xf32> to vector<7x32xf32>
    %c3_317 = arith.constant 3 : index
    %c2_318 = arith.constant 2 : index
    %c0_319 = arith.constant 0 : index
    %c0_320 = arith.constant 0 : index
    %407 = vector.load %arg1[%c3_317, %c2_318, %c0_319, %c0_320] : memref<4x4x8x32xf32, #tpu.memory_space<vmem>>, vector<1x1x7x32xf32>
    %408 = vector.shape_cast %407 : vector<1x1x7x32xf32> to vector<7x32xf32>
    %c3_321 = arith.constant 3 : index
    %c3_322 = arith.constant 3 : index
    %c0_323 = arith.constant 0 : index
    %c0_324 = arith.constant 0 : index
    %409 = vector.load %arg1[%c3_321, %c3_322, %c0_323, %c0_324] : memref<4x4x8x32xf32, #tpu.memory_space<vmem>>, vector<1x1x7x32xf32>
    %410 = vector.shape_cast %409 : vector<1x1x7x32xf32> to vector<7x32xf32>
    %c3_325 = arith.constant 3 : index
    %c0_326 = arith.constant 0 : index
    %c1_327 = arith.constant 1 : index
    %c0_328 = arith.constant 0 : index
    %411 = vector.load %arg1[%c3_325, %c0_326, %c1_327, %c0_328] : memref<4x4x8x32xf32, #tpu.memory_space<vmem>>, vector<1x1x7x32xf32>
    %412 = vector.shape_cast %411 : vector<1x1x7x32xf32> to vector<7x32xf32>
    %413 = tpu.concatenate %404, %406, %408, %410, %412 in 1 : vector<7x32xf32>, vector<7x32xf32>, vector<7x32xf32>, vector<7x32xf32>, vector<7x32xf32> -> vector<7x160xf32>
    %414 = arith.truncf %413 : vector<7x160xf32> to vector<7x160xbf16>
    %cst_329 = arith.constant dense<0.000000e+00> : vector<7x168xf32>
    %415 = tpu.matmul %414, %0, %cst_329 {dimension_numbers = #tpu.dot_dimension_numbers<[1], [0], [0], [1], [0, 0, 1, 1], [], []>} : vector<7x160xbf16>, vector<160x168xbf16>, vector<7x168xf32> -> vector<7x168xf32>
    %416 = vector.extract_strided_slice %415 {offsets = [0, 0], sizes = [7, 84], strides = [1, 1]} : vector<7x168xf32> to vector<7x84xf32>
    %417 = vector.extract_strided_slice %415 {offsets = [0, 84], sizes = [7, 84], strides = [1, 1]} : vector<7x168xf32> to vector<7x84xf32>
    %418 = arith.maximumf %416, %417 : vector<7x84xf32>
    %c3_330 = arith.constant 3 : index
    %c1_331 = arith.constant 1 : index
    %c0_332 = arith.constant 0 : index
    %c0_333 = arith.constant 0 : index
    %419 = vector.load %arg1[%c3_330, %c1_331, %c0_332, %c0_333] : memref<4x4x8x32xf32, #tpu.memory_space<vmem>>, vector<1x1x7x32xf32>
    %420 = vector.shape_cast %419 : vector<1x1x7x32xf32> to vector<7x32xf32>
    %c3_334 = arith.constant 3 : index
    %c2_335 = arith.constant 2 : index
    %c0_336 = arith.constant 0 : index
    %c0_337 = arith.constant 0 : index
    %421 = vector.load %arg1[%c3_334, %c2_335, %c0_336, %c0_337] : memref<4x4x8x32xf32, #tpu.memory_space<vmem>>, vector<1x1x7x32xf32>
    %422 = vector.shape_cast %421 : vector<1x1x7x32xf32> to vector<7x32xf32>
    %c3_338 = arith.constant 3 : index
    %c3_339 = arith.constant 3 : index
    %c0_340 = arith.constant 0 : index
    %c0_341 = arith.constant 0 : index
    %423 = vector.load %arg1[%c3_338, %c3_339, %c0_340, %c0_341] : memref<4x4x8x32xf32, #tpu.memory_space<vmem>>, vector<1x1x7x32xf32>
    %424 = vector.shape_cast %423 : vector<1x1x7x32xf32> to vector<7x32xf32>
    %c3_342 = arith.constant 3 : index
    %c0_343 = arith.constant 0 : index
    %c1_344 = arith.constant 1 : index
    %c0_345 = arith.constant 0 : index
    %425 = vector.load %arg1[%c3_342, %c0_343, %c1_344, %c0_345] : memref<4x4x8x32xf32, #tpu.memory_space<vmem>>, vector<1x1x7x32xf32>
    %426 = vector.shape_cast %425 : vector<1x1x7x32xf32> to vector<7x32xf32>
    %c3_346 = arith.constant 3 : index
    %c1_347 = arith.constant 1 : index
    %c1_348 = arith.constant 1 : index
    %c0_349 = arith.constant 0 : index
    %427 = vector.load %arg1[%c3_346, %c1_347, %c1_348, %c0_349] : memref<4x4x8x32xf32, #tpu.memory_space<vmem>>, vector<1x1x7x32xf32>
    %428 = vector.shape_cast %427 : vector<1x1x7x32xf32> to vector<7x32xf32>
    %429 = tpu.concatenate %420, %422, %424, %426, %428 in 1 : vector<7x32xf32>, vector<7x32xf32>, vector<7x32xf32>, vector<7x32xf32>, vector<7x32xf32> -> vector<7x160xf32>
    %430 = arith.truncf %429 : vector<7x160xf32> to vector<7x160xbf16>
    %cst_350 = arith.constant dense<0.000000e+00> : vector<7x168xf32>
    %431 = tpu.matmul %430, %0, %cst_350 {dimension_numbers = #tpu.dot_dimension_numbers<[1], [0], [0], [1], [0, 0, 1, 1], [], []>} : vector<7x160xbf16>, vector<160x168xbf16>, vector<7x168xf32> -> vector<7x168xf32>
    %432 = vector.extract_strided_slice %431 {offsets = [0, 0], sizes = [7, 84], strides = [1, 1]} : vector<7x168xf32> to vector<7x84xf32>
    %433 = vector.extract_strided_slice %431 {offsets = [0, 84], sizes = [7, 84], strides = [1, 1]} : vector<7x168xf32> to vector<7x84xf32>
    %434 = arith.maximumf %432, %433 : vector<7x84xf32>
    %c3_351 = arith.constant 3 : index
    %c2_352 = arith.constant 2 : index
    %c0_353 = arith.constant 0 : index
    %c0_354 = arith.constant 0 : index
    %435 = vector.load %arg1[%c3_351, %c2_352, %c0_353, %c0_354] : memref<4x4x8x32xf32, #tpu.memory_space<vmem>>, vector<1x1x7x32xf32>
    %436 = vector.shape_cast %435 : vector<1x1x7x32xf32> to vector<7x32xf32>
    %c3_355 = arith.constant 3 : index
    %c3_356 = arith.constant 3 : index
    %c0_357 = arith.constant 0 : index
    %c0_358 = arith.constant 0 : index
    %437 = vector.load %arg1[%c3_355, %c3_356, %c0_357, %c0_358] : memref<4x4x8x32xf32, #tpu.memory_space<vmem>>, vector<1x1x7x32xf32>
    %438 = vector.shape_cast %437 : vector<1x1x7x32xf32> to vector<7x32xf32>
    %c3_359 = arith.constant 3 : index
    %c0_360 = arith.constant 0 : index
    %c1_361 = arith.constant 1 : index
    %c0_362 = arith.constant 0 : index
    %439 = vector.load %arg1[%c3_359, %c0_360, %c1_361, %c0_362] : memref<4x4x8x32xf32, #tpu.memory_space<vmem>>, vector<1x1x7x32xf32>
    %440 = vector.shape_cast %439 : vector<1x1x7x32xf32> to vector<7x32xf32>
    %c3_363 = arith.constant 3 : index
    %c1_364 = arith.constant 1 : index
    %c1_365 = arith.constant 1 : index
    %c0_366 = arith.constant 0 : index
    %441 = vector.load %arg1[%c3_363, %c1_364, %c1_365, %c0_366] : memref<4x4x8x32xf32, #tpu.memory_space<vmem>>, vector<1x1x7x32xf32>
    %442 = vector.shape_cast %441 : vector<1x1x7x32xf32> to vector<7x32xf32>
    %c3_367 = arith.constant 3 : index
    %c2_368 = arith.constant 2 : index
    %c1_369 = arith.constant 1 : index
    %c0_370 = arith.constant 0 : index
    %443 = vector.load %arg1[%c3_367, %c2_368, %c1_369, %c0_370] : memref<4x4x8x32xf32, #tpu.memory_space<vmem>>, vector<1x1x7x32xf32>
    %444 = vector.shape_cast %443 : vector<1x1x7x32xf32> to vector<7x32xf32>
    %445 = tpu.concatenate %436, %438, %440, %442, %444 in 1 : vector<7x32xf32>, vector<7x32xf32>, vector<7x32xf32>, vector<7x32xf32>, vector<7x32xf32> -> vector<7x160xf32>
    %446 = arith.truncf %445 : vector<7x160xf32> to vector<7x160xbf16>
    %cst_371 = arith.constant dense<0.000000e+00> : vector<7x168xf32>
    %447 = tpu.matmul %446, %0, %cst_371 {dimension_numbers = #tpu.dot_dimension_numbers<[1], [0], [0], [1], [0, 0, 1, 1], [], []>} : vector<7x160xbf16>, vector<160x168xbf16>, vector<7x168xf32> -> vector<7x168xf32>
    %448 = vector.extract_strided_slice %447 {offsets = [0, 0], sizes = [7, 84], strides = [1, 1]} : vector<7x168xf32> to vector<7x84xf32>
    %449 = vector.extract_strided_slice %447 {offsets = [0, 84], sizes = [7, 84], strides = [1, 1]} : vector<7x168xf32> to vector<7x84xf32>
    %450 = arith.maximumf %448, %449 : vector<7x84xf32>
    %c3_372 = arith.constant 3 : index
    %c3_373 = arith.constant 3 : index
    %c0_374 = arith.constant 0 : index
    %c0_375 = arith.constant 0 : index
    %451 = vector.load %arg1[%c3_372, %c3_373, %c0_374, %c0_375] : memref<4x4x8x32xf32, #tpu.memory_space<vmem>>, vector<1x1x7x32xf32>
    %452 = vector.shape_cast %451 : vector<1x1x7x32xf32> to vector<7x32xf32>
    %c3_376 = arith.constant 3 : index
    %c0_377 = arith.constant 0 : index
    %c1_378 = arith.constant 1 : index
    %c0_379 = arith.constant 0 : index
    %453 = vector.load %arg1[%c3_376, %c0_377, %c1_378, %c0_379] : memref<4x4x8x32xf32, #tpu.memory_space<vmem>>, vector<1x1x7x32xf32>
    %454 = vector.shape_cast %453 : vector<1x1x7x32xf32> to vector<7x32xf32>
    %c3_380 = arith.constant 3 : index
    %c1_381 = arith.constant 1 : index
    %c1_382 = arith.constant 1 : index
    %c0_383 = arith.constant 0 : index
    %455 = vector.load %arg1[%c3_380, %c1_381, %c1_382, %c0_383] : memref<4x4x8x32xf32, #tpu.memory_space<vmem>>, vector<1x1x7x32xf32>
    %456 = vector.shape_cast %455 : vector<1x1x7x32xf32> to vector<7x32xf32>
    %c3_384 = arith.constant 3 : index
    %c2_385 = arith.constant 2 : index
    %c1_386 = arith.constant 1 : index
    %c0_387 = arith.constant 0 : index
    %457 = vector.load %arg1[%c3_384, %c2_385, %c1_386, %c0_387] : memref<4x4x8x32xf32, #tpu.memory_space<vmem>>, vector<1x1x7x32xf32>
    %458 = vector.shape_cast %457 : vector<1x1x7x32xf32> to vector<7x32xf32>
    %c3_388 = arith.constant 3 : index
    %c3_389 = arith.constant 3 : index
    %c1_390 = arith.constant 1 : index
    %c0_391 = arith.constant 0 : index
    %459 = vector.load %arg1[%c3_388, %c3_389, %c1_390, %c0_391] : memref<4x4x8x32xf32, #tpu.memory_space<vmem>>, vector<1x1x7x32xf32>
    %460 = vector.shape_cast %459 : vector<1x1x7x32xf32> to vector<7x32xf32>
    %461 = tpu.concatenate %452, %454, %456, %458, %460 in 1 : vector<7x32xf32>, vector<7x32xf32>, vector<7x32xf32>, vector<7x32xf32>, vector<7x32xf32> -> vector<7x160xf32>
    %462 = arith.truncf %461 : vector<7x160xf32> to vector<7x160xbf16>
    %cst_392 = arith.constant dense<0.000000e+00> : vector<7x168xf32>
    %463 = tpu.matmul %462, %0, %cst_392 {dimension_numbers = #tpu.dot_dimension_numbers<[1], [0], [0], [1], [0, 0, 1, 1], [], []>} : vector<7x160xbf16>, vector<160x168xbf16>, vector<7x168xf32> -> vector<7x168xf32>
    %464 = vector.extract_strided_slice %463 {offsets = [0, 0], sizes = [7, 84], strides = [1, 1]} : vector<7x168xf32> to vector<7x84xf32>
    %465 = vector.extract_strided_slice %463 {offsets = [0, 84], sizes = [7, 84], strides = [1, 1]} : vector<7x168xf32> to vector<7x84xf32>
    %466 = arith.maximumf %464, %465 : vector<7x84xf32>
    %467 = arith.maximumf %418, %434 : vector<7x84xf32>
    %468 = vector.broadcast %5 : vector<1x84xf32> to vector<7x84xf32>
    %469 = arith.addf %467, %468 : vector<7x84xf32>
    %cst_393 = arith.constant 0.000000e+00 : f32
    %470 = vector.broadcast %cst_393 : f32 to vector<7x84xf32>
    %471 = arith.maximumf %469, %470 : vector<7x84xf32>
    %472 = arith.maximumf %450, %466 : vector<7x84xf32>
    %473 = vector.broadcast %5 : vector<1x84xf32> to vector<7x84xf32>
    %474 = arith.addf %472, %473 : vector<7x84xf32>
    %cst_394 = arith.constant 0.000000e+00 : f32
    %475 = vector.broadcast %cst_394 : f32 to vector<7x84xf32>
    %476 = arith.maximumf %474, %475 : vector<7x84xf32>
    %477 = vector.extract_strided_slice %471 {offsets = [0, 0], sizes = [5, 84], strides = [1, 1]} : vector<7x84xf32> to vector<5x84xf32>
    %478 = vector.extract_strided_slice %476 {offsets = [0, 0], sizes = [5, 84], strides = [1, 1]} : vector<7x84xf32> to vector<5x84xf32>
    %479 = vector.extract_strided_slice %471 {offsets = [1, 0], sizes = [5, 84], strides = [1, 1]} : vector<7x84xf32> to vector<5x84xf32>
    %480 = vector.extract_strided_slice %476 {offsets = [1, 0], sizes = [5, 84], strides = [1, 1]} : vector<7x84xf32> to vector<5x84xf32>
    %481 = vector.extract_strided_slice %471 {offsets = [2, 0], sizes = [5, 84], strides = [1, 1]} : vector<7x84xf32> to vector<5x84xf32>
    %482 = tpu.concatenate %477, %478, %479, %480, %481 in 1 : vector<5x84xf32>, vector<5x84xf32>, vector<5x84xf32>, vector<5x84xf32>, vector<5x84xf32> -> vector<5x420xf32>
    %483 = arith.truncf %482 : vector<5x420xf32> to vector<5x420xbf16>
    %cst_395 = arith.constant dense<0.000000e+00> : vector<5x160xf32>
    %484 = tpu.matmul %483, %1, %cst_395 {dimension_numbers = #tpu.dot_dimension_numbers<[1], [0], [0], [1], [0, 0, 1, 1], [], []>} : vector<5x420xbf16>, vector<420x160xbf16>, vector<5x160xf32> -> vector<5x160xf32>
    %485 = vector.extract_strided_slice %484 {offsets = [0, 0], sizes = [5, 80], strides = [1, 1]} : vector<5x160xf32> to vector<5x80xf32>
    %486 = vector.extract_strided_slice %484 {offsets = [0, 80], sizes = [5, 80], strides = [1, 1]} : vector<5x160xf32> to vector<5x80xf32>
    %487 = arith.maximumf %485, %486 : vector<5x80xf32>
    %488 = vector.extract_strided_slice %476 {offsets = [0, 0], sizes = [5, 84], strides = [1, 1]} : vector<7x84xf32> to vector<5x84xf32>
    %489 = vector.extract_strided_slice %471 {offsets = [1, 0], sizes = [5, 84], strides = [1, 1]} : vector<7x84xf32> to vector<5x84xf32>
    %490 = vector.extract_strided_slice %476 {offsets = [1, 0], sizes = [5, 84], strides = [1, 1]} : vector<7x84xf32> to vector<5x84xf32>
    %491 = vector.extract_strided_slice %471 {offsets = [2, 0], sizes = [5, 84], strides = [1, 1]} : vector<7x84xf32> to vector<5x84xf32>
    %492 = vector.extract_strided_slice %476 {offsets = [2, 0], sizes = [5, 84], strides = [1, 1]} : vector<7x84xf32> to vector<5x84xf32>
    %493 = tpu.concatenate %488, %489, %490, %491, %492 in 1 : vector<5x84xf32>, vector<5x84xf32>, vector<5x84xf32>, vector<5x84xf32>, vector<5x84xf32> -> vector<5x420xf32>
    %494 = arith.truncf %493 : vector<5x420xf32> to vector<5x420xbf16>
    %cst_396 = arith.constant dense<0.000000e+00> : vector<5x160xf32>
    %495 = tpu.matmul %494, %1, %cst_396 {dimension_numbers = #tpu.dot_dimension_numbers<[1], [0], [0], [1], [0, 0, 1, 1], [], []>} : vector<5x420xbf16>, vector<420x160xbf16>, vector<5x160xf32> -> vector<5x160xf32>
    %496 = vector.extract_strided_slice %495 {offsets = [0, 0], sizes = [5, 80], strides = [1, 1]} : vector<5x160xf32> to vector<5x80xf32>
    %497 = vector.extract_strided_slice %495 {offsets = [0, 80], sizes = [5, 80], strides = [1, 1]} : vector<5x160xf32> to vector<5x80xf32>
    %498 = arith.maximumf %496, %497 : vector<5x80xf32>
    %499 = arith.maximumf %487, %498 : vector<5x80xf32>
    %500 = vector.broadcast %6 : vector<1x80xf32> to vector<5x80xf32>
    %501 = arith.addf %499, %500 : vector<5x80xf32>
    %cst_397 = arith.constant 0.000000e+00 : f32
    %502 = vector.broadcast %cst_397 : f32 to vector<5x80xf32>
    %503 = arith.maximumf %501, %502 : vector<5x80xf32>
    %504 = vector.extract_strided_slice %503 {offsets = [0, 0], sizes = [1, 80], strides = [1, 1]} : vector<5x80xf32> to vector<1x80xf32>
    %505 = vector.extract_strided_slice %503 {offsets = [1, 0], sizes = [1, 80], strides = [1, 1]} : vector<5x80xf32> to vector<1x80xf32>
    %506 = vector.extract_strided_slice %503 {offsets = [2, 0], sizes = [1, 80], strides = [1, 1]} : vector<5x80xf32> to vector<1x80xf32>
    %507 = vector.extract_strided_slice %503 {offsets = [3, 0], sizes = [1, 80], strides = [1, 1]} : vector<5x80xf32> to vector<1x80xf32>
    %508 = vector.extract_strided_slice %503 {offsets = [4, 0], sizes = [1, 80], strides = [1, 1]} : vector<5x80xf32> to vector<1x80xf32>
    %509 = tpu.concatenate %504, %505, %506, %507, %508 in 1 : vector<1x80xf32>, vector<1x80xf32>, vector<1x80xf32>, vector<1x80xf32>, vector<1x80xf32> -> vector<1x400xf32>
    %510 = arith.truncf %509 : vector<1x400xf32> to vector<1x400xbf16>
    %cst_398 = arith.constant dense<0.000000e+00> : vector<1x120xf32>
    %511 = tpu.matmul %510, %2, %cst_398 {dimension_numbers = #tpu.dot_dimension_numbers<[1], [0], [0], [1], [0, 0, 1, 1], [], []>} : vector<1x400xbf16>, vector<400x120xbf16>, vector<1x120xf32> -> vector<1x120xf32>
    %512 = arith.addf %511, %7 : vector<1x120xf32>
    %513 = arith.truncf %512 : vector<1x120xf32> to vector<1x120xbf16>
    %cst_399 = arith.constant dense<0.000000e+00> : vector<1x84xf32>
    %514 = tpu.matmul %513, %3, %cst_399 {dimension_numbers = #tpu.dot_dimension_numbers<[1], [0], [0], [1], [0, 0, 1, 1], [], []>} : vector<1x120xbf16>, vector<120x84xbf16>, vector<1x84xf32> -> vector<1x84xf32>
    %515 = arith.addf %514, %8 : vector<1x84xf32>
    %cst_400 = arith.constant 0.000000e+00 : f32
    %516 = vector.broadcast %cst_400 : f32 to vector<1x84xf32>
    %517 = arith.maximumf %515, %516 : vector<1x84xf32>
    %518 = arith.truncf %517 : vector<1x84xf32> to vector<1x84xbf16>
    %cst_401 = arith.constant dense<0.000000e+00> : vector<1x10xf32>
    %519 = tpu.matmul %518, %4, %cst_401 {dimension_numbers = #tpu.dot_dimension_numbers<[1], [0], [0], [1], [0, 0, 1, 1], [], []>} : vector<1x84xbf16>, vector<84x10xbf16>, vector<1x10xf32> -> vector<1x10xf32>
    %520 = arith.addf %519, %9 : vector<1x10xf32>
    %cst_402 = arith.constant dense<0xFF800000> : vector<1xf32>
    %521 = vector.multi_reduction <maximumf>, %520, %cst_402 [1] : vector<1x10xf32> to vector<1xf32>
    %522 = vector.shape_cast %521 : vector<1xf32> to vector<1x1xf32>
    %523 = vector.broadcast %522 : vector<1x1xf32> to vector<1x10xf32>
    %524 = arith.subf %520, %523 : vector<1x10xf32>
    %525 = math.exp %524 : vector<1x10xf32>
    %cst_403 = arith.constant dense<0.000000e+00> : vector<1xf32>
    %526 = vector.multi_reduction <add>, %525, %cst_403 [1] : vector<1x10xf32> to vector<1xf32>
    %527 = vector.shape_cast %526 : vector<1xf32> to vector<1x1xf32>
    %528 = tpu.reciprocal %527 : vector<1x1xf32> -> vector<1x1xf32>
    %529 = vector.broadcast %528 : vector<1x1xf32> to vector<1x10xf32>
    %530 = arith.mulf %525, %529 : vector<1x10xf32>
    %c3_404 = arith.constant 3 : index
    %c0_405 = arith.constant 0 : index
    %c0_406 = arith.constant 0 : index
    %531 = vector.load %arg12[%c3_404, %c0_405, %c0_406] : memref<4x1x10xf32, #tpu.memory_space<vmem>>, vector<1x1x10xf32>
    %532 = vector.shape_cast %531 : vector<1x1x10xf32> to vector<1x10xf32>
    %533 = vector.shape_cast %530 : vector<1x10xf32> to vector<1x1x10xf32>
    tpu.vector_store %arg12[%c3_404, %c0_405, %c0_406], %533 {strides = array<i32>} : memref<4x1x10xf32, #tpu.memory_space<vmem>>, vector<1x1x10xf32>,
    return
  }
  func.func @transform_0(%arg0: i32) -> (i32, i32, i32, i32) {
    %c0_i32 = arith.constant 0 : i32
    %c0_i32_0 = arith.constant 0 : i32
    %c0_i32_1 = arith.constant 0 : i32
    %c0_i32_2 = arith.constant 0 : i32
    return %arg0, %c0_i32, %c0_i32_0, %c0_i32_1 : i32, i32, i32, i32
  }
  func.func @transform_1(%arg0: i32) -> (i32, i32) {
    %c0_i32 = arith.constant 0 : i32
    %c0_i32_0 = arith.constant 0 : i32
    %c0_i32_1 = arith.constant 0 : i32
    return %c0_i32, %c0_i32_0 : i32, i32
  }
  func.func @transform_2(%arg0: i32) -> (i32, i32) {
    %c0_i32 = arith.constant 0 : i32
    %c0_i32_0 = arith.constant 0 : i32
    %c0_i32_1 = arith.constant 0 : i32
    return %c0_i32, %c0_i32_0 : i32, i32
  }
  func.func @transform_3(%arg0: i32) -> (i32, i32) {
    %c0_i32 = arith.constant 0 : i32
    %c0_i32_0 = arith.constant 0 : i32
    %c0_i32_1 = arith.constant 0 : i32
    return %c0_i32, %c0_i32_0 : i32, i32
  }
  func.func @transform_4(%arg0: i32) -> (i32, i32) {
    %c0_i32 = arith.constant 0 : i32
    %c0_i32_0 = arith.constant 0 : i32
    %c0_i32_1 = arith.constant 0 : i32
    return %c0_i32, %c0_i32_0 : i32, i32
  }
  func.func @transform_5(%arg0: i32) -> (i32, i32) {
    %c0_i32 = arith.constant 0 : i32
    %c0_i32_0 = arith.constant 0 : i32
    %c0_i32_1 = arith.constant 0 : i32
    return %c0_i32, %c0_i32_0 : i32, i32
  }
  func.func @transform_6(%arg0: i32) -> (i32, i32) {
    %c0_i32 = arith.constant 0 : i32
    %c0_i32_0 = arith.constant 0 : i32
    %c0_i32_1 = arith.constant 0 : i32
    return %c0_i32, %c0_i32_0 : i32, i32
  }
  func.func @transform_7(%arg0: i32) -> (i32, i32) {
    %c0_i32 = arith.constant 0 : i32
    %c0_i32_0 = arith.constant 0 : i32
    %c0_i32_1 = arith.constant 0 : i32
    return %c0_i32, %c0_i32_0 : i32, i32
  }
  func.func @transform_8(%arg0: i32) -> (i32, i32) {
    %c0_i32 = arith.constant 0 : i32
    %c0_i32_0 = arith.constant 0 : i32
    %c0_i32_1 = arith.constant 0 : i32
    return %c0_i32, %c0_i32_0 : i32, i32
  }
  func.func @transform_9(%arg0: i32) -> (i32, i32) {
    %c0_i32 = arith.constant 0 : i32
    %c0_i32_0 = arith.constant 0 : i32
    %c0_i32_1 = arith.constant 0 : i32
    return %c0_i32, %c0_i32_0 : i32, i32
  }
  func.func @transform_10(%arg0: i32) -> (i32, i32) {
    %c0_i32 = arith.constant 0 : i32
    %c0_i32_0 = arith.constant 0 : i32
    %c0_i32_1 = arith.constant 0 : i32
    return %c0_i32, %c0_i32_0 : i32, i32
  }
  func.func @transform_11(%arg0: i32) -> (i32, i32, i32) {
    %c0_i32 = arith.constant 0 : i32
    %c0_i32_0 = arith.constant 0 : i32
    %c0_i32_1 = arith.constant 0 : i32
    return %arg0, %c0_i32, %c0_i32_0 : i32, i32, i32
  }
}

</mosaic_0001>

<bundles_post_ra>
// kernel: _lambda_.1
= control target key start
LH: loop header
LB: loop body
LE: loop exit
PB: predicated region body
PF: predicated region fallthrough
CT: control target
= control target key end

     0   :  { %s8643_s0 = inlined_call_operand.vmem [shape: f32[8,4,8,32], index: 0, kind: input, shape index: {}]   ;;  %s8644_s1 = inlined_call_operand.vmem [shape: bf16[160,168], index: 1, kind: input, shape index: {}]   ;;  %s8645_s2 = inlined_call_operand.vmem [shape: f32[1,84], index: 2, kind: input, shape index: {}]   ;;  %s8646_s3 = inlined_call_operand.vmem [shape: bf16[420,160], index: 3, kind: input, shape index: {}]   ;;  %s8647_s4 = inlined_call_operand.vmem [shape: f32[1,80], index: 4, kind: input, shape index: {}]   ;;  %s8648_s5 = inlined_call_operand.vmem [shape: bf16[400,120], index: 5, kind: input, shape index: {}]   ;;  %s8649_s6 = inlined_call_operand.vmem [shape: f32[1,120], index: 6, kind: input, shape index: {}]   ;;  %s8650_s7 = inlined_call_operand.vmem [shape: bf16[120,84], index: 7, kind: input, shape index: {}]   ;;  %s8651_s8 = inlined_call_operand.vmem [shape: f32[1,84], index: 8, kind: input, shape index: {}]   ;;  %s8652_s9 = inlined_call_operand.vmem [shape: bf16[84,10], index: 9, kind: input, shape index: {}]   ;;  %s8653_s10 = inlined_call_operand.vmem [shape: f32[1,10], index: 10, kind: input, shape index: {}]   ;;  %s8654_s11 = inlined_call_operand.hbm [shape: f32[8,1,10], index: 11, kind: output, shape index: {}]  }
   0x1   :  { %8836 = sst [smem:[#allocation81_spill]] %s8643_s0 }
   0x2   :  { %8837 = sst [smem:[#allocation82_spill]] %s8649_s6 }
   0x3   :  { %8838 = sst [smem:[#allocation83_spill]] %s8651_s8 }
   0x4   :  { %8839 = sst [smem:[#allocation84_spill]] %s8654_s11 }
   0x5   :  { %16 = vsyncpa [#allocation3], 0 }
   0x6   :  { %18 = vsyncpa [#allocation3 + $0x1], 0  ;;  %s5530_s17 = smov 0   ;;  %s5532_s18 = smov 0  }
   0x7   :  { %s5534_s19 = smov 0   ;;  %s5536_s20 = smov 0  }
   0x8 LB: > { %8840 = sst [smem:[#allocation5_spill]] %s5440_s17  ;;  %s5551_s21 = sadd.s32 4294967295, %s5452_s20   ;;  %s5452_s20 = sphi %s5536_s20, %s9089_s20   ;;  %s5448_s19 = sphi %s5534_s19, %s9091_s19   ;;  %s5444_s18 = sphi %s5532_s18, %s9093_s18   ;;  %s5440_s17 = sphi %s5530_s17, %s9092_s17  }
   0x9   : > { %8841 = sst [smem:[#allocation6_spill]] %s5448_s19  ;;  %s4209_s22 = sadd.s32 4294967294, %s5452_s20  }
   0xa   : > { %8842 = sst [smem:[#allocation7_spill]] %s5452_s20  ;;  %s5555_s23 = sadd.s32 1, %s5452_s20  }
   0xb   : > { %8843 = sst [smem:[#allocation8_spill]] %s5555_s23  ;;  %s267_s24 = sadd.s32 1, %s5448_s19 }
   0xc   : > { %s264_s25 = ssub.s32 %s5452_s20, %s5555_s23  ;;  %p277_p0 = scmp.ne.s32.totalorder %s5448_s19, %s5444_s18 }
   0xd   : > { %p265_p1 = scmp.eq.s32.totalorder %s264_s25, 0  ;;  %p278_p2 = scmp.eq.s32.totalorder %s5551_s21, 1 }
   0xe   : > { %p283_p3 = scmp.ne.s32.totalorder %s5444_s18, %s5440_s17  ;;  %p284_p4 = scmp.eq.s32.totalorder %s4209_s22, 1 }
   0xf   : > { %s5566_s26 = scalar_select %p265_p1, %s5448_s19, %s267_s24  }
  0x10   : > { %p5568_p5 = por %p278_p2, %p277_p0  ;;  %p5572_p6 = por %p284_p4, %p283_p3 }
  0x11   : > { %8844 = sst [smem:[#allocation9_spill]] %s5566_s26  ;;  %p4212_p7 = scmp.ge.s32.totalorder %s5452_s20, 1 }
  0x12   : > { %s8846_s28 = scalar_select %p5572_p6, 1, 0 }
  0x13   : > { %p342_p8 = scmp.lt.s32.totalorder %s5452_s20, 3 }
  0x14   : > { %8847 = sst [smem:[#allocation10_spill]] %s8846_s28 }
  0x15   : > { %p343_p9 = pnand %p4212_p7, %p342_p8 }
  0x17   : > { %346 = sbr.rel (%p343_p9) target bundleno = 6656 (0x1a00), region = 64 }
  0x1e   : > { %s4214_s29 = sshll.u32 %s5551_s21, 2  ;;  %v5582_v0 = vld [vmem:[%s8644_s1 + $0x4] ss:$8 sps:$4 sm:$0xff]   ;;  %v5587_v1 = vld [vmem:[%s8644_s1] ss:$8 sps:$4 sm:$0xff]   ;;  %s8848_s0 = sld [smem:[#allocation81_spill]] }
  0x1f   : > { %p384_p10 = scmp.lt.s32.totalorder %s4214_s29, 7  ;;  %677 = vmatprep.subr.bf16.mxu0 %v5582_v0  ;;  %747 = vmatprep.subr.bf16.mxu1 %v5582_v0  ;;  %v5594_v2 = vld [vmem:[%s8644_s1 + $0x14] ss:$8 sps:$4 sm:$0xff]   ;;  %v5601_v3 = vld [vmem:[%s8644_s1 + $0x10] ss:$8 sps:$4 sm:$0xff]   ;;  %s8688_s22 = smov 32  }
  0x20   : > { %678 = vmatpush1.bf16.msra.mxu0 %v5587_v1  ;;  %748 = vmatpush1.bf16.msra.mxu1 %v5587_v1  ;;  %v5608_v4 = vld [vmem:[%s8644_s1 + $0x24] ss:$8 sps:$4 sm:$0xff]   ;;  %v5618_v5 = vld [vmem:[%s8644_s1 + $0x20] ss:$8 sps:$4 sm:$0xff]   ;;  %v5639_v11 = vld [vmem:[%s8644_s1 + $0x34] ss:$8 sps:$4 sm:$0xff]  }
  0x21   : > { %s9095_s29 = smov (!%p384_p10, %s4214_s29), 7  ;;  %679 = vmatprep.subr.bf16.mxu0 %v5594_v2  ;;  %749 = vmatprep.subr.bf16.mxu1 %v5594_v2  ;;  %s8663_s24 = smov 96   ;;  %v5651_v17 = vld [vmem:[%s8644_s1 + $0x30] ss:$8 sps:$4 sm:$0xff]   ;;  %v5661_v19 = vld [vmem:[%s8644_s1 + $0x44] ss:$8 sps:$4 sm:$0xff]  }
  0x22   : > { %s4414_s12 = sshll.u32 %s9095_s29, 5  ;;  %vm566_vm0 = vcmask 261120   ;;  %s8665_s14 = smov 64   ;;  %v5673_v22 = vld [vmem:[%s8644_s1 + $0x40] ss:$8 sps:$4 sm:$0xff]   ;;  %vm568_vm1 = vcmask 523264  }
  0x23   : > { %v5678_v23 = vld [vmem:[%s8644_s1 + $0x54] ss:$8 sps:$4 sm:$0xff]   ;;  %v5686_v24 = vld [vmem:[%s8644_s1 + $0x50] ss:$8 sps:$4 sm:$0xff]   ;;  %v5692_v25 = vld [vmem:[%s8644_s1 + $0x64] ss:$8 sps:$4 sm:$0xff]  }
  0x24   : > { %s5613_s15 = scalar_lea.vmem %s8848_s0, %s4414_s12  ;;  %680 = vmatpush1.bf16.msra.mxu0 %v5601_v3  ;;  %750 = vmatpush1.bf16.msra.mxu1 %v5601_v3  ;;  %v5702_v26 = vld [vmem:[%s8644_s1 + $0x60] ss:$8 sps:$4 sm:$0xff]   ;;  %v5707_v27 = vld [vmem:[%s8644_s1 + $0x74] ss:$8 sps:$4 sm:$0xff]   ;;  %v5716_v28 = vld [vmem:[%s8644_s1 + $0x70] ss:$8 sps:$4 sm:$0xff]  }
  0x25   : > { %v5621_v6 = vld [vmem:[%s5613_s15 + $0x8] sm:$0x7f]  ;;  %v5624_v7 = vld [vmem:[%s5613_s15 + $0x10] sm:$0x7f]  ;;  %v5627_v8 = vld [vmem:[%s5613_s15 + $0x18] sm:$0x7f]  ;;  %681 = vmatprep.subr.bf16.mxu0 %v5608_v4  ;;  %751 = vmatprep.subr.bf16.mxu1 %v5608_v4 }
  0x26   : > { %v4798_v9 = vpack.i.bf16 %v5624_v7, %v5621_v6  ;;  %v553_v10 = vld [vmem:[%s5613_s15 + $0x1] sm:$0x7f]  ;;  %v4241_v13 = vld [vmem:[%s5613_s15 + $0x9] sm:$0x7f]  ;;  %v4803_v14 = vpack.i.bf16 %v5627_v8, %v5624_v7  ;;  %v5654_v18 = vld [vmem:[%s5613_s15 + $0x11] sm:$0x7f] }
  0x27   : > { %v4808_v12 = vpack.i.bf16 %v553_v10, %v5627_v8  ;;  %v573_v15 = vpack.c.bf16 %v553_v10, %v553_v10  ;;  %v743_v16 = vpack.c.bf16 %v4241_v13, %v4241_v13  ;;  %v4818_v20 = vpack.i.bf16 %v4241_v13, %v553_v10  ;;  %v5721_v29 = vld [vmem:[%s8644_s1 + $0x84] ss:$8 sps:$4 sm:$0xff]   ;;  %v5730_v30 = vld [vmem:[%s8644_s1 + $0x80] ss:$8 sps:$4 sm:$0xff]   ;;  %v5735_v31 = vld [vmem:[%s8644_s1 + $0x94] ss:$8 sps:$4 sm:$0xff]  }
  0x28   : > { %4799 = vrot.lane.b32.xlu0 %v4798_v9, %s8688_s22  ;;  %682 = vmatpush1.bf16.msra.mxu0 %v5618_v5  ;;  %v4823_v21 = vpack.i.bf16 %v5654_v18, %v4241_v13  ;;  %v5744_v32 = vld [vmem:[%s8644_s1 + $0x90] ss:$8 sps:$4 sm:$0xff]   ;;  %v546_v37 = vld [vmem:[%s5613_s15] sm:$0x7f]  ;;  %vm570_vm2 = vcmask 785408   ;;  %v812_v52 = vpack.c.bf16 %v5654_v18, %v5654_v18  ;;  %s8661_s26 = smov 44  }
  0x29   : > { %4809 = vrot.lane.b32.xlu1 %v4808_v12, %s8663_s24  ;;  %752 = vmatpush1.bf16.msra.mxu1 %v5618_v5  ;;  %v4245_v47 = vld [vmem:[%s5613_s15 + $0x19] sm:$0x7f]  ;;  %vm724_vm3 = vcmask 359424   ;;  %s8659_s30 = smov 84   ;;  %s8657_s12 = smov 40   ;;  %vm966_vm4 = vcmask 326656  }
  0x2a   : > { %683 = vmatprep.subr.bf16.mxu0 %v5639_v11  ;;  %753 = vmatprep.subr.bf16.mxu1 %v5639_v11  ;;  %v881_v53 = vpack.c.bf16 %v4245_v47, %v4245_v47  ;;  %v6002_v47 = vld [vmem:[%s8646_s3 + $0xc4] ss:$8 sps:$4 sm:$0xff]   ;;  %s8655_s13 = smov 124   ;;  %s8667_s16 = smov 80   ;;  %vm964_vm5 = vcmask 687104   ;;  %vm968_vm6 = vcmask 1014784  }
  0x2b   : > { %4240 = vmatprep.mubr.msk.bf16.mxu0 %vm566_vm0, %v573_v15  ;;  %4242 = vmatprep.mubr.msk.bf16.mxu1 %vm566_vm0, %v743_v16  ;;  %vm1241_vm7 = vcmask 293888   ;;  %vm1245_vm8 = vcmask 1041408   ;;  %vm970_vm9 = vcmask 654336   ;;  %vm1340_vm10 = vcmask 392192   ;;  %s8868_s29 = smov 96   ;;  %s8875_s6 = sld [smem:[#allocation82_spill]] }
  0x2c   : > { %4804 = vrot.lane.b32.xlu0 %v4803_v14, %s8665_s14  ;;  %684 = vmatpush1.bf16.msra.mxu0 %v5651_v17  ;;  %vm1487_vm11 = vcmask 916480   ;;  %vm1644_vm12 = vcmask 130048   ;;  %vm1778_vm13 = vcmask 1043456   ;;  %vm5466_vm14 = vmmov 0   ;;  %s8882_s8 = sld [smem:[#allocation83_spill]]  ;;  %s8904_s25 = smov 84  }
  0x2d   : > { %4814 = vrot.lane.b32.xlu1 %v4808_v12, %s8688_s22  ;;  %754 = vmatpush1.bf16.msra.mxu1 %v5651_v17  ;;  %vm1774_vm15 = vcmask 982016   ;;  %s8957_s0 = smov 48   ;;  %s8959_s23 = smov 32  }
  0x2e   : > { %685 = vmatprep.subr.bf16.mxu0 %v5661_v19  ;;  %755 = vmatprep.subr.bf16.mxu1 %v5661_v19  ;;  %s4415_s20 = sshll.u32 %s5551_s21, 6  ;;  %s9085_s11 = sld [smem:[#allocation84_spill]] }
  0x2f   : > { %s5467_s21 = smov [#allocation2]  }
  0x30   : > { %4819 = vrot.lane.b32.xlu0 %v4818_v20, %s8665_s14  ;;  %686 = vmatpush1.bf16.msra.mxu0 %v5673_v22  ;;  %s8906_s14 = smov 124  }
  0x31   : > { %4824 = vrot.lane.b32.xlu1 %v4823_v21, %s8663_s24  ;;  %756 = vmatpush1.bf16.msra.mxu1 %v5673_v22  ;;  %s8887_s24 = smov 44  }
  0x32   : > { %687 = vmatprep.subr.bf16.mxu0 %v5678_v23  ;;  %757 = vmatprep.subr.bf16.mxu1 %v5678_v23 }
  0x34   : > { %688 = vmatpush1.bf16.msra.mxu0 %v5686_v24 }
  0x35   : > { %758 = vmatpush1.bf16.msra.mxu1 %v5686_v24  ;;  %689 = vmatprep.subr.bf16.mxu0 %v5692_v25 }
  0x36   : > { %759 = vmatprep.subr.bf16.mxu1 %v5692_v25 }
  0x38   : > { %690 = vmatpush1.bf16.msra.mxu0 %v5702_v26 }
  0x39   : > { %760 = vmatpush1.bf16.msra.mxu1 %v5702_v26  ;;  %691 = vmatprep.subr.bf16.mxu0 %v5707_v27 }
  0x3a   : > { %761 = vmatprep.subr.bf16.mxu1 %v5707_v27 }
  0x3c   : > { %692 = vmatpush1.bf16.msra.mxu0 %v5716_v28 }
  0x3d   : > { %762 = vmatpush1.bf16.msra.mxu1 %v5716_v28  ;;  %693 = vmatprep.subr.bf16.mxu0 %v5721_v29 }
  0x3e   : > { %763 = vmatprep.subr.bf16.mxu1 %v5721_v29 }
  0x40   : > { %694 = vmatpush1.bf16.msra.mxu0 %v5730_v30 }
  0x41   : > { %764 = vmatpush1.bf16.msra.mxu1 %v5730_v30  ;;  %695 = vmatprep.subr.bf16.mxu0 %v5735_v31 }
  0x42   : > { %765 = vmatprep.subr.bf16.mxu1 %v5735_v31 }
  0x44   : > { %696 = vmatpush1.bf16.msra.mxu0 %v5744_v32 }
  0x45   : > { %766 = vmatpush1.bf16.msra.mxu1 %v5744_v32  ;;  %816 = vmatprep.subr.bf16.mxu0 %v5582_v0 }
  0x46   : > { %885 = vmatprep.subr.bf16.mxu1 %v5582_v0 }
  0x9a   : > { %v4800_v33 = vpop.permute.xlu0 %4799 }
  0x9b   : > { %v4810_v34 = vpop.permute.xlu1 %4809  ;;  %v4802_v35 = vunpack.i.h.bf16 %v4800_v33  ;;  %v4801_v36 = vunpack.i.l.bf16 %v4800_v33  ;;  %v5904_v33 = vld [vmem:[%s8646_s3 + $0x54] ss:$8 sps:$4 sm:$0xff]  }
  0x9c   : > { %v4812_v39 = vunpack.i.h.bf16 %v4810_v34  ;;  %v4811_v40 = vunpack.i.l.bf16 %v4810_v34  ;;  %v5911_v34 = vld [vmem:[%s8646_s3 + $0x50] ss:$8 sps:$4 sm:$0xff]  }
  0x9d   : > { %v739_v43 = vsel %vm566_vm0, %v5621_v6, %v4802_v35  ;;  %v567_v44 = vsel %vm566_vm0, %v546_v37, %v4801_v36  ;;  %v5918_v35 = vld [vmem:[%s8646_s3 + $0x64] ss:$8 sps:$4 sm:$0xff]   ;;  %v5925_v36 = vld [vmem:[%s8646_s3 + $0x60] ss:$8 sps:$4 sm:$0xff]   ;;  %v5932_v37 = vld [vmem:[%s8646_s3 + $0x74] ss:$8 sps:$4 sm:$0xff]  }
  0x9e   : > { %v4805_v38 = vpop.permute.xlu0 %4804 }
  0x9f   : > { %v4807_v41 = vunpack.i.h.bf16 %v4805_v38  ;;  %v4806_v42 = vunpack.i.l.bf16 %v4805_v38  ;;  %v4815_v54 = vpop.permute.xlu1 %4814  ;;  %v5939_v38 = vld [vmem:[%s8646_s3 + $0x70] ss:$8 sps:$4 sm:$0xff]  }
  0xa0   : > { %v4817_v55 = vunpack.i.h.bf16 %v4815_v54  ;;  %v4816_v56 = vunpack.i.l.bf16 %v4815_v54 }
  0xa1   : > { %v569_v45 = vsel %vm568_vm1, %v567_v44, %v4806_v42  ;;  %v740_v46 = vsel %vm568_vm1, %v739_v43, %v4807_v41  ;;  %v5960_v41 = vld [vmem:[%s8646_s3 + $0x94] ss:$8 sps:$4 sm:$0xff]   ;;  %v5967_v42 = vld [vmem:[%s8646_s3 + $0x90] ss:$8 sps:$4 sm:$0xff]   ;;  %v5974_v43 = vld [vmem:[%s8646_s3 + $0xa4] ss:$8 sps:$4 sm:$0xff]  }
  0xa2   : > { %v571_v48 = vsel %vm570_vm2, %v569_v45, %v4811_v40  ;;  %v741_v49 = vsel %vm570_vm2, %v740_v46, %v4812_v39  ;;  %v4820_v57 = vpop.permute.xlu0 %4819  ;;  %v877_v61 = vsel %vm566_vm0, %v5627_v8, %v4817_v55  ;;  %v808_v62 = vsel %vm566_vm0, %v5624_v7, %v4816_v56  ;;  %v5946_v39 = vld [vmem:[%s8646_s3 + $0x84] ss:$8 sps:$4 sm:$0xff]   ;;  %v5953_v40 = vld [vmem:[%s8646_s3 + $0x80] ss:$8 sps:$4 sm:$0xff]   ;;  %v5988_v45 = vld [vmem:[%s8646_s3 + $0xb4] ss:$8 sps:$4 sm:$0xff]  }
  0xa3   : > { %v572_v50 = vpack.c.bf16 %v571_v48, %v571_v48  ;;  %v742_v51 = vpack.c.bf16 %v741_v49, %v741_v49  ;;  %v4822_v58 = vunpack.i.h.bf16 %v4820_v57  ;;  %v4821_v59 = vunpack.i.l.bf16 %v4820_v57  ;;  %v4825_v60 = vpop.permute.xlu1 %4824  ;;  %v5981_v44 = vld [vmem:[%s8646_s3 + $0xa0] ss:$8 sps:$4 sm:$0xff]   ;;  %v5995_v46 = vld [vmem:[%s8646_s3 + $0xb0] ss:$8 sps:$4 sm:$0xff]   ;;  %v6016_v49 = vld [vmem:[%s8646_s3 + $0xd4] ss:$8 sps:$4 sm:$0xff]  }
  0xa4   : > { %v4827_v63 = vunpack.i.h.bf16 %v4825_v60  ;;  %v4826_v0 = vunpack.i.l.bf16 %v4825_v60  ;;  %v6009_v48 = vld [vmem:[%s8646_s3 + $0xc0] ss:$8 sps:$4 sm:$0xff]  }
  0xa5   : > { %710 = vmatmul.mubr.bf16.vlgmr.msra.gmra.mrb[0].mxu0 %v572_v50  ;;  %780 = vmatmul.mubr.bf16.vlgmr.msra.gmra.mrb[0].mxu1 %v742_v51  ;;  %v6023_v50 = vld [vmem:[%s8646_s3 + $0xd0] ss:$8 sps:$4 sm:$0xff]  }
  0xa6   : > { %817 = vmatpush1.bf16.msra.mxu0 %v5587_v1  ;;  %886 = vmatpush1.bf16.msra.mxu1 %v5587_v1  ;;  %v878_v1 = vsel %vm568_vm1, %v877_v61, %v4822_v58 }
  0xa7   : > { %818 = vmatprep.subr.bf16.mxu0 %v5594_v2  ;;  %887 = vmatprep.subr.bf16.mxu1 %v5594_v2  ;;  %v809_v2 = vsel %vm568_vm1, %v808_v62, %v4821_v59  ;;  %v4247_v62 = vld [vmem:[%s8645_s2] ss:$0 sm:$0xff] }
  0xa8   : > { %4244 = vmatprep.mubr.msk.bf16.mxu0 %vm566_vm0, %v812_v52  ;;  %4246 = vmatprep.mubr.msk.bf16.mxu1 %vm566_vm0, %v881_v53 }
  0xaa   : > { %819 = vmatpush1.bf16.msra.mxu0 %v5601_v3  ;;  %888 = vmatpush1.bf16.msra.mxu1 %v5601_v3  ;;  %v810_v3 = vsel %vm570_vm2, %v809_v2, %v4826_v0  ;;  %v6045_v2 = vld [vmem:[%s8646_s3 + $0xe0] ss:$8 sps:$4 sm:$0xff]  }
  0xab   : > { %820 = vmatprep.subr.bf16.mxu0 %v5608_v4  ;;  %889 = vmatprep.subr.bf16.mxu1 %v5608_v4  ;;  %v879_v4 = vsel %vm570_vm2, %v878_v1, %v4827_v63  ;;  %v6039_v63 = vld [vmem:[%s8646_s3 + $0xe4] ss:$8 sps:$4 sm:$0xff]  }
  0xac   : > { %v880_v6 = vpack.c.bf16 %v879_v4, %v879_v4 }
  0xae   : > { %821 = vmatpush1.bf16.msra.mxu0 %v5618_v5  ;;  %890 = vmatpush1.bf16.msra.mxu1 %v5618_v5  ;;  %v811_v5 = vpack.c.bf16 %v810_v3, %v810_v3 }
  0xaf   : > { %822 = vmatprep.subr.bf16.mxu0 %v5639_v11  ;;  %891 = vmatprep.subr.bf16.mxu1 %v5639_v11 }
  0xb2   : > { %823 = vmatpush1.bf16.msra.mxu0 %v5651_v17  ;;  %892 = vmatpush1.bf16.msra.mxu1 %v5651_v17 }
  0xb3   : > { %824 = vmatprep.subr.bf16.mxu0 %v5661_v19  ;;  %893 = vmatprep.subr.bf16.mxu1 %v5661_v19 }
  0xb6   : > { %825 = vmatpush1.bf16.msra.mxu0 %v5673_v22  ;;  %894 = vmatpush1.bf16.msra.mxu1 %v5673_v22 }
  0xb7   : > { %826 = vmatprep.subr.bf16.mxu0 %v5678_v23  ;;  %895 = vmatprep.subr.bf16.mxu1 %v5678_v23  ;;  %v5836_v23 = vld [vmem:[%s8646_s3 + $0x4] ss:$8 sps:$4 sm:$0xff]  }
  0xba   : > { %827 = vmatpush1.bf16.msra.mxu0 %v5686_v24  ;;  %896 = vmatpush1.bf16.msra.mxu1 %v5686_v24  ;;  %v5841_v24 = vld [vmem:[%s8646_s3] ss:$8 sps:$4 sm:$0xff]  }
  0xbb   : > { %828 = vmatprep.subr.bf16.mxu0 %v5692_v25  ;;  %897 = vmatprep.subr.bf16.mxu1 %v5692_v25  ;;  %v5846_v25 = vld [vmem:[%s8646_s3 + $0x14] ss:$8 sps:$4 sm:$0xff]  }
  0xbe   : > { %829 = vmatpush1.bf16.msra.mxu0 %v5702_v26  ;;  %898 = vmatpush1.bf16.msra.mxu1 %v5702_v26  ;;  %v5855_v26 = vld [vmem:[%s8646_s3 + $0x10] ss:$8 sps:$4 sm:$0xff]  }
  0xbf   : > { %830 = vmatprep.subr.bf16.mxu0 %v5707_v27  ;;  %899 = vmatprep.subr.bf16.mxu1 %v5707_v27  ;;  %v5862_v27 = vld [vmem:[%s8646_s3 + $0x24] ss:$8 sps:$4 sm:$0xff]  }
  0xc2   : > { %831 = vmatpush1.bf16.msra.mxu0 %v5716_v28  ;;  %900 = vmatpush1.bf16.msra.mxu1 %v5716_v28  ;;  %v5869_v28 = vld [vmem:[%s8646_s3 + $0x20] ss:$8 sps:$4 sm:$0xff]  }
  0xc3   : > { %832 = vmatprep.subr.bf16.mxu0 %v5721_v29  ;;  %901 = vmatprep.subr.bf16.mxu1 %v5721_v29  ;;  %v5876_v29 = vld [vmem:[%s8646_s3 + $0x34] ss:$8 sps:$4 sm:$0xff]  }
  0xc6   : > { %833 = vmatpush1.bf16.msra.mxu0 %v5730_v30  ;;  %902 = vmatpush1.bf16.msra.mxu1 %v5730_v30  ;;  %v5883_v30 = vld [vmem:[%s8646_s3 + $0x30] ss:$8 sps:$4 sm:$0xff]  }
  0xc7   : > { %834 = vmatprep.subr.bf16.mxu0 %v5735_v31  ;;  %903 = vmatprep.subr.bf16.mxu1 %v5735_v31  ;;  %v5890_v31 = vld [vmem:[%s8646_s3 + $0x44] ss:$8 sps:$4 sm:$0xff]  }
  0xca   : > { %835 = vmatpush1.bf16.msra.mxu0 %v5744_v32  ;;  %904 = vmatpush1.bf16.msra.mxu1 %v5744_v32  ;;  %v5897_v32 = vld [vmem:[%s8646_s3 + $0x40] ss:$8 sps:$4 sm:$0xff]  }
  0xcb   : > { %1252 = vmatprep.subr.bf16.mxu0 %v5836_v23  ;;  %1368 = vmatprep.subr.bf16.mxu1 %v5836_v23 }
  0xcd   : > { %849 = vmatmul.mubr.bf16.vlgmr.msra.gmra.mrb[4].mxu0 %v811_v5  ;;  %918 = vmatmul.mubr.bf16.vlgmr.msra.gmra.mrb[4].mxu1 %v880_v6 }
  0xce   : > { %1253 = vmatpush1.bf16.msra.mxu0 %v5841_v24  ;;  %1369 = vmatpush1.bf16.msra.mxu1 %v5841_v24 }
  0xcf   : > { %1254 = vmatprep.subr.bf16.mxu0 %v5846_v25  ;;  %1370 = vmatprep.subr.bf16.mxu1 %v5846_v25 }
  0xd2   : > { %1255 = vmatpush1.bf16.msra.mxu0 %v5855_v26  ;;  %1371 = vmatpush1.bf16.msra.mxu1 %v5855_v26 }
  0xd3   : > { %1256 = vmatprep.subr.bf16.mxu0 %v5862_v27  ;;  %1372 = vmatprep.subr.bf16.mxu1 %v5862_v27 }
  0xd6   : > { %1257 = vmatpush1.bf16.msra.mxu0 %v5869_v28  ;;  %1373 = vmatpush1.bf16.msra.mxu1 %v5869_v28 }
  0xd7   : > { %1258 = vmatprep.subr.bf16.mxu0 %v5876_v29  ;;  %1374 = vmatprep.subr.bf16.mxu1 %v5876_v29 }
  0xda   : > { %1259 = vmatpush1.bf16.msra.mxu0 %v5883_v30  ;;  %1375 = vmatpush1.bf16.msra.mxu1 %v5883_v30 }
  0xdb   : > { %1260 = vmatprep.subr.bf16.mxu0 %v5890_v31  ;;  %1376 = vmatprep.subr.bf16.mxu1 %v5890_v31 }
  0xde   : > { %1261 = vmatpush1.bf16.msra.mxu0 %v5897_v32  ;;  %1377 = vmatpush1.bf16.msra.mxu1 %v5897_v32 }
  0xdf   : > { %1262 = vmatprep.subr.bf16.mxu0 %v5904_v33  ;;  %1378 = vmatprep.subr.bf16.mxu1 %v5904_v33 }
  0xe2   : > { %1263 = vmatpush1.bf16.msra.mxu0 %v5911_v34  ;;  %1379 = vmatpush1.bf16.msra.mxu1 %v5911_v34 }
  0xe3   : > { %1264 = vmatprep.subr.bf16.mxu0 %v5918_v35  ;;  %1380 = vmatprep.subr.bf16.mxu1 %v5918_v35 }
  0xe6   : > { %1265 = vmatpush1.bf16.msra.mxu0 %v5925_v36  ;;  %1381 = vmatpush1.bf16.msra.mxu1 %v5925_v36 }
  0xe7   : > { %1266 = vmatprep.subr.bf16.mxu0 %v5932_v37  ;;  %1382 = vmatprep.subr.bf16.mxu1 %v5932_v37 }
  0xea   : > { %1267 = vmatpush1.bf16.msra.mxu0 %v5939_v38  ;;  %1383 = vmatpush1.bf16.msra.mxu1 %v5939_v38 }
  0xeb   : > { %1268 = vmatprep.subr.bf16.mxu0 %v5946_v39  ;;  %1384 = vmatprep.subr.bf16.mxu1 %v5946_v39 }
  0xee   : > { %1269 = vmatpush1.bf16.msra.mxu0 %v5953_v40  ;;  %1385 = vmatpush1.bf16.msra.mxu1 %v5953_v40 }
  0xef   : > { %1270 = vmatprep.subr.bf16.mxu0 %v5960_v41  ;;  %1386 = vmatprep.subr.bf16.mxu1 %v5960_v41 }
  0xf2   : > { %1271 = vmatpush1.bf16.msra.mxu0 %v5967_v42  ;;  %1387 = vmatpush1.bf16.msra.mxu1 %v5967_v42 }
  0xf3   : > { %1272 = vmatprep.subr.bf16.mxu0 %v5974_v43  ;;  %1388 = vmatprep.subr.bf16.mxu1 %v5974_v43 }
  0xf6   : > { %1273 = vmatpush1.bf16.msra.mxu0 %v5981_v44  ;;  %1389 = vmatpush1.bf16.msra.mxu1 %v5981_v44 }
  0xf7   : > { %1274 = vmatprep.subr.bf16.mxu0 %v5988_v45  ;;  %1390 = vmatprep.subr.bf16.mxu1 %v5988_v45 }
  0xfa   : > { %1275 = vmatpush1.bf16.msra.mxu0 %v5995_v46  ;;  %1391 = vmatpush1.bf16.msra.mxu1 %v5995_v46 }
  0xfb   : > { %1276 = vmatprep.subr.bf16.mxu0 %v6002_v47  ;;  %1392 = vmatprep.subr.bf16.mxu1 %v6002_v47 }
  0xfe   : > { %1277 = vmatpush1.bf16.msra.mxu0 %v6009_v48  ;;  %1393 = vmatpush1.bf16.msra.mxu1 %v6009_v48 }
  0xff   : > { %1278 = vmatprep.subr.bf16.mxu0 %v6016_v49  ;;  %1394 = vmatprep.subr.bf16.mxu1 %v6016_v49 }
 0x102   : > { %1279 = vmatpush1.bf16.msra.mxu0 %v6023_v50  ;;  %1395 = vmatpush1.bf16.msra.mxu1 %v6023_v50 }
 0x103   : > { %1280 = vmatprep.subr.bf16.mxu0 %v6039_v63  ;;  %1396 = vmatprep.subr.bf16.mxu1 %v6039_v63 }
 0x106   : > { %1281 = vmatpush1.bf16.msra.mxu0 %v6045_v2  ;;  %1397 = vmatpush1.bf16.msra.mxu1 %v6045_v2 }
 0x178   : > { %v5813_v7 = vpop.f32.mrb[0].mxu0  ;;  %v5815_v8 = vpop.f32.mrb[0].mxu1 }
 0x179   : > { %v783_v9 = vpop.f32.mrb[1].mxu1  ;;  %720 = vrot.lane.b32.xlu0 %v5813_v7, %s8661_s26  ;;  %v713_v10 = vpop.f32.mrb[1].mxu0 }
 0x17a   : > { %v785_v11 = vpop.f32.mrb[2].mxu1  ;;  %722 = vrot.lane.b32.xlu1 %v713_v10, %s8661_s26  ;;  %v715_v12 = vpop.f32.mrb[2].mxu0 }
 0x17b   : > { %v716_v13 = vpop.f32.mrb[3].mxu0  ;;  %v786_v14 = vpop.f32.mrb[3].mxu1 }
 0x17c   : > { %v6071_v13 = vld [vmem:[%s8646_s3 + $0x104] ss:$8 sps:$4 sm:$0xff]  }
 0x17d   : > { %790 = vrot.lane.b32.xlu0 %v5815_v8, %s8661_s26 }
 0x17e   : > { %792 = vrot.lane.b32.xlu1 %v783_v9, %s8661_s26  ;;  %v6062_v9 = vld [vmem:[%s8646_s3 + $0xf0] ss:$8 sps:$4 sm:$0xff]  }
 0x1a0   : > { %v5823_v15 = vpop.f32.mrb[4].mxu0  ;;  %v5825_v16 = vpop.f32.mrb[4].mxu1 }
 0x1a1   : > { %v921_v17 = vpop.f32.mrb[5].mxu1  ;;  %859 = vrot.lane.b32.xlu0 %v5823_v15, %s8661_s26  ;;  %v852_v18 = vpop.f32.mrb[5].mxu0 }
 0x1a2   : > { %v923_v19 = vpop.f32.mrb[6].mxu1  ;;  %861 = vrot.lane.b32.xlu1 %v852_v18, %s8661_s26  ;;  %v854_v20 = vpop.f32.mrb[6].mxu0 }
 0x1a3   : > { %v855_v21 = vpop.f32.mrb[7].mxu0  ;;  %v924_v22 = vpop.f32.mrb[7].mxu1 }
 0x1a5   : > { %928 = vrot.lane.b32.xlu0 %v5825_v16, %s8661_s26 }
 0x1a6   : > { %930 = vrot.lane.b32.xlu1 %v921_v17, %s8661_s26 }
 0x1eb   : > { %v721_v51 = vpop.permute.xlu0 %720 }
 0x1ec   : > { %v723_v52 = vpop.permute.xlu1 %722 }
 0x1ed   : > { %v725_v53 = vsel %vm724_vm3, %v721_v51, %v723_v52 }
 0x1ee   : > { %v727_v57 = vmax.f32 %v5813_v7, %v725_v53 }
 0x1ef   : > { %v791_v54 = vpop.permute.xlu0 %790 }
 0x1f0   : > { %v793_v55 = vpop.permute.xlu1 %792 }
 0x1f1   : > { %v794_v56 = vsel %vm724_vm3, %v791_v54, %v793_v55 }
 0x1f2   : > { %v796_v58 = vmax.f32 %v5815_v8, %v794_v56  ;;  %v6057_v8 = vld [vmem:[%s8646_s3 + $0xf4] ss:$8 sps:$4 sm:$0xff]  }
 0x1f3   : > { %1282 = vmatprep.subr.bf16.mxu0 %v6057_v8  ;;  %1398 = vmatprep.subr.bf16.mxu1 %v6057_v8 }
 0x1f4   : > { %v935_v59 = vmax.f32 %v727_v57, %v796_v58  ;;  %1283 = vmatpush1.bf16.msra.mxu0 %v6062_v9  ;;  %1399 = vmatpush1.bf16.msra.mxu1 %v6062_v9 }
 0x1f5   : > { %1293 = vmatprep.subr.bf16.mxu0 %v6071_v13  ;;  %1409 = vmatprep.subr.bf16.mxu1 %v6071_v13 }
 0x1f6   : > { %v942_v3 = vadd.f32 %v4247_v62, %v935_v59 }
 0x1f8   : > { %v943_v10 = vmax.f32 %v942_v3, 0.0 }
 0x1fa   : > { %v960_v19 = vrot.slane %v943_v10, 2 }
 0x213   : > { %v860_v60 = vpop.permute.xlu0 %859 }
 0x214   : > { %v862_v61 = vpop.permute.xlu1 %861 }
 0x215   : > { %v863_v0 = vsel %vm724_vm3, %v860_v60, %v862_v61 }
 0x216   : > { %v865_v6 = vmax.f32 %v5823_v15, %v863_v0  ;;  %v952_v15 = vrot.slane %v943_v10, 1 }
 0x217   : > { %v929_v1 = vpop.permute.xlu0 %928 }
 0x218   : > { %v931_v4 = vpop.permute.xlu1 %930 }
 0x219   : > { %v932_v5 = vsel %vm724_vm3, %v929_v1, %v931_v4 }
 0x21a   : > { %v934_v7 = vmax.f32 %v5825_v16, %v932_v5 }
 0x21c   : > { %v944_v11 = vmax.f32 %v865_v6, %v934_v7 }
 0x21e   : > { %v945_v12 = vadd.f32 %v4247_v62, %v944_v11 }
 0x220   : > { %v946_v14 = vmax.f32 %v945_v12, 0.0 }
 0x222   : > { %v4828_v16 = vpack.i.bf16 %v952_v15, %v946_v14  ;;  %v956_v17 = vrot.slane %v946_v14, 1  ;;  %v1353_v20 = vrot.slane %v946_v14, 2 }
 0x224   : > { %4829 = vrot.lane.b32.xlu0 %v4828_v16, %s8659_s30  ;;  %v4833_v18 = vpack.i.bf16 %v956_v17, %v952_v15  ;;  %v4838_v21 = vpack.i.bf16 %v960_v19, %v956_v17  ;;  %v4843_v22 = vpack.i.bf16 %v1353_v20, %v960_v19  ;;  %v5079_v17 = vld [vmem:[%s8646_s3 + $0x114] ss:$8 sps:$4 sm:$0xff]   ;;  %v5082_v19 = vld [vmem:[%s8646_s3 + $0x124] ss:$8 sps:$4 sm:$0xff]   ;;  %v5084_v20 = vld [vmem:[%s8646_s3 + $0x120] ss:$8 sps:$4 sm:$0xff]  }
 0x225   : > { %s8861_s30 = smov 64  }
 0x226   : > { %4834 = vrot.lane.b32.xlu1 %v4833_v18, %s8657_s12  ;;  %v5081_v18 = vld [vmem:[%s8646_s3 + $0x110] ss:$8 sps:$4 sm:$0xff]   ;;  %s8669_s12 = smov 48  }
 0x228   : > { %4839 = vrot.lane.b32.xlu0 %v4838_v21, %s8655_s13  ;;  %v5085_v21 = vld [vmem:[%s8646_s3 + $0x134] ss:$8 sps:$4 sm:$0xff]   ;;  %s8671_s13 = smov 112  }
 0x22a   : > { %4844 = vrot.lane.b32.xlu1 %v4843_v22, %s8667_s16  ;;  %v5087_v22 = vld [vmem:[%s8646_s3 + $0x130] ss:$8 sps:$4 sm:$0xff]  }
 0x296   : > { %v4830_v51 = vpop.permute.xlu0 %4829 }
 0x297   : > { %v4832_v52 = vunpack.i.h.bf16 %v4830_v51  ;;  %v4831_v53 = vunpack.i.l.bf16 %v4830_v51  ;;  %v5088_v51 = vld [vmem:[%s8646_s3 + $0x144] ss:$8 sps:$4 sm:$0xff]  }
 0x298   : > { %v4835_v54 = vpop.permute.xlu1 %4834 }
 0x299   : > { %v4837_v55 = vunpack.i.h.bf16 %v4835_v54  ;;  %v4836_v56 = vunpack.i.l.bf16 %v4835_v54  ;;  %v965_v0 = vsel %vm964_vm5, %v943_v10, %v4831_v53  ;;  %v1357_v1 = vsel %vm964_vm5, %v946_v14, %v4832_v52  ;;  %v5078_v10 = vld [vmem:[%s8646_s3 + $0x100] ss:$8 sps:$4 sm:$0xff]   ;;  %v5093_v54 = vld [vmem:[%s8646_s3 + $0x150] ss:$8 sps:$4 sm:$0xff]  }
 0x29a   : > { %v6079_v57 = vpop.permute.xlu0 %4839  ;;  %v972_v15 = vpack.c.bf16 %v965_v0, %v965_v0  ;;  %v1361_v16 = vpack.c.bf16 %v1357_v1, %v1357_v1  ;;  %v5102_v0 = vld [vmem:[%s8646_s3 + $0x180] ss:$8 sps:$4 sm:$0xff]   ;;  %v5103_v1 = vld [vmem:[%s8646_s3 + $0x194] ss:$8 sps:$4 sm:$0xff]  }
 0x29b   : > { %v1358_v58 = vsel %vm966_vm4, %v4832_v52, %v4837_v55  ;;  %v967_v59 = vsel %vm966_vm4, %v4831_v53, %v4836_v56  ;;  %v4842_v60 = vunpack.i.h.bf16 %v6079_v57  ;;  %v4841_v61 = vunpack.i.l.bf16 %v6079_v57  ;;  %v5090_v52 = vld [vmem:[%s8646_s3 + $0x140] ss:$8 sps:$4 sm:$0xff]   ;;  %v5091_v53 = vld [vmem:[%s8646_s3 + $0x154] ss:$8 sps:$4 sm:$0xff]   ;;  %v5094_v55 = vld [vmem:[%s8646_s3 + $0x164] ss:$8 sps:$4 sm:$0xff]  }
 0x29c   : > { %v4845_v62 = vpop.permute.xlu1 %4844  ;;  %v5096_v56 = vld [vmem:[%s8646_s3 + $0x160] ss:$8 sps:$4 sm:$0xff]  }
 0x29d   : > { %v6087_v3 = vunpack.i.h.bf16 %v4845_v62  ;;  %v6089_v4 = vunpack.i.l.bf16 %v4845_v62  ;;  %v969_v5 = vsel %vm968_vm6, %v967_v59, %v4841_v61  ;;  %v1359_v6 = vsel %vm968_vm6, %v1358_v58, %v4842_v60  ;;  %v5097_v58 = vld [vmem:[%s8646_s3 + $0x174] ss:$8 sps:$4 sm:$0xff]   ;;  %v5099_v59 = vld [vmem:[%s8646_s3 + $0x170] ss:$8 sps:$4 sm:$0xff]   ;;  %v5100_v62 = vld [vmem:[%s8646_s3 + $0x184] ss:$8 sps:$4 sm:$0xff]  }
 0x29e   : > { %v973_v7 = vpack.c.bf16 %v969_v5, %v969_v5  ;;  %v1362_v11 = vpack.c.bf16 %v1359_v6, %v1359_v6  ;;  %v464_v5 = vld [vmem:[%s8646_s3 + $0x1a0] sm:$0x33]  ;;  %v5105_v6 = vld [vmem:[%s8646_s3 + $0x190] ss:$8 sps:$4 sm:$0xff]  }
 0x29f   : > { %v1364_v12 = vpack.c.bf16 %v6087_v3, %v6087_v3  ;;  %v975_v14 = vpack.c.bf16 %v6089_v4, %v6089_v4 }
 0x2a0   : > { %1284 = vmatprep.mubr.bf16.mxu0 %v973_v7  ;;  %1400 = vmatprep.mubr.bf16.mxu1 %v1362_v11  ;;  %v6163_v7 = vcombine.high %v464_v5, %v464_v5  ;;  %v4300_v11 = vcombine.low %v464_v5, %v464_v5  ;;  %v5119_v5 = vld [vmem:[%s8648_s5 + $0xa0] sm:$0xff]  }
 0x2a1   : > { %1285 = vmatmul.mubr.bf16.vlgmr.msra.gmra.mrb[8].mxu0 %v972_v15  ;;  %1401 = vmatmul.mubr.bf16.vlgmr.msra.gmra.mrb[8].mxu1 %v1361_v16 }
 0x2a2   : > { %1294 = vmatpush1.bf16.msra.mxu0 %v5078_v10  ;;  %1410 = vmatpush1.bf16.msra.mxu1 %v5078_v10  ;;  %8849 = vst [vmem:[#allocation11_spill] sm:$0xff] %v6163_v7  ;;  %v6170_v10 = vsel %vm1245_vm8, %v4300_v11, 0  ;;  %v5124_v11 = vld [vmem:[%s8648_s5 + $0x68] sm:$0xff]  }
 0x2a3   : > { %4303 = vmatprep.mubr.msk.bf16.mxu0 %vm1241_vm7, %v975_v14  ;;  %4305 = vmatprep.mubr.msk.bf16.mxu1 %vm1241_vm7, %v1364_v12  ;;  %8850 = vst [vmem:[#allocation12_spill] sm:$0xff] %v6170_v10  ;;  %v1360_v12 = vsel %vm970_vm9, %v4842_v60, %v6087_v3  ;;  %v971_v14 = vsel %vm970_vm9, %v4841_v61, %v6089_v4 }
 0x2a4   : > { %1295 = vmatprep.subr.bf16.mxu0 %v5079_v17  ;;  %1411 = vmatprep.subr.bf16.mxu1 %v5079_v17  ;;  %v1363_v15 = vpack.c.bf16 %v1360_v12, %v1360_v12  ;;  %v974_v16 = vpack.c.bf16 %v971_v14, %v971_v14  ;;  %v6248_v12 = vld [vmem:[%s8648_s5 + $0xa8] sm:$0xff]  }
 0x2a5   : > { %8851 = vst [vmem:[#allocation13_spill] sm:$0xff] %v6248_v12  ;;  %v6254_v14 = vld [vmem:[%s8648_s5 + $0x28] sm:$0xff]  }
 0x2a6   : > { %1296 = vmatpush1.bf16.msra.mxu0 %v5081_v18  ;;  %1412 = vmatpush1.bf16.msra.mxu1 %v5081_v18  ;;  %8852 = vst [vmem:[#allocation14_spill] sm:$0xff] %v6254_v14 }
 0x2a7   : > { %1297 = vmatprep.subr.bf16.mxu0 %v5082_v19  ;;  %1413 = vmatprep.subr.bf16.mxu1 %v5082_v19 }
 0x2aa   : > { %1298 = vmatpush1.bf16.msra.mxu0 %v5084_v20  ;;  %1414 = vmatpush1.bf16.msra.mxu1 %v5084_v20  ;;  %v5108_v20 = vld [vmem:[%s8648_s5 + $0x80] sm:$0xff]  }
 0x2ab   : > { %1299 = vmatprep.subr.bf16.mxu0 %v5085_v21  ;;  %1415 = vmatprep.subr.bf16.mxu1 %v5085_v21  ;;  %v5109_v21 = vld [vmem:[%s8648_s5 + $0x40] sm:$0xff]  }
 0x2ae   : > { %1300 = vmatpush1.bf16.msra.mxu0 %v5087_v22  ;;  %1416 = vmatpush1.bf16.msra.mxu1 %v5087_v22  ;;  %v8673_v22 = vmov 0  }
 0x2af   : > { %1301 = vmatprep.subr.bf16.mxu0 %v5088_v51  ;;  %1417 = vmatprep.subr.bf16.mxu1 %v5088_v51  ;;  %v5111_v51 = vld [vmem:[%s8648_s5] sm:$0xff]  }
 0x2b2   : > { %1302 = vmatpush1.bf16.msra.mxu0 %v5090_v52  ;;  %1418 = vmatpush1.bf16.msra.mxu1 %v5090_v52  ;;  %v5112_v52 = vld [vmem:[%s8648_s5 + $0x48] sm:$0xff]  }
 0x2b3   : > { %1303 = vmatprep.subr.bf16.mxu0 %v5091_v53  ;;  %1419 = vmatprep.subr.bf16.mxu1 %v5091_v53  ;;  %v5110_v53 = vld [vmem:[%s8648_s5 + $0x88] sm:$0xff]  }
 0x2b6   : > { %1304 = vmatpush1.bf16.msra.mxu0 %v5093_v54  ;;  %1420 = vmatpush1.bf16.msra.mxu1 %v5093_v54  ;;  %v5114_v54 = vld [vmem:[%s8648_s5 + $0x8] sm:$0xff]  }
 0x2b7   : > { %1305 = vmatprep.subr.bf16.mxu0 %v5094_v55  ;;  %1421 = vmatprep.subr.bf16.mxu1 %v5094_v55  ;;  %v5115_v55 = vld [vmem:[%s8648_s5 + $0x50] sm:$0xff]  }
 0x2ba   : > { %1306 = vmatpush1.bf16.msra.mxu0 %v5096_v56  ;;  %1422 = vmatpush1.bf16.msra.mxu1 %v5096_v56  ;;  %v5113_v56 = vld [vmem:[%s8648_s5 + $0x90] sm:$0xff]  }
 0x2bb   : > { %1307 = vmatprep.subr.bf16.mxu0 %v5097_v58  ;;  %1423 = vmatprep.subr.bf16.mxu1 %v5097_v58  ;;  %v5117_v58 = vld [vmem:[%s8648_s5 + $0x10] sm:$0xff]  }
 0x2be   : > { %1308 = vmatpush1.bf16.msra.mxu0 %v5099_v59  ;;  %1424 = vmatpush1.bf16.msra.mxu1 %v5099_v59  ;;  %v5118_v59 = vld [vmem:[%s8648_s5 + $0x58] sm:$0xff]  }
 0x2bf   : > { %1309 = vmatprep.subr.bf16.mxu0 %v5100_v62  ;;  %1425 = vmatprep.subr.bf16.mxu1 %v5100_v62  ;;  %v5116_v62 = vld [vmem:[%s8648_s5 + $0x98] sm:$0xff]  }
 0x2c2   : > { %1310 = vmatpush1.bf16.msra.mxu0 %v5102_v0  ;;  %1426 = vmatpush1.bf16.msra.mxu1 %v5102_v0  ;;  %v5120_v0 = vld [vmem:[%s8648_s5 + $0x18] sm:$0xff]  }
 0x2c3   : > { %1311 = vmatprep.subr.bf16.mxu0 %v5103_v1  ;;  %1427 = vmatprep.subr.bf16.mxu1 %v5103_v1  ;;  %v5121_v1 = vld [vmem:[%s8648_s5 + $0x60] sm:$0xff]  }
 0x2c6   : > { %1312 = vmatpush1.bf16.msra.mxu0 %v5105_v6  ;;  %1428 = vmatpush1.bf16.msra.mxu1 %v5105_v6  ;;  %v5123_v6 = vld [vmem:[%s8648_s5 + $0x20] sm:$0xff]  }
 0x2c7   : > { %4302 = vmatprep.subr.msk.bf16.mxu0 %vm1245_vm8, %v6163_v7  ;;  %4304 = vmatprep.subr.msk.bf16.mxu1 %vm1245_vm8, %v6163_v7  ;;  %v6565_v7 = vld [vmem:[%s8644_s1 + $0x94] ss:$8 sps:$4 sm:$0xff]  }
 0x2c8   : > { %8879 = vst [vmem:[#allocation37_spill] sm:$0xff] %v6565_v7 }
 0x2ca   : > { %1314 = vmatpush1.bf16.msra.mxu0 %v6170_v10  ;;  %1430 = vmatpush1.bf16.msra.mxu1 %v6170_v10 }
 0x2cb   : > { %1688 = vmatprep.subr.bf16.mxu1 %v8673_v22  ;;  %4416 = vmatprep.subr.bf16.mxu0 %v5109_v21 }
 0x2cd   : > { %1326 = vmatmul.mubr.bf16.vlgmr.msra.gmra.mrb[8].mxu0 %v974_v16  ;;  %1442 = vmatmul.mubr.bf16.vlgmr.msra.gmra.mrb[8].mxu1 %v1363_v15  ;;  %v6260_v15 = vld [vmem:[%s8648_s5 + $0xb0] sm:$0xff]  }
 0x2ce   : > { %1689 = vmatpush1.bf16.msra.mxu1 %v5108_v20  ;;  %4417 = vmatpush3.bf16.msra.mxu0 %v5111_v51  ;;  %8853 = vst [vmem:[#allocation15_spill] sm:$0xff] %v6260_v15  ;;  %v6290_v51 = vld [vmem:[%s8648_s5 + $0x78] sm:$0xff]  }
 0x2cf   : > { %1690 = vmatprep.subr.bf16.mxu1 %v8673_v22  ;;  %4418 = vmatprep.subr.bf16.mxu0 %v5112_v52  ;;  %8857 = vst [vmem:[#allocation19_spill] sm:$0xff] %v6290_v51  ;;  %v6295_v52 = vld [vmem:[%s8648_s5 + $0xc0] sm:$0xff]  }
 0x2d0   : > { %8858 = vst [vmem:[#allocation20_spill] sm:$0xff] %v6295_v52 }
 0x2d2   : > { %1691 = vmatpush1.bf16.msra.mxu1 %v5110_v53  ;;  %4419 = vmatpush3.bf16.msra.mxu0 %v5114_v54 }
 0x2d3   : > { %1692 = vmatprep.subr.bf16.mxu1 %v8673_v22  ;;  %4420 = vmatprep.subr.bf16.mxu0 %v5115_v55  ;;  %v6302_v55 = vld [vmem:[%s8648_s5 + $0x38] sm:$0xff]  }
 0x2d4   : > { %8859 = vst [vmem:[#allocation21_spill] sm:$0xff] %v6302_v55 }
 0x2d6   : > { %1693 = vmatpush1.bf16.msra.mxu1 %v5113_v56  ;;  %4421 = vmatpush3.bf16.msra.mxu0 %v5117_v58  ;;  %v4306_v56 = vld [vmem:[%s8647_s4] ss:$0 sm:$0xff] }
 0x2d7   : > { %1694 = vmatprep.subr.bf16.mxu1 %v8673_v22  ;;  %4422 = vmatprep.subr.bf16.mxu0 %v5118_v59 }
 0x2da   : > { %1695 = vmatpush1.bf16.msra.mxu1 %v5116_v62  ;;  %4423 = vmatpush3.bf16.msra.mxu0 %v5120_v0  ;;  %v8686_v62 = vmov 0.0  }
 0x2db   : > { %1696 = vmatprep.subr.bf16.mxu1 %v8673_v22  ;;  %4424 = vmatprep.subr.bf16.mxu0 %v5121_v1 }
 0x2de   : > { %1697 = vmatpush1.bf16.msra.mxu1 %v5119_v5  ;;  %4425 = vmatpush3.bf16.msra.mxu0 %v5123_v6 }
 0x2df   : > { %1698 = vmatprep.subr.bf16.mxu1 %v8673_v22  ;;  %4426 = vmatprep.subr.bf16.mxu0 %v5124_v11 }
 0x2e2   : > { %1699 = vmatpush1.bf16.msra.mxu1 %v6248_v12  ;;  %4427 = vmatpush3.bf16.msra.mxu0 %v6254_v14  ;;  %v6551_v12 = vld [vmem:[%s8644_s1 + $0x84] ss:$8 sps:$4 sm:$0xff]  }
 0x2e3   : > { %1700 = vmatprep.subr.bf16.mxu1 %v8673_v22  ;;  %8877 = vst [vmem:[#allocation35_spill] sm:$0xff] %v6551_v12 }
 0x2e6   : > { %1701 = vmatpush1.bf16.msra.mxu1 %v6260_v15 }
 0x2e7   : > { %1702 = vmatprep.subr.bf16.mxu1 %v8673_v22 }
 0x3a0   : > { %v6182_v17 = vpop.f32.mrb[8].mxu0  ;;  %v6184_v18 = vpop.f32.mrb[8].mxu1 }
 0x3a1   : > { %v1445_v19 = vpop.f32.mrb[9].mxu1  ;;  %1336 = vrot.lane.b32.xlu0 %v6182_v17, %s8669_s12  ;;  %v1329_v57 = vpop.f32.mrb[9].mxu0 }
 0x3a2   : > { %v1447_v60 = vpop.f32.mrb[10].mxu1  ;;  %1338 = vrot.lane.b32.xlu1 %v1329_v57, %s8669_s12  ;;  %v1331_v61 = vpop.f32.mrb[10].mxu0  ;;  %v6269_v57 = vld [vmem:[%s8648_s5 + $0x70] sm:$0xff]  }
 0x3a3   : > { %v1332_v3 = vpop.f32.mrb[11].mxu0  ;;  %v1448_v4 = vpop.f32.mrb[11].mxu1  ;;  %8854 = vst [vmem:[#allocation16_spill] sm:$0xff] %v6269_v57  ;;  %v6274_v60 = vld [vmem:[%s8648_s5 + $0xb8] sm:$0xff]   ;;  %v6279_v61 = vld [vmem:[%s8648_s5 + $0x30] sm:$0xff]   ;;  %4428 = vmatprep.subr.bf16.mxu0 %v6269_v57 }
 0x3a4   : > { %8855 = vst [vmem:[#allocation17_spill] sm:$0xff] %v6274_v60  ;;  %8856 = vst [vmem:[#allocation18_spill] sm:$0xff] %v6279_v61  ;;  %1703 = vmatpush1.bf16.msra.mxu1 %v6274_v60  ;;  %4429 = vmatpush3.bf16.msra.mxu0 %v6279_v61  ;;  %v6533_v60 = vld [vmem:[%s8644_s1 + $0x74] ss:$8 sps:$4 sm:$0xff]   ;;  %v6544_v57 = vld [vmem:[%s8644_s1 + $0x70] ss:$8 sps:$4 sm:$0xff]  }
 0x3a5   : > { %1452 = vrot.lane.b32.xlu0 %v6184_v18, %s8669_s12  ;;  %1704 = vmatprep.subr.bf16.mxu1 %v8673_v22 }
 0x3a6   : > { %1454 = vrot.lane.b32.xlu1 %v1445_v19, %s8669_s12  ;;  %4430 = vmatprep.subr.bf16.mxu0 %v6290_v51  ;;  %s8860_s12 = smov 80  }
 0x3a8   : > { %1705 = vmatpush1.bf16.msra.mxu1 %v6295_v52  ;;  %4431 = vmatpush3.bf16.msra.mxu0 %v6302_v55  ;;  %v6527_v55 = vld [vmem:[%s8644_s1 + $0x60] ss:$8 sps:$4 sm:$0xff]  }
 0x3a9   : > { %4568 = vmatprep.subr.bf16.mxu0 %v8686_v62  ;;  %4588 = vmatprep.subr.bf16.mxu1 %v8686_v62 }
 0x413   : > { %v1337_v16 = vpop.permute.xlu0 %1336 }
 0x414   : > { %v1339_v19 = vpop.permute.xlu1 %1338 }
 0x415   : > { %v1341_v3 = vsel %vm1340_vm10, %v1337_v16, %v1339_v19 }
 0x416   : > { %v1343_v53 = vmax.f32 %v6182_v17, %v1341_v3 }
 0x417   : > { %v1453_v4 = vpop.permute.xlu0 %1452 }
 0x418   : > { %v1455_v20 = vpop.permute.xlu1 %1454 }
 0x419   : > { %v1456_v21 = vsel %vm1340_vm10, %v1453_v4, %v1455_v20 }
 0x41a   : > { %v1458_v54 = vmax.f32 %v6184_v18, %v1456_v21 }
 0x41c   : > { %v1459_v58 = vmax.f32 %v1343_v53, %v1458_v54 }
 0x41e   : > { %v1466_v59 = vadd.f32 %v4306_v56, %v1459_v58  ;;  %v6323_v58 = vld [vmem:[%s8650_s7] sm:$0xff]  }
 0x41f   : > { %8862 = vst [vmem:[#allocation22_spill] sm:$0xff] %v6323_v58 }
 0x420   : > { %v1467_v17 = vmax.f32 %v1466_v59, 0.0 }
 0x422   : > { %v1473_v18 = vrot.slane %v1467_v17, 2  ;;  %v1469_v0 = vrot.slane %v1467_v17, 1  ;;  %v1481_v1 = vrot.slane %v1467_v17, 4  ;;  %v1477_v5 = vrot.slane %v1467_v17, 3 }
 0x424   : > { %1474 = vrot.lane.b32.xlu1 %v1473_v18, %s8688_s22  ;;  %1470 = vrot.lane.b32.xlu0 %v1469_v0, %s8860_s12  ;;  %v6337_v18 = vld [vmem:[%s8650_s7 + $0x10] sm:$0xff]   ;;  %v5136_v0 = vld [vmem:[%s8650_s7 + $0x18] sm:$0xff]  }
 0x425   : > { %8864 = vst [vmem:[#allocation24_spill] sm:$0xff] %v6337_v18 }
 0x428   : > { %1482 = vrot.lane.b32.xlu1 %v1481_v1, %s8861_s30  ;;  %1478 = vrot.lane.b32.xlu0 %v1477_v5, %s8671_s13  ;;  %v5137_v1 = vld [vmem:[%s8650_s7 + $0x20] sm:$0xff]   ;;  %v5138_v5 = vld [vmem:[%s8650_s7 + $0x28] sm:$0xff]   ;;  %s8960_s13 = smov 112  }
 0x496   : > { %v1475_v6 = vpop.permute.xlu1 %1474  ;;  %v1471_v11 = vpop.permute.xlu0 %1470 }
 0x497   : > { %v1485_v16 = vsel %vm970_vm9, %v1467_v17, %v1471_v11  ;;  %v1486_v19 = vsel %vm566_vm0, %v1471_v11, %v1475_v6  ;;  %v6330_v17 = vld [vmem:[%s8650_s7 + $0x8] sm:$0xff]   ;;  %v5139_v6 = vld [vmem:[%s8650_s7 + $0x30] sm:$0xff]   ;;  %v5140_v11 = vld [vmem:[%s8650_s7 + $0x38] ss:$0 sps:$4 sm:$0xff]  }
 0x498   : > { %v1490_v59 = vpack.c.bf16 %v1485_v16, %v1485_v16  ;;  %8863 = vst [vmem:[#allocation23_spill] sm:$0xff] %v6330_v17  ;;  %v6361_v16 = vsel %vm1778_vm13, %v5140_v11, 0  ;;  %v6412_v11 = vld [vmem:[%s8652_s9 + $0x8] sm:$0xff]  }
 0x499   : > { %8865 = vst [vmem:[#allocation25_spill] sm:$0xff] %v6361_v16  ;;  %8871 = vst [vmem:[#allocation30_spill] sm:$0xff] %v6412_v11 }
 0x49a   : > { %v1483_v3 = vpop.permute.xlu1 %1482  ;;  %v1479_v4 = vpop.permute.xlu0 %1478 }
 0x49b   : > { %v1493_v20 = vpack.c.bf16 %v1483_v3, %v1483_v3  ;;  %v1488_v21 = vsel %vm1487_vm11, %v1486_v19, %v1479_v4  ;;  %v1489_v53 = vsel %vm568_vm1, %v1479_v4, %v1483_v3  ;;  %v6367_v19 = vld [vmem:[%s8644_s1 + $0x4] ss:$8 sps:$4 sm:$0xff]   ;;  %v6378_v4 = vld [vmem:[%s5613_s15 + $0x30] sm:$0x7f] }
 0x49c   : > { %v1491_v54 = vpack.c.bf16 %v1488_v21, %v1488_v21  ;;  %v1492_v56 = vpack.c.bf16 %v1489_v53, %v1489_v53  ;;  %8866 = vst [vmem:[#allocation26_spill] sm:$0xff] %v6367_v19  ;;  %v6375_v3 = vld [vmem:[%s5613_s15 + $0x28] sm:$0x7f]  ;;  %8867 = vst [vmem:[#allocation27_spill] sm:$0xff] %v6378_v4 }
 0x49d   : > { %4332 = vmatprep.mubr.msk.bf16.mxu1 %vm1644_vm12, %v1493_v20  ;;  %v6381_v20 = vld [vmem:[%s5613_s15 + $0x38] sm:$0x7f]  ;;  %v4848_v21 = vpack.i.bf16 %v6378_v4, %v6375_v3 }
 0x49e   : > { %1680 = vmatprep.mubr.bf16.mxu0 %v1491_v54  ;;  %1721 = vmatmul.mubr.bf16.vlgmr.msra.gmra.mrb[12].mxu1 %v1492_v56  ;;  %v4853_v53 = vpack.i.bf16 %v6381_v20, %v6378_v4  ;;  %v6388_v54 = vld [vmem:[%s5613_s15 + $0x21] sm:$0x7f] }
 0x49f   : > { %1681 = vmatmul.mubr.bf16.vlgmr.msra.gmra.mrb[12].mxu0 %v1490_v59  ;;  %4600 = vmatprep.mubr.msk.bf16.mxu1 %vm5466_vm14, %v8686_v62  ;;  %v4858_v56 = vpack.i.bf16 %v6388_v54, %v6381_v20  ;;  %v4355_v59 = vld [vmem:[%s5613_s15 + $0x29] sm:$0x7f] }
 0x4a0   : > { %4569 = vmatpush3.bf16.msra.mxu0 %v6323_v58  ;;  %4584 = vmatprep.mubr.msk.bf16.mxu0 %vm5466_vm14, %v8686_v62 }
 0x4a1   : > { %4570 = vmatprep.subr.bf16.mxu0 %v8686_v62  ;;  %4849 = vrot.lane.b32.xlu0 %v4848_v21, %s8688_s22  ;;  %v6420_v21 = vld [vmem:[%s8652_s9 + $0x10] sm:$0xff]  }
 0x4a2   : > { %4854 = vrot.lane.b32.xlu1 %v4853_v53, %s8861_s30  ;;  %8872 = vst [vmem:[#allocation31_spill] sm:$0xff] %v6420_v21  ;;  %v6427_v53 = vld [vmem:[%s8652_s9 + $0x18] sm:$0xff]  }
 0x4a3   : > { %8873 = vst [vmem:[#allocation32_spill] sm:$0xff] %v6427_v53 }
 0x4a4   : > { %4571 = vmatpush3.bf16.msra.mxu0 %v6330_v17 }
 0x4a5   : > { %4572 = vmatprep.subr.bf16.mxu0 %v8686_v62  ;;  %4859 = vrot.lane.b32.xlu0 %v4858_v56, %s8868_s29 }
 0x4a6   : > { %4864 = vrot.lane.b32.xlu1 %v4858_v56, %s8688_s22  ;;  %v6434_v56 = vld [vmem:[%s8652_s9 + $0x20] sm:$0xff]   ;;  %s8905_s22 = smov 40  }
 0x4a7   : > { %8874 = vst [vmem:[#allocation33_spill] sm:$0xff] %v6434_v56 }
 0x4a8   : > { %4573 = vmatpush3.bf16.msra.mxu0 %v6337_v18 }
 0x4a9   : > { %4574 = vmatprep.subr.bf16.mxu0 %v8686_v62 }
 0x4ac   : > { %4575 = vmatpush3.bf16.msra.mxu0 %v5136_v0  ;;  %v4868_v0 = vpack.i.bf16 %v4355_v59, %v6388_v54 }
 0x4ad   : > { %4576 = vmatprep.subr.bf16.mxu0 %v8686_v62 }
 0x4ae   : > { %4869 = vrot.lane.b32.xlu0 %v4868_v0, %s8861_s30 }
 0x4b0   : > { %4577 = vmatpush3.bf16.msra.mxu0 %v5137_v1  ;;  %v6398_v1 = vld [vmem:[%s5613_s15 + $0x31] sm:$0x7f] }
 0x4b1   : > { %4578 = vmatprep.subr.bf16.mxu0 %v8686_v62  ;;  %8869 = vst [vmem:[#allocation28_spill] sm:$0xff] %v6398_v1 }
 0x4b4   : > { %4579 = vmatpush3.bf16.msra.mxu0 %v5138_v5  ;;  %v6403_v5 = vld [vmem:[%s8652_s9] sm:$0xff]  }
 0x4b5   : > { %4580 = vmatprep.subr.bf16.mxu0 %v8686_v62  ;;  %8870 = vst [vmem:[#allocation29_spill] sm:$0xff] %v6403_v5  ;;  %4589 = vmatpush3.bf16.msra.mxu1 %v6403_v5 }
 0x4b6   : > { %4590 = vmatprep.subr.bf16.mxu1 %v8686_v62 }
 0x4b8   : > { %4581 = vmatpush3.bf16.msra.mxu0 %v5139_v6  ;;  %v4873_v6 = vpack.i.bf16 %v6398_v1, %v4355_v59 }
 0x4b9   : > { %4582 = vmatprep.subr.bf16.mxu0 %v8686_v62  ;;  %4591 = vmatpush3.bf16.msra.mxu1 %v6412_v11 }
 0x4ba   : > { %4874 = vrot.lane.b32.xlu1 %v4873_v6, %s8868_s29  ;;  %4592 = vmatprep.subr.bf16.mxu1 %v8686_v62 }
 0x4bc   : > { %4583 = vmatpush3.bf16.msra.mxu0 %v6361_v16  ;;  %v6442_v16 = vld [vmem:[%s8875_s6] sm:$0x1] }
 0x4bd   : > { %2014 = vmatprep.subr.bf16.mxu0 %v6367_v19  ;;  %4593 = vmatpush3.bf16.msra.mxu1 %v6420_v21  ;;  %8876 = vst [vmem:[#allocation34_spill] sm:$0xff] %v6442_v16 }
 0x4be   : > { %4594 = vmatprep.subr.bf16.mxu1 %v8686_v62 }
 0x4c1   : > { %4595 = vmatpush3.bf16.msra.mxu1 %v6427_v53 }
 0x4c2   : > { %4596 = vmatprep.subr.bf16.mxu1 %v8686_v62 }
 0x4c5   : > { %4597 = vmatpush3.bf16.msra.mxu1 %v6434_v56  ;;  %v2010_v56 = vpack.c.bf16 %v4355_v59, %v4355_v59  ;;  %v6486_v59 = vld [vmem:[%s8644_s1 + $0x30] ss:$8 sps:$4 sm:$0xff]  }
 0x4c6   : > { %4598 = vmatprep.subr.bf16.mxu1 %v8686_v62 }
 0x571   : > { %v1722_v0 = vpop.f32.mrb[12].mxu1 }
 0x572   : > { %v4432_v6 = vpop.f32.mrb[12].mxu0  ;;  %v1724_v22 = vpop.f32.mrb[13].mxu1 }
 0x573   : > { %v4433_v53 = vpop.f32.mrb[13].mxu0  ;;  %v1725_v18 = vpop.f32.mrb[14].mxu1  ;;  %v6449_v22 = vld [vmem:[%s8644_s1] ss:$8 sps:$4 sm:$0xff]  }
 0x574   : > { %v4434_v21 = vadd.f32 %v4433_v53, %v4432_v6  ;;  %v4435_v17 = vpop.f32.mrb[14].mxu0  ;;  %v1726_v11 = vpop.f32.mrb[15].mxu1  ;;  %v6480_v18 = vld [vmem:[%s8644_s1 + $0x34] ss:$8 sps:$4 sm:$0xff]  }
 0x575   : > { %v4436_v58 = vpop.f32.mrb[15].mxu0  ;;  %v6474_v17 = vld [vmem:[%s8644_s1 + $0x20] ss:$8 sps:$4 sm:$0xff]   ;;  %v6507_v53 = vpop.permute.xlu0 %4849 }
 0x576   : > { %v1683_v5 = vadd.f32 %v4434_v21, %v6442_v16  ;;  %v6456_v58 = vld [vmem:[%s8644_s1 + $0x14] ss:$8 sps:$4 sm:$0xff]   ;;  %v6498_v11 = vld [vmem:[%s8644_s1 + $0x40] ss:$8 sps:$4 sm:$0xff]   ;;  %v4852_v6 = vunpack.i.h.bf16 %v6507_v53  ;;  %v6522_v16 = vpop.permute.xlu1 %4854 }
 0x577   : > { %v6504_v21 = vld [vmem:[%s8644_s1 + $0x54] ss:$8 sps:$4 sm:$0xff]   ;;  %v4857_v51 = vunpack.i.h.bf16 %v6522_v16 }
 0x578   : > { %v1723_v52 = vadd.f32 %v1722_v0, %v1683_v5  ;;  %v6492_v5 = vld [vmem:[%s8644_s1 + $0x44] ss:$8 sps:$4 sm:$0xff]   ;;  %v2006_v15 = vsel %vm566_vm0, %v6375_v3, %v4852_v6  ;;  %v6558_v3 = vld [vmem:[%s8644_s1 + $0x80] ss:$8 sps:$4 sm:$0xff]  }
 0x579   : > { %v6518_v0 = vld [vmem:[%s8644_s1 + $0x64] ss:$8 sps:$4 sm:$0xff]   ;;  %v6537_v61 = vpop.permute.xlu0 %4859  ;;  %v2007_v10 = vsel %vm568_vm1, %v2006_v15, %v4857_v51  ;;  %8878 = vst [vmem:[#allocation36_spill] sm:$0xff] %v6558_v3  ;;  %v6571_v15 = vld [vmem:[%s8644_s1 + $0x90] ss:$8 sps:$4 sm:$0xff]  }
 0x57a   : > { %v1728_v62 = vpack.c.bf16 %v1723_v52, %v1723_v52  ;;  %v6462_v52 = vld [vmem:[%s8644_s1 + $0x10] ss:$8 sps:$4 sm:$0xff]   ;;  %v4862_v14 = vunpack.i.h.bf16 %v6537_v61  ;;  %8880 = vst [vmem:[#allocation38_spill] sm:$0xff] %v6571_v15  ;;  %v6603_v51 = vpop.permute.xlu1 %4864 }
 0x57c   : > { %4585 = vmatmul.mubr.msk.bf16.vlgmr.msra.gmra.mrb[16].mxu0 %vm1774_vm15, %v1728_v62  ;;  %v6468_v62 = vld [vmem:[%s8644_s1 + $0x24] ss:$8 sps:$4 sm:$0xff]   ;;  %v2008_v6 = vsel %vm570_vm2, %v2007_v10, %v4862_v14  ;;  %v5146_v10 = vld [vmem:[%s8652_s9 + $0x28] ss:$0 sps:$4 sm:$0x33]  }
 0x57d   : > { %2015 = vmatpush1.bf16.msra.mxu0 %v6449_v22  ;;  %4356 = vmatprep.mubr.msk.bf16.mxu0 %vm566_vm0, %v2010_v56  ;;  %v6512_v56 = vld [vmem:[%s8644_s1 + $0x50] ss:$8 sps:$4 sm:$0xff]   ;;  %v2009_v4 = vpack.c.bf16 %v2008_v6, %v2008_v6  ;;  %v6599_v14 = vsel %vm1245_vm8, %v5146_v10, 0 }
 0x57e   : > { %2016 = vmatprep.subr.bf16.mxu0 %v6456_v58  ;;  %8881 = vst [vmem:[#allocation39_spill] sm:$0xff] %v6599_v14  ;;  %4599 = vmatpush3.bf16.msra.mxu1 %v6599_v14  ;;  %v6611_v1 = vpop.permute.xlu1 %4874 }
 0x57f   : > { %1945 = vmatprep.subr.bf16.mxu1 %v6367_v19  ;;  %v4877_v10 = vunpack.i.h.bf16 %v6611_v1 }
 0x581   : > { %2017 = vmatpush1.bf16.msra.mxu0 %v6462_v52 }
 0x582   : > { %2018 = vmatprep.subr.bf16.mxu0 %v6468_v62 }
 0x585   : > { %2019 = vmatpush1.bf16.msra.mxu0 %v6474_v17 }
 0x586   : > { %2020 = vmatprep.subr.bf16.mxu0 %v6480_v18 }
 0x589   : > { %2021 = vmatpush1.bf16.msra.mxu0 %v6486_v59 }
 0x58a   : > { %2022 = vmatprep.subr.bf16.mxu0 %v6492_v5 }
 0x58d   : > { %2023 = vmatpush1.bf16.msra.mxu0 %v6498_v11 }
 0x58e   : > { %2024 = vmatprep.subr.bf16.mxu0 %v6504_v21 }
 0x591   : > { %2025 = vmatpush1.bf16.msra.mxu0 %v6512_v56 }
 0x592   : > { %2026 = vmatprep.subr.bf16.mxu0 %v6518_v0 }
 0x595   : > { %2027 = vmatpush1.bf16.msra.mxu0 %v6527_v55 }
 0x596   : > { %2028 = vmatprep.subr.bf16.mxu0 %v6533_v60 }
 0x599   : > { %2029 = vmatpush1.bf16.msra.mxu0 %v6544_v57 }
 0x59a   : > { %2030 = vmatprep.subr.bf16.mxu0 %v6551_v12 }
 0x59d   : > { %2031 = vmatpush1.bf16.msra.mxu0 %v6558_v3 }
 0x59e   : > { %2032 = vmatprep.subr.bf16.mxu0 %v6565_v7 }
 0x5a1   : > { %2033 = vmatpush1.bf16.msra.mxu0 %v6571_v15 }
 0x5a2   : > { %2152 = vmatprep.subr.bf16.mxu0 %v6367_v19 }
 0x5a4   : > { %2047 = vmatmul.mubr.bf16.vlgmr.msra.gmra.mrb[20].mxu0 %v2009_v4  ;;  %v4867_v4 = vunpack.i.h.bf16 %v6603_v51 }
 0x5a5   : > { %2153 = vmatpush1.bf16.msra.mxu0 %v6449_v22 }
 0x5a6   : > { %2154 = vmatprep.subr.bf16.mxu0 %v6456_v58  ;;  %v2144_v6 = vsel %vm566_vm0, %v6381_v20, %v4867_v4  ;;  %v6730_v20 = vld [vmem:[%s8646_s3] ss:$8 sps:$4 sm:$0xff]  }
 0x5a7   : > { %v6778_v4 = vld [vmem:[%s8646_s3 + $0x40] ss:$8 sps:$4 sm:$0xff]  }
 0x5a9   : > { %2155 = vmatpush1.bf16.msra.mxu0 %v6462_v52 }
 0x5aa   : > { %2156 = vmatprep.subr.bf16.mxu0 %v6468_v62 }
 0x5ad   : > { %2157 = vmatpush1.bf16.msra.mxu0 %v6474_v17 }
 0x5ae   : > { %2158 = vmatprep.subr.bf16.mxu0 %v6480_v18 }
 0x5b1   : > { %2159 = vmatpush1.bf16.msra.mxu0 %v6486_v59 }
 0x5b2   : > { %2160 = vmatprep.subr.bf16.mxu0 %v6492_v5 }
 0x5b5   : > { %2161 = vmatpush1.bf16.msra.mxu0 %v6498_v11 }
 0x5b6   : > { %2162 = vmatprep.subr.bf16.mxu0 %v6504_v21 }
 0x5b9   : > { %2163 = vmatpush1.bf16.msra.mxu0 %v6512_v56 }
 0x5ba   : > { %2164 = vmatprep.subr.bf16.mxu0 %v6518_v0 }
 0x5bd   : > { %2165 = vmatpush1.bf16.msra.mxu0 %v6527_v55 }
 0x5be   : > { %2166 = vmatprep.subr.bf16.mxu0 %v6533_v60 }
 0x5c1   : > { %2167 = vmatpush1.bf16.msra.mxu0 %v6544_v57 }
 0x5c2   : > { %2168 = vmatprep.subr.bf16.mxu0 %v6551_v12 }
 0x5c5   : > { %2169 = vmatpush1.bf16.msra.mxu0 %v6558_v3  ;;  %v4359_v3 = vld [vmem:[%s5613_s15 + $0x39] sm:$0x7f] }
 0x5c6   : > { %2170 = vmatprep.subr.bf16.mxu0 %v6565_v7  ;;  %v2148_v12 = vpack.c.bf16 %v4359_v3, %v4359_v3  ;;  %v6754_v3 = vld [vmem:[%s8646_s3 + $0x20] ss:$8 sps:$4 sm:$0xff]  }
 0x5c8   : > { %4360 = vmatprep.mubr.msk.bf16.mxu0 %vm566_vm0, %v2148_v12 }
 0x5c9   : > { %2171 = vmatpush1.bf16.msra.mxu0 %v6571_v15  ;;  %v6608_v15 = vpop.permute.xlu0 %4869 }
 0x5ca   : > { %2351 = vmatprep.subr.bf16.mxu0 %v5836_v23  ;;  %v4872_v23 = vunpack.i.h.bf16 %v6608_v15 }
 0x5cc   : > { %v2145_v7 = vsel %vm568_vm1, %v2144_v6, %v4872_v23  ;;  %v6784_v6 = vld [vmem:[%s8646_s3 + $0x54] ss:$8 sps:$4 sm:$0xff]   ;;  %v6790_v23 = vld [vmem:[%s8646_s3 + $0x50] ss:$8 sps:$4 sm:$0xff]  }
 0x5cd   : > { %v2146_v14 = vsel %vm570_vm2, %v2145_v7, %v4877_v10  ;;  %v4876_v7 = vunpack.i.l.bf16 %v6611_v1  ;;  %v6742_v1 = vld [vmem:[%s8646_s3 + $0x10] ss:$8 sps:$4 sm:$0xff]   ;;  %v6796_v10 = vld [vmem:[%s8646_s3 + $0x64] ss:$8 sps:$4 sm:$0xff]  }
 0x5ce   : > { %v2147_v19 = vpack.c.bf16 %v2146_v14, %v2146_v14  ;;  %v6766_v14 = vld [vmem:[%s8646_s3 + $0x30] ss:$8 sps:$4 sm:$0xff]  }
 0x5d0   : > { %2185 = vmatmul.mubr.bf16.vlgmr.msra.gmra.mrb[24].mxu0 %v2147_v19  ;;  %v6724_v19 = vld [vmem:[%s8646_s3 + $0x4] ss:$8 sps:$4 sm:$0xff]  }
 0x5d1   : > { %2352 = vmatpush1.bf16.msra.mxu0 %v5841_v24  ;;  %v6643_v24 = vld [vmem:[%s8882_s8] sm:$0x1] }
 0x5d2   : > { %2353 = vmatprep.subr.bf16.mxu0 %v5846_v25  ;;  %8883 = vst [vmem:[#allocation40_spill] sm:$0xff] %v6643_v24 }
 0x5d5   : > { %2354 = vmatpush1.bf16.msra.mxu0 %v5855_v26 }
 0x5d6   : > { %2355 = vmatprep.subr.bf16.mxu0 %v5862_v27 }
 0x5d9   : > { %2356 = vmatpush1.bf16.msra.mxu0 %v5869_v28 }
 0x5da   : > { %2357 = vmatprep.subr.bf16.mxu0 %v5876_v29 }
 0x5dd   : > { %2358 = vmatpush1.bf16.msra.mxu0 %v5883_v30 }
 0x5de   : > { %2359 = vmatprep.subr.bf16.mxu0 %v5890_v31  ;;  %v1941_v31 = vpack.c.bf16 %v6388_v54, %v6388_v54  ;;  %v6736_v54 = vld [vmem:[%s8646_s3 + $0x14] ss:$8 sps:$4 sm:$0xff]  }
 0x5e1   : > { %2360 = vmatpush1.bf16.msra.mxu0 %v5897_v32 }
 0x5e2   : > { %2361 = vmatprep.subr.bf16.mxu0 %v5904_v33  ;;  %v4851_v33 = vunpack.i.l.bf16 %v6507_v53  ;;  %v6748_v53 = vld [vmem:[%s8646_s3 + $0x24] ss:$8 sps:$4 sm:$0xff]  }
 0x5e5   : > { %2362 = vmatpush1.bf16.msra.mxu0 %v5911_v34  ;;  %v4349_v34 = vld [vmem:[%s5613_s15 + $0x20] sm:$0x7f] }
 0x5e6   : > { %2363 = vmatprep.subr.bf16.mxu0 %v5918_v35  ;;  %v4856_v35 = vunpack.i.l.bf16 %v6522_v16 }
 0x5e9   : > { %2364 = vmatpush1.bf16.msra.mxu0 %v5925_v36  ;;  %v1937_v36 = vsel %vm566_vm0, %v4349_v34, %v4851_v33  ;;  %v6850_v33 = vld [vmem:[%s8646_s3 + $0xa0] ss:$8 sps:$4 sm:$0xff]   ;;  %v6856_v34 = vld [vmem:[%s8646_s3 + $0xb4] ss:$8 sps:$4 sm:$0xff]  }
 0x5ea   : > { %2365 = vmatprep.subr.bf16.mxu0 %v5932_v37  ;;  %v4861_v37 = vunpack.i.l.bf16 %v6537_v61 }
 0x5ed   : > { %2366 = vmatpush1.bf16.msra.mxu0 %v5939_v38  ;;  %v1938_v38 = vsel %vm568_vm1, %v1937_v36, %v4856_v35  ;;  %v6862_v35 = vld [vmem:[%s8646_s3 + $0xb0] ss:$8 sps:$4 sm:$0xff]   ;;  %v6868_v36 = vld [vmem:[%s8646_s3 + $0xc4] ss:$8 sps:$4 sm:$0xff]  }
 0x5ee   : > { %2367 = vmatprep.subr.bf16.mxu0 %v5946_v39  ;;  %v8884_v39 = vld [vmem:[#allocation35_spill] sm:$0xff] }
 0x5ef   : > { %8892 = vst [vmem:[#allocation35_spill] sm:$0xff] %v6862_v35 }
 0x5f1   : > { %2368 = vmatpush1.bf16.msra.mxu0 %v5953_v40  ;;  %v1939_v40 = vsel %vm570_vm2, %v1938_v38, %v4861_v37  ;;  %v6874_v37 = vld [vmem:[%s8646_s3 + $0xc0] ss:$8 sps:$4 sm:$0xff]   ;;  %v6880_v38 = vld [vmem:[%s8646_s3 + $0xd4] ss:$8 sps:$4 sm:$0xff]  }
 0x5f2   : > { %2369 = vmatprep.subr.bf16.mxu0 %v5960_v41  ;;  %v8885_v41 = vld [vmem:[#allocation36_spill] sm:$0xff] }
 0x5f3   : > { %8893 = vst [vmem:[#allocation36_spill] sm:$0xff] %v6868_v36 }
 0x5f5   : > { %2370 = vmatpush1.bf16.msra.mxu0 %v5967_v42 }
 0x5f6   : > { %2371 = vmatprep.subr.bf16.mxu0 %v5974_v43  ;;  %v8886_v43 = vld [vmem:[#allocation37_spill] sm:$0xff] }
 0x5f7   : > { %8894 = vst [vmem:[#allocation37_spill] sm:$0xff] %v6874_v37 }
 0x5f9   : > { %2372 = vmatpush1.bf16.msra.mxu0 %v5981_v44 }
 0x5fa   : > { %2373 = vmatprep.subr.bf16.mxu0 %v5988_v45 }
 0x5fd   : > { %2374 = vmatpush1.bf16.msra.mxu0 %v5995_v46  ;;  %v1940_v46 = vpack.c.bf16 %v1939_v40, %v1939_v40  ;;  %v6886_v40 = vld [vmem:[%s8646_s3 + $0xd0] ss:$8 sps:$4 sm:$0xff]  }
 0x5fe   : > { %2375 = vmatprep.subr.bf16.mxu0 %v6002_v47 }
 0x601   : > { %2376 = vmatpush1.bf16.msra.mxu0 %v6009_v48  ;;  %v8888_v48 = vld [vmem:[#allocation28_spill] sm:$0xff] }
 0x602   : > { %2377 = vmatprep.subr.bf16.mxu0 %v6016_v49  ;;  %v2079_v49 = vpack.c.bf16 %v8888_v48, %v8888_v48  ;;  %8895 = vst [vmem:[#allocation28_spill] sm:$0xff] %v6880_v38  ;;  %v6916_v48 = vld [vmem:[%s8646_s3 + $0x104] ss:$8 sps:$4 sm:$0xff]  }
 0x603   : > { %8901 = vst [vmem:[#allocation43_spill] sm:$0xff] %v6916_v48 }
 0x605   : > { %2378 = vmatpush1.bf16.msra.mxu0 %v6023_v50  ;;  %v8889_v50 = vld [vmem:[#allocation38_spill] sm:$0xff] }
 0x606   : > { %2379 = vmatprep.subr.bf16.mxu0 %v6039_v63  ;;  %v8890_v63 = vld [vmem:[#allocation26_spill] sm:$0xff]  ;;  %8896 = vst [vmem:[#allocation38_spill] sm:$0xff] %v6886_v40 }
 0x609   : > { %2380 = vmatpush1.bf16.msra.mxu0 %v6045_v2  ;;  %v4866_v2 = vunpack.i.l.bf16 %v6603_v51  ;;  %v6772_v51 = vld [vmem:[%s8646_s3 + $0x44] ss:$8 sps:$4 sm:$0xff]  }
 0x60a   : > { %2381 = vmatprep.subr.bf16.mxu0 %v6057_v8  ;;  %v4871_v8 = vunpack.i.l.bf16 %v6608_v15  ;;  %v6760_v15 = vld [vmem:[%s8646_s3 + $0x34] ss:$8 sps:$4 sm:$0xff]  }
 0x60d   : > { %2382 = vmatpush1.bf16.msra.mxu0 %v6062_v9  ;;  %v8891_v9 = vld [vmem:[#allocation27_spill] sm:$0xff] }
 0x60e   : > { %2392 = vmatprep.subr.bf16.mxu0 %v6071_v13  ;;  %v2075_v13 = vsel %vm566_vm0, %v8891_v9, %v4866_v2 }
 0x60f   : > { %v2076_v12 = vsel %vm568_vm1, %v2075_v13, %v4871_v8 }
 0x610   : > { %v2077_v61 = vsel %vm570_vm2, %v2076_v12, %v4876_v7 }
 0x611   : > { %v2078_v16 = vpack.c.bf16 %v2077_v61, %v2077_v61 }
 0x64f   : > { %v1816_v25 = vpop.f32.mrb[16].mxu0 }
 0x650   : > { %v1817_v26 = vadd.f32 %v1816_v25, %v6643_v24  ;;  %v4586_v27 = vpop.f32.mrb[17].mxu0  ;;  %v6802_v25 = vld [vmem:[%s8646_s3 + $0x60] ss:$8 sps:$4 sm:$0xff]  }
 0x651   : > { %v1819_v28 = vpop.f32.mrb[18].mxu0  ;;  %v6814_v27 = vld [vmem:[%s8646_s3 + $0x70] ss:$8 sps:$4 sm:$0xff]  }
 0x652   : > { %v1822_v29 = vmax.f32 %v1817_v26, 0.0  ;;  %v4587_v30 = vpop.f32.mrb[19].mxu0  ;;  %v6808_v26 = vld [vmem:[%s8646_s3 + $0x74] ss:$8 sps:$4 sm:$0xff]   ;;  %v6820_v28 = vld [vmem:[%s8646_s3 + $0x84] ss:$8 sps:$4 sm:$0xff]  }
 0x653   : > { %v6832_v30 = vld [vmem:[%s8646_s3 + $0x94] ss:$8 sps:$4 sm:$0xff]  }
 0x654   : > { %v1823_v32 = vpack.c.bf16 %v1822_v29, %v1822_v29  ;;  %v6826_v29 = vld [vmem:[%s8646_s3 + $0x80] ss:$8 sps:$4 sm:$0xff]  }
 0x656   : > { %4601 = vmatmul.mubr.msk.bf16.vlgmr.msra.gmra.mrb[16].mxu1 %vm964_vm5, %v1823_v32  ;;  %v6844_v32 = vld [vmem:[%s8646_s3 + $0xa4] ss:$8 sps:$4 sm:$0xff]  }
 0x657   : > { %1946 = vmatpush1.bf16.msra.mxu1 %v6449_v22  ;;  %4354 = vmatprep.mubr.msk.bf16.mxu1 %vm566_vm0, %v1941_v31  ;;  %v6838_v31 = vld [vmem:[%s8646_s3 + $0x90] ss:$8 sps:$4 sm:$0xff]  }
 0x658   : > { %1947 = vmatprep.subr.bf16.mxu1 %v6456_v58 }
 0x65b   : > { %1948 = vmatpush1.bf16.msra.mxu1 %v6462_v52 }
 0x65c   : > { %1949 = vmatprep.subr.bf16.mxu1 %v6468_v62 }
 0x65f   : > { %1950 = vmatpush1.bf16.msra.mxu1 %v6474_v17 }
 0x660   : > { %1951 = vmatprep.subr.bf16.mxu1 %v6480_v18 }
 0x663   : > { %1952 = vmatpush1.bf16.msra.mxu1 %v6486_v59 }
 0x664   : > { %1953 = vmatprep.subr.bf16.mxu1 %v6492_v5 }
 0x667   : > { %1954 = vmatpush1.bf16.msra.mxu1 %v6498_v11 }
 0x668   : > { %1955 = vmatprep.subr.bf16.mxu1 %v6504_v21 }
 0x66b   : > { %1956 = vmatpush1.bf16.msra.mxu1 %v6512_v56 }
 0x66c   : > { %1957 = vmatprep.subr.bf16.mxu1 %v6518_v0 }
 0x66f   : > { %1958 = vmatpush1.bf16.msra.mxu1 %v6527_v55 }
 0x670   : > { %1959 = vmatprep.subr.bf16.mxu1 %v6533_v60 }
 0x673   : > { %1960 = vmatpush1.bf16.msra.mxu1 %v6544_v57 }
 0x674   : > { %1961 = vmatprep.subr.bf16.mxu1 %v8884_v39 }
 0x677   : > { %1962 = vmatpush1.bf16.msra.mxu1 %v8885_v41  ;;  %v6684_v42 = vpop.f32.mrb[20].mxu0 }
 0x678   : > { %1963 = vmatprep.subr.bf16.mxu1 %v8886_v43  ;;  %v2050_v44 = vpop.f32.mrb[21].mxu0  ;;  %2057 = vrot.lane.b32.xlu0 %v6684_v42, %s8887_s24 }
 0x679   : > { %2059 = vrot.lane.b32.xlu1 %v2050_v44, %s8887_s24  ;;  %v2052_v45 = vpop.f32.mrb[22].mxu0  ;;  %v6892_v44 = vld [vmem:[%s8646_s3 + $0xe4] ss:$8 sps:$4 sm:$0xff]  }
 0x67a   : > { %v2053_v47 = vpop.f32.mrb[23].mxu0  ;;  %8897 = vst [vmem:[#allocation26_spill] sm:$0xff] %v6892_v44  ;;  %v6898_v45 = vld [vmem:[%s8646_s3 + $0xe0] ss:$8 sps:$4 sm:$0xff]  }
 0x67b   : > { %1964 = vmatpush1.bf16.msra.mxu1 %v8889_v50  ;;  %8898 = vst [vmem:[#allocation27_spill] sm:$0xff] %v6898_v45  ;;  %v6910_v47 = vld [vmem:[%s8646_s3 + $0xf0] ss:$8 sps:$4 sm:$0xff]  }
 0x67c   : > { %2083 = vmatprep.subr.bf16.mxu1 %v8890_v63  ;;  %8900 = vst [vmem:[#allocation42_spill] sm:$0xff] %v6910_v47 }
 0x67e   : > { %1978 = vmatmul.mubr.bf16.vlgmr.msra.gmra.mrb[20].mxu1 %v1940_v46  ;;  %v6904_v46 = vld [vmem:[%s8646_s3 + $0xf4] ss:$8 sps:$4 sm:$0xff]  }
 0x67f   : > { %2084 = vmatpush1.bf16.msra.mxu1 %v6449_v22  ;;  %4358 = vmatprep.mubr.msk.bf16.mxu1 %vm566_vm0, %v2079_v49  ;;  %8899 = vst [vmem:[#allocation41_spill] sm:$0xff] %v6904_v46 }
 0x680   : > { %2085 = vmatprep.subr.bf16.mxu1 %v6456_v58 }
 0x683   : > { %2086 = vmatpush1.bf16.msra.mxu1 %v6462_v52 }
 0x684   : > { %2087 = vmatprep.subr.bf16.mxu1 %v6468_v62 }
 0x687   : > { %2088 = vmatpush1.bf16.msra.mxu1 %v6474_v17 }
 0x688   : > { %2089 = vmatprep.subr.bf16.mxu1 %v6480_v18 }
 0x68b   : > { %2090 = vmatpush1.bf16.msra.mxu1 %v6486_v59 }
 0x68c   : > { %2091 = vmatprep.subr.bf16.mxu1 %v6492_v5 }
 0x68f   : > { %2092 = vmatpush1.bf16.msra.mxu1 %v6498_v11 }
 0x690   : > { %2093 = vmatprep.subr.bf16.mxu1 %v6504_v21 }
 0x693   : > { %2094 = vmatpush1.bf16.msra.mxu1 %v6512_v56 }
 0x694   : > { %2095 = vmatprep.subr.bf16.mxu1 %v6518_v0 }
 0x697   : > { %2096 = vmatpush1.bf16.msra.mxu1 %v6527_v55 }
 0x698   : > { %2097 = vmatprep.subr.bf16.mxu1 %v6533_v60 }
 0x69b   : > { %2098 = vmatpush1.bf16.msra.mxu1 %v6544_v57 }
 0x69c   : > { %2099 = vmatprep.subr.bf16.mxu1 %v8884_v39 }
 0x69f   : > { %2100 = vmatpush1.bf16.msra.mxu1 %v8885_v41 }
 0x6a0   : > { %2101 = vmatprep.subr.bf16.mxu1 %v8886_v43 }
 0x6a3   : > { %2102 = vmatpush1.bf16.msra.mxu1 %v8889_v50  ;;  %v2186_v49 = vpop.f32.mrb[24].mxu0 }
 0x6a4   : > { %2236 = vmatprep.subr.bf16.mxu1 %v6724_v19  ;;  %v2188_v2 = vpop.f32.mrb[25].mxu0 }
 0x6a5   : > { %v2190_v8 = vpop.f32.mrb[26].mxu0 }
 0x6a6   : > { %2116 = vmatmul.mubr.bf16.vlgmr.msra.gmra.mrb[24].mxu1 %v2078_v16  ;;  %v2191_v9 = vpop.f32.mrb[27].mxu0 }
 0x6a7   : > { %2237 = vmatpush1.bf16.msra.mxu1 %v6730_v20 }
 0x6a8   : > { %2238 = vmatprep.subr.bf16.mxu1 %v6736_v54 }
 0x6ab   : > { %2239 = vmatpush1.bf16.msra.mxu1 %v6742_v1 }
 0x6ac   : > { %2240 = vmatprep.subr.bf16.mxu1 %v6748_v53 }
 0x6af   : > { %2241 = vmatpush1.bf16.msra.mxu1 %v6754_v3 }
 0x6b0   : > { %2242 = vmatprep.subr.bf16.mxu1 %v6760_v15 }
 0x6b3   : > { %2243 = vmatpush1.bf16.msra.mxu1 %v6766_v14 }
 0x6b4   : > { %2244 = vmatprep.subr.bf16.mxu1 %v6772_v51 }
 0x6b7   : > { %2245 = vmatpush1.bf16.msra.mxu1 %v6778_v4 }
 0x6b8   : > { %2246 = vmatprep.subr.bf16.mxu1 %v6784_v6 }
 0x6bb   : > { %2247 = vmatpush1.bf16.msra.mxu1 %v6790_v23 }
 0x6bc   : > { %2248 = vmatprep.subr.bf16.mxu1 %v6796_v10 }
 0x6bf   : > { %2249 = vmatpush1.bf16.msra.mxu1 %v6802_v25 }
 0x6c0   : > { %2250 = vmatprep.subr.bf16.mxu1 %v6808_v26 }
 0x6c3   : > { %2251 = vmatpush1.bf16.msra.mxu1 %v6814_v27 }
 0x6c4   : > { %2252 = vmatprep.subr.bf16.mxu1 %v6820_v28 }
 0x6c7   : > { %2253 = vmatpush1.bf16.msra.mxu1 %v6826_v29 }
 0x6c8   : > { %2254 = vmatprep.subr.bf16.mxu1 %v6832_v30 }
 0x6cb   : > { %2255 = vmatpush1.bf16.msra.mxu1 %v6838_v31 }
 0x6cc   : > { %2256 = vmatprep.subr.bf16.mxu1 %v6844_v32 }
 0x6cf   : > { %2257 = vmatpush1.bf16.msra.mxu1 %v6850_v33 }
 0x6d0   : > { %2258 = vmatprep.subr.bf16.mxu1 %v6856_v34 }
 0x6d3   : > { %2259 = vmatpush1.bf16.msra.mxu1 %v6862_v35 }
 0x6d4   : > { %2260 = vmatprep.subr.bf16.mxu1 %v6868_v36 }
 0x6d7   : > { %2261 = vmatpush1.bf16.msra.mxu1 %v6874_v37 }
 0x6d8   : > { %2262 = vmatprep.subr.bf16.mxu1 %v6880_v38 }
 0x6db   : > { %2263 = vmatpush1.bf16.msra.mxu1 %v6886_v40 }
 0x6dc   : > { %2264 = vmatprep.subr.bf16.mxu1 %v6892_v44 }
 0x6df   : > { %2265 = vmatpush1.bf16.msra.mxu1 %v6898_v45 }
 0x6e0   : > { %2266 = vmatprep.subr.bf16.mxu1 %v6904_v46 }
 0x6e3   : > { %2267 = vmatpush1.bf16.msra.mxu1 %v6910_v47 }
 0x6e4   : > { %2277 = vmatprep.subr.bf16.mxu1 %v6916_v48 }
 0x6ea   : > { %v2058_v9 = vpop.permute.xlu0 %2057 }
 0x729   : > { %v6919_v13 = vpop.f32.mrb[16].mxu1 }
 0x72a   : > { %8902 = vst [vmem:[#allocation44_spill] sm:$0xff] %v6919_v13  ;;  %v4602_v7 = vpop.f32.mrb[17].mxu1 }
 0x72b   : > { %v1900_v12 = vpop.f32.mrb[18].mxu1  ;;  %v2060_v7 = vpop.permute.xlu1 %2059 }
 0x72c   : > { %v4603_v61 = vpop.f32.mrb[19].mxu1  ;;  %v2061_v12 = vsel %vm724_vm3, %v2058_v9, %v2060_v7 }
 0x751   : > { %v1979_v16 = vpop.f32.mrb[20].mxu1 }
 0x752   : > { %v1981_v46 = vpop.f32.mrb[21].mxu1  ;;  %1988 = vrot.lane.b32.xlu0 %v1979_v16, %s8887_s24 }
 0x753   : > { %v1983_v47 = vpop.f32.mrb[22].mxu1  ;;  %1990 = vrot.lane.b32.xlu1 %v1981_v46, %s8887_s24  ;;  %v2063_v46 = vmax.f32 %v6684_v42, %v2061_v12 }
 0x754   : > { %v1984_v45 = vpop.f32.mrb[23].mxu1 }
 0x779   : > { %v2117_v44 = vpop.f32.mrb[24].mxu1 }
 0x77a   : > { %v2119_v40 = vpop.f32.mrb[25].mxu1  ;;  %2126 = vrot.lane.b32.xlu0 %v2117_v44, %s8887_s24 }
 0x77b   : > { %v2121_v48 = vpop.f32.mrb[26].mxu1  ;;  %2128 = vrot.lane.b32.xlu1 %v2119_v40, %s8887_s24 }
 0x77c   : > { %v2122_v8 = vpop.f32.mrb[27].mxu1 }
 0x77e   : > { %2195 = vrot.lane.b32.xlu0 %v2186_v49, %s8887_s24 }
 0x77f   : > { %2197 = vrot.lane.b32.xlu1 %v2188_v2, %s8887_s24  ;;  %v6934_v2 = vld [vmem:[%s8645_s2] ss:$0 sm:$0xff] }
 0x780   : > { %8903 = vst [vmem:[#allocation45_spill] sm:$0xff] %v6934_v2 }
 0x7c4   : > { %v1989_v47 = vpop.permute.xlu0 %1988 }
 0x7c5   : > { %v1991_v61 = vpop.permute.xlu1 %1990 }
 0x7c6   : > { %v1992_v45 = vsel %vm724_vm3, %v1989_v47, %v1991_v61 }
 0x7c7   : > { %v1994_v13 = vmax.f32 %v1979_v16, %v1992_v45 }
 0x7c9   : > { %v2202_v38 = vmax.f32 %v1994_v13, %v2063_v46 }
 0x7cb   : > { %v2203_v9 = vadd.f32 %v6934_v2, %v2202_v38 }
 0x7cd   : > { %v2204_v42 = vmax.f32 %v2203_v9, 0.0 }
 0x7cf   : > { %v2213_v45 = vrot.slane %v2204_v42, 1  ;;  %v2221_v36 = vrot.slane %v2204_v42, 2 }
 0x7ec   : > { %v2127_v48 = vpop.permute.xlu0 %2126 }
 0x7ed   : > { %v2129_v37 = vpop.permute.xlu1 %2128 }
 0x7ee   : > { %v2130_v40 = vsel %vm724_vm3, %v2127_v48, %v2129_v37 }
 0x7ef   : > { %v2132_v47 = vmax.f32 %v2117_v44, %v2130_v40 }
 0x7f0   : > { %v2196_v8 = vpop.permute.xlu0 %2195 }
 0x7f1   : > { %v2198_v7 = vpop.permute.xlu1 %2197 }
 0x7f2   : > { %v2199_v24 = vsel %vm724_vm3, %v2196_v8, %v2198_v7 }
 0x7f3   : > { %v2201_v61 = vmax.f32 %v2186_v49, %v2199_v24 }
 0x7f5   : > { %v2205_v16 = vmax.f32 %v2132_v47, %v2201_v61 }
 0x7f7   : > { %v2206_v13 = vadd.f32 %v6934_v2, %v2205_v16 }
 0x7f9   : > { %v2207_v12 = vmax.f32 %v2206_v13, 0.0 }
 0x7fb   : > { %v4878_v37 = vpack.i.bf16 %v2213_v45, %v2207_v12  ;;  %v2217_v46 = vrot.slane %v2207_v12, 1  ;;  %v2336_v35 = vrot.slane %v2207_v12, 2 }
 0x7fd   : > { %4879 = vrot.lane.b32.xlu0 %v4878_v37, %s8904_s25  ;;  %v4883_v48 = vpack.i.bf16 %v2217_v46, %v2213_v45  ;;  %v4888_v38 = vpack.i.bf16 %v2221_v36, %v2217_v46  ;;  %v4893_v44 = vpack.i.bf16 %v2336_v35, %v2221_v36 }
 0x7ff   : > { %4884 = vrot.lane.b32.xlu1 %v4883_v48, %s8905_s22 }
 0x801   : > { %4889 = vrot.lane.b32.xlu0 %v4888_v38, %s8906_s14 }
 0x803   : > { %4894 = vrot.lane.b32.xlu1 %v4893_v44, %s8860_s12 }
 0x86f   : > { %v4880_v24 = vpop.permute.xlu0 %4879 }
 0x870   : > { %v4882_v49 = vunpack.i.h.bf16 %v4880_v24  ;;  %v4881_v40 = vunpack.i.l.bf16 %v4880_v24 }
 0x871   : > { %v4885_v8 = vpop.permute.xlu1 %4884 }
 0x872   : > { %v4887_v9 = vunpack.i.h.bf16 %v4885_v8  ;;  %v4886_v7 = vunpack.i.l.bf16 %v4885_v8  ;;  %v2340_v35 = vsel %vm964_vm5, %v2207_v12, %v4882_v49  ;;  %v2225_v36 = vsel %vm964_vm5, %v2204_v42, %v4881_v40 }
 0x873   : > { %v6943_v47 = vpop.permute.xlu0 %4889 }
 0x874   : > { %v2341_v61 = vsel %vm966_vm4, %v4882_v49, %v4887_v9  ;;  %v2226_v16 = vsel %vm966_vm4, %v4881_v40, %v4886_v7  ;;  %v8742_v13 = vunpack.i.h.bf16 %v6943_v47  ;;  %v8741_v45 = vunpack.i.l.bf16 %v6943_v47  ;;  %v6968_v49 = vld [vmem:[%s8646_s3 + $0x100] ss:$8 sps:$4 sm:$0xff]   ;;  %v6977_v40 = vld [vmem:[%s8646_s3 + $0x114] ss:$8 sps:$4 sm:$0xff]  }
 0x875   : > { %v4895_v37 = vpop.permute.xlu1 %4894  ;;  %v2344_v9 = vpack.c.bf16 %v2340_v35, %v2340_v35  ;;  %v2229_v7 = vpack.c.bf16 %v2225_v36, %v2225_v36  ;;  %8907 = vst [vmem:[#allocation46_spill] sm:$0xff] %v6968_v49  ;;  %8908 = vst [vmem:[#allocation47_spill] sm:$0xff] %v6977_v40  ;;  %v6998_v35 = vld [vmem:[%s8646_s3 + $0x120] ss:$8 sps:$4 sm:$0xff]   ;;  %v7005_v36 = vld [vmem:[%s8646_s3 + $0x134] ss:$8 sps:$4 sm:$0xff]  }
 0x876   : > { %v6951_v46 = vunpack.i.h.bf16 %v4895_v37  ;;  %v6953_v48 = vunpack.i.l.bf16 %v4895_v37  ;;  %v2227_v38 = vsel %vm968_vm6, %v2226_v16, %v8741_v45  ;;  %v2342_v44 = vsel %vm968_vm6, %v2341_v61, %v8742_v13  ;;  %v6984_v61 = vld [vmem:[%s8646_s3 + $0x110] ss:$8 sps:$4 sm:$0xff]   ;;  %v6991_v16 = vld [vmem:[%s8646_s3 + $0x124] ss:$8 sps:$4 sm:$0xff]   ;;  %8911 = vst [vmem:[#allocation50_spill] sm:$0xff] %v6998_v35  ;;  %8912 = vst [vmem:[#allocation51_spill] sm:$0xff] %v7005_v36 }
 0x877   : > { %v2230_v24 = vpack.c.bf16 %v2227_v38, %v2227_v38  ;;  %v2345_v8 = vpack.c.bf16 %v2342_v44, %v2342_v44  ;;  %8909 = vst [vmem:[#allocation48_spill] sm:$0xff] %v6984_v61  ;;  %8910 = vst [vmem:[#allocation49_spill] sm:$0xff] %v6991_v16  ;;  %v7012_v37 = vld [vmem:[%s8646_s3 + $0x130] ss:$8 sps:$4 sm:$0xff]   ;;  %v7019_v38 = vld [vmem:[%s8646_s3 + $0x144] ss:$8 sps:$4 sm:$0xff]  }
 0x878   : > { %v2347_v42 = vpack.c.bf16 %v6951_v46, %v6951_v46  ;;  %v2232_v12 = vpack.c.bf16 %v6953_v48, %v6953_v48  ;;  %8913 = vst [vmem:[#allocation52_spill] sm:$0xff] %v7012_v37  ;;  %8914 = vst [vmem:[#allocation53_spill] sm:$0xff] %v7019_v38  ;;  %v7026_v44 = vld [vmem:[%s8646_s3 + $0x140] ss:$8 sps:$4 sm:$0xff]   ;;  %v7075_v45 = vld [vmem:[%s8646_s3 + $0x184] ss:$8 sps:$4 sm:$0xff]  }
 0x879   : > { %2268 = vmatprep.mubr.bf16.mxu1 %v2230_v24  ;;  %2383 = vmatprep.mubr.bf16.mxu0 %v2345_v8  ;;  %8915 = vst [vmem:[#allocation54_spill] sm:$0xff] %v7026_v44  ;;  %v7033_v24 = vld [vmem:[%s8646_s3 + $0x154] ss:$8 sps:$4 sm:$0xff]   ;;  %v7040_v8 = vld [vmem:[%s8646_s3 + $0x150] ss:$8 sps:$4 sm:$0xff]   ;;  %8922 = vst [vmem:[#allocation61_spill] sm:$0xff] %v7075_v45 }
 0x87a   : > { %2269 = vmatmul.mubr.bf16.vlgmr.msra.gmra.mrb[28].mxu1 %v2229_v7  ;;  %2384 = vmatmul.mubr.bf16.vlgmr.msra.gmra.mrb[28].mxu0 %v2344_v9  ;;  %8916 = vst [vmem:[#allocation55_spill] sm:$0xff] %v7033_v24  ;;  %8917 = vst [vmem:[#allocation56_spill] sm:$0xff] %v7040_v8  ;;  %v7047_v9 = vld [vmem:[%s8646_s3 + $0x164] ss:$8 sps:$4 sm:$0xff]   ;;  %v7054_v7 = vld [vmem:[%s8646_s3 + $0x160] ss:$8 sps:$4 sm:$0xff]  }
 0x87b   : > { %2278 = vmatpush1.bf16.msra.mxu1 %v6968_v49  ;;  %2393 = vmatpush1.bf16.msra.mxu0 %v6968_v49  ;;  %8918 = vst [vmem:[#allocation57_spill] sm:$0xff] %v7047_v9  ;;  %8919 = vst [vmem:[#allocation58_spill] sm:$0xff] %v7054_v7  ;;  %v7082_v13 = vld [vmem:[%s8646_s3 + $0x180] ss:$8 sps:$4 sm:$0xff]  }
 0x87c   : > { %4362 = vmatprep.mubr.msk.bf16.mxu1 %vm1241_vm7, %v2232_v12  ;;  %4364 = vmatprep.mubr.msk.bf16.mxu0 %vm1241_vm7, %v2347_v42  ;;  %v7061_v42 = vld [vmem:[%s8646_s3 + $0x174] ss:$8 sps:$4 sm:$0xff]   ;;  %v7068_v12 = vld [vmem:[%s8646_s3 + $0x170] ss:$8 sps:$4 sm:$0xff]   ;;  %8923 = vst [vmem:[#allocation62_spill] sm:$0xff] %v7082_v13 }
 0x87d   : > { %2279 = vmatprep.subr.bf16.mxu1 %v6977_v40  ;;  %2394 = vmatprep.subr.bf16.mxu0 %v6977_v40  ;;  %8920 = vst [vmem:[#allocation59_spill] sm:$0xff] %v7061_v42  ;;  %8921 = vst [vmem:[#allocation60_spill] sm:$0xff] %v7068_v12 }
 0x87f   : > { %2280 = vmatpush1.bf16.msra.mxu1 %v6984_v61  ;;  %2395 = vmatpush1.bf16.msra.mxu0 %v6984_v61 }
 0x880   : > { %2281 = vmatprep.subr.bf16.mxu1 %v6991_v16  ;;  %2396 = vmatprep.subr.bf16.mxu0 %v6991_v16 }
 0x883   : > { %2282 = vmatpush1.bf16.msra.mxu1 %v6998_v35  ;;  %2397 = vmatpush1.bf16.msra.mxu0 %v6998_v35 }
 0x884   : > { %2283 = vmatprep.subr.bf16.mxu1 %v7005_v36  ;;  %2398 = vmatprep.subr.bf16.mxu0 %v7005_v36 }
 0x887   : > { %2284 = vmatpush1.bf16.msra.mxu1 %v7012_v37  ;;  %2399 = vmatpush1.bf16.msra.mxu0 %v7012_v37 }
 0x888   : > { %2285 = vmatprep.subr.bf16.mxu1 %v7019_v38  ;;  %2400 = vmatprep.subr.bf16.mxu0 %v7019_v38 }
 0x88b   : > { %2286 = vmatpush1.bf16.msra.mxu1 %v7026_v44  ;;  %2401 = vmatpush1.bf16.msra.mxu0 %v7026_v44  ;;  %v8930_v44 = vmov 0  }
 0x88c   : > { %2287 = vmatprep.subr.bf16.mxu1 %v7033_v24  ;;  %2402 = vmatprep.subr.bf16.mxu0 %v7033_v24 }
 0x88f   : > { %2288 = vmatpush1.bf16.msra.mxu1 %v7040_v8  ;;  %2403 = vmatpush1.bf16.msra.mxu0 %v7040_v8  ;;  %v8929_v8 = vld [vmem:[#allocation12_spill] sm:$0xff] }
 0x890   : > { %2289 = vmatprep.subr.bf16.mxu1 %v7047_v9  ;;  %2404 = vmatprep.subr.bf16.mxu0 %v7047_v9 }
 0x893   : > { %2290 = vmatpush1.bf16.msra.mxu1 %v7054_v7  ;;  %2405 = vmatpush1.bf16.msra.mxu0 %v7054_v7  ;;  %v8928_v7 = vunpack.i.l.bf16 %v6943_v47 }
 0x894   : > { %2291 = vmatprep.subr.bf16.mxu1 %v7061_v42  ;;  %2406 = vmatprep.subr.bf16.mxu0 %v7061_v42  ;;  %v8926_v42 = vld [vmem:[#allocation11_spill] sm:$0xff] }
 0x895   : > { %v2228_v9 = vsel %vm970_vm9, %v8928_v7, %v6953_v48  ;;  %v7149_v48 = vld [vmem:[%s8648_s5 + $0x8] sm:$0xff]   ;;  %v7168_v7 = vld [vmem:[%s8648_s5 + $0x10] sm:$0xff]  }
 0x896   : > { %v2231_v24 = vpack.c.bf16 %v2228_v9, %v2228_v9  ;;  %8936 = vst [vmem:[#allocation70_spill] sm:$0xff] %v7149_v48  ;;  %v7162_v9 = vld [vmem:[%s8648_s5 + $0x90] sm:$0xff]   ;;  %8939 = vst [vmem:[#allocation73_spill] sm:$0xff] %v7168_v7 }
 0x897   : > { %2292 = vmatpush1.bf16.msra.mxu1 %v7068_v12  ;;  %2407 = vmatpush1.bf16.msra.mxu0 %v7068_v12  ;;  %v7089_v12 = vld [vmem:[%s8646_s3 + $0x194] ss:$8 sps:$4 sm:$0xff]   ;;  %8938 = vst [vmem:[#allocation72_spill] sm:$0xff] %v7162_v9 }
 0x898   : > { %2293 = vmatprep.subr.bf16.mxu1 %v7075_v45  ;;  %2408 = vmatprep.subr.bf16.mxu0 %v7075_v45  ;;  %8924 = vst [vmem:[#allocation63_spill] sm:$0xff] %v7089_v12  ;;  %v7096_v45 = vld [vmem:[%s8646_s3 + $0x190] ss:$8 sps:$4 sm:$0xff]  }
 0x899   : > { %8925 = vst [vmem:[#allocation64_spill] sm:$0xff] %v7096_v45 }
 0x89b   : > { %2294 = vmatpush1.bf16.msra.mxu1 %v7082_v13  ;;  %2409 = vmatpush1.bf16.msra.mxu0 %v7082_v13  ;;  %v8927_v13 = vunpack.i.h.bf16 %v6943_v47  ;;  %v7124_v47 = vld [vmem:[%s8648_s5 + $0x80] sm:$0xff]  }
 0x89c   : > { %2295 = vmatprep.subr.bf16.mxu1 %v7089_v12  ;;  %2410 = vmatprep.subr.bf16.mxu0 %v7089_v12  ;;  %8932 = vst [vmem:[#allocation66_spill] sm:$0xff] %v7124_v47 }
 0x89d   : > { %v2343_v12 = vsel %vm970_vm9, %v8927_v13, %v6951_v46  ;;  %v7130_v13 = vld [vmem:[%s8648_s5] sm:$0xff]   ;;  %v7143_v46 = vld [vmem:[%s8648_s5 + $0x88] sm:$0xff]  }
 0x89e   : > { %8933 = vst [vmem:[#allocation67_spill] sm:$0xff] %v7130_v13  ;;  %8935 = vst [vmem:[#allocation69_spill] sm:$0xff] %v7143_v46 }
 0x89f   : > { %2296 = vmatpush1.bf16.msra.mxu1 %v7096_v45  ;;  %2411 = vmatpush1.bf16.msra.mxu0 %v7096_v45  ;;  %v2346_v45 = vpack.c.bf16 %v2343_v12, %v2343_v12  ;;  %v7175_v12 = vld [vmem:[%s8648_s5 + $0x58] sm:$0xff]  }
 0x8a0   : > { %4361 = vmatprep.subr.msk.bf16.mxu1 %vm1245_vm8, %v8926_v42  ;;  %4363 = vmatprep.subr.msk.bf16.mxu0 %vm1245_vm8, %v8926_v42  ;;  %v7118_v42 = vld [vmem:[%s8648_s5 + $0x40] sm:$0xff]   ;;  %8940 = vst [vmem:[#allocation74_spill] sm:$0xff] %v7175_v12 }
 0x8a1   : > { %8931 = vst [vmem:[#allocation65_spill] sm:$0xff] %v7118_v42 }
 0x8a3   : > { %2298 = vmatpush1.bf16.msra.mxu1 %v8929_v8  ;;  %2413 = vmatpush1.bf16.msra.mxu0 %v8929_v8 }
 0x8a4   : > { %2513 = vmatprep.subr.bf16.mxu0 %v8930_v44  ;;  %4454 = vmatprep.subr.bf16.mxu1 %v7118_v42 }
 0x8a6   : > { %2310 = vmatmul.mubr.bf16.vlgmr.msra.gmra.mrb[28].mxu1 %v2231_v24  ;;  %2425 = vmatmul.mubr.bf16.vlgmr.msra.gmra.mrb[28].mxu0 %v2346_v45  ;;  %v7137_v45 = vld [vmem:[%s8648_s5 + $0x48] sm:$0xff]   ;;  %v7156_v24 = vld [vmem:[%s8648_s5 + $0x50] sm:$0xff]  }
 0x8a7   : > { %2514 = vmatpush1.bf16.msra.mxu0 %v7124_v47  ;;  %4455 = vmatpush3.bf16.msra.mxu1 %v7130_v13  ;;  %8934 = vst [vmem:[#allocation68_spill] sm:$0xff] %v7137_v45  ;;  %8937 = vst [vmem:[#allocation71_spill] sm:$0xff] %v7156_v24  ;;  %v8953_v13 = vld [vmem:[#allocation17_spill] sm:$0xff] }
 0x8a8   : > { %2515 = vmatprep.subr.bf16.mxu0 %v8930_v44  ;;  %4456 = vmatprep.subr.bf16.mxu1 %v7137_v45  ;;  %v8952_v45 = vld [vmem:[#allocation19_spill] sm:$0xff]  ;;  %v8954_v47 = vld [vmem:[#allocation21_spill] sm:$0xff] }
 0x8ab   : > { %2516 = vmatpush1.bf16.msra.mxu0 %v7143_v46  ;;  %4457 = vmatpush3.bf16.msra.mxu1 %v7149_v48  ;;  %v8948_v48 = vld [vmem:[#allocation14_spill] sm:$0xff]  ;;  %v8950_v46 = vld [vmem:[#allocation15_spill] sm:$0xff] }
 0x8ac   : > { %2517 = vmatprep.subr.bf16.mxu0 %v8930_v44  ;;  %4458 = vmatprep.subr.bf16.mxu1 %v7156_v24  ;;  %v8947_v24 = vld [vmem:[#allocation13_spill] sm:$0xff] }
 0x8af   : > { %2518 = vmatpush1.bf16.msra.mxu0 %v7162_v9  ;;  %4459 = vmatpush3.bf16.msra.mxu1 %v7168_v7  ;;  %v7181_v9 = vld [vmem:[%s8648_s5 + $0x98] sm:$0xff]  }
 0x8b0   : > { %2519 = vmatprep.subr.bf16.mxu0 %v8930_v44  ;;  %4460 = vmatprep.subr.bf16.mxu1 %v7175_v12  ;;  %8941 = vst [vmem:[#allocation75_spill] sm:$0xff] %v7181_v9  ;;  %v7187_v7 = vld [vmem:[%s8648_s5 + $0x18] sm:$0xff]   ;;  %v7194_v12 = vld [vmem:[%s8648_s5 + $0x60] sm:$0xff]  }
 0x8b1   : > { %8942 = vst [vmem:[#allocation76_spill] sm:$0xff] %v7187_v7  ;;  %8943 = vst [vmem:[#allocation77_spill] sm:$0xff] %v7194_v12 }
 0x8b3   : > { %2520 = vmatpush1.bf16.msra.mxu0 %v7181_v9  ;;  %4461 = vmatpush3.bf16.msra.mxu1 %v7187_v7  ;;  %v7200_v9 = vld [vmem:[%s8648_s5 + $0xa0] sm:$0xff]  }
 0x8b4   : > { %2521 = vmatprep.subr.bf16.mxu0 %v8930_v44  ;;  %4462 = vmatprep.subr.bf16.mxu1 %v7194_v12  ;;  %8944 = vst [vmem:[#allocation78_spill] sm:$0xff] %v7200_v9  ;;  %v7206_v7 = vld [vmem:[%s8648_s5 + $0x20] sm:$0xff]   ;;  %v7213_v12 = vld [vmem:[%s8648_s5 + $0x68] sm:$0xff]  }
 0x8b5   : > { %8945 = vst [vmem:[#allocation79_spill] sm:$0xff] %v7206_v7  ;;  %8946 = vst [vmem:[#allocation80_spill] sm:$0xff] %v7213_v12 }
 0x8b7   : > { %2522 = vmatpush1.bf16.msra.mxu0 %v7200_v9  ;;  %4463 = vmatpush3.bf16.msra.mxu1 %v7206_v7  ;;  %v8949_v9 = vld [vmem:[#allocation16_spill] sm:$0xff]  ;;  %v8951_v7 = vld [vmem:[#allocation18_spill] sm:$0xff] }
 0x8b8   : > { %2523 = vmatprep.subr.bf16.mxu0 %v8930_v44  ;;  %4464 = vmatprep.subr.bf16.mxu1 %v7213_v12 }
 0x8bb   : > { %2524 = vmatpush1.bf16.msra.mxu0 %v8947_v24  ;;  %4465 = vmatpush3.bf16.msra.mxu1 %v8948_v48  ;;  %v8955_v24 = vmov 0.0   ;;  %v8956_v48 = vld [vmem:[#allocation20_spill] sm:$0xff] }
 0x8bc   : > { %2525 = vmatprep.subr.bf16.mxu0 %v8930_v44  ;;  %4466 = vmatprep.subr.bf16.mxu1 %v8949_v9 }
 0x8bf   : > { %2526 = vmatpush1.bf16.msra.mxu0 %v8950_v46  ;;  %4467 = vmatpush3.bf16.msra.mxu1 %v8951_v7 }
 0x8c0   : > { %2527 = vmatprep.subr.bf16.mxu0 %v8930_v44  ;;  %4468 = vmatprep.subr.bf16.mxu1 %v8952_v45 }
 0x8c3   : > { %2528 = vmatpush1.bf16.msra.mxu0 %v8953_v13  ;;  %4469 = vmatpush3.bf16.msra.mxu1 %v8954_v47 }
 0x8c4   : > { %2529 = vmatprep.subr.bf16.mxu0 %v8930_v44  ;;  %4604 = vmatprep.subr.bf16.mxu1 %v8955_v24 }
 0x8c7   : > { %2530 = vmatpush1.bf16.msra.mxu0 %v8956_v48 }
 0x8c8   : > { %4624 = vmatprep.subr.bf16.mxu0 %v8955_v24 }
 0x979   : > { %v2311_v9 = vpop.f32.mrb[28].mxu1  ;;  %v2426_v46 = vpop.f32.mrb[28].mxu0 }
 0x97a   : > { %2320 = vrot.lane.b32.xlu0 %v2311_v9, %s8957_s0  ;;  %v2313_v7 = vpop.f32.mrb[29].mxu1  ;;  %v2428_v12 = vpop.f32.mrb[29].mxu0 }
 0x97b   : > { %2322 = vrot.lane.b32.xlu1 %v2313_v7, %s8957_s0  ;;  %v2315_v45 = vpop.f32.mrb[30].mxu1  ;;  %v2430_v13 = vpop.f32.mrb[30].mxu0 }
 0x97c   : > { %v2316_v42 = vpop.f32.mrb[31].mxu1  ;;  %v2431_v47 = vpop.f32.mrb[31].mxu0 }
 0x97d   : > { %v7239_v42 = vld [vmem:[%s8647_s4] ss:$0 sm:$0xff] }
 0x97e   : > { %2435 = vrot.lane.b32.xlu0 %v2426_v46, %s8957_s0  ;;  %8958 = vst [vmem:[#allocation13_spill] sm:$0xff] %v7239_v42 }
 0x97f   : > { %2437 = vrot.lane.b32.xlu1 %v2428_v12, %s8957_s0 }
 0x9ec   : > { %v2321_v44 = vpop.permute.xlu0 %2320 }
 0x9ed   : > { %v2323_v48 = vpop.permute.xlu1 %2322 }
 0x9ee   : > { %v2324_v8 = vsel %vm1340_vm10, %v2321_v44, %v2323_v48 }
 0x9ef   : > { %v2326_v35 = vmax.f32 %v2311_v9, %v2324_v8 }
 0x9f0   : > { %v2436_v38 = vpop.permute.xlu0 %2435 }
 0x9f1   : > { %v2438_v37 = vpop.permute.xlu1 %2437 }
 0x9f2   : > { %v2439_v36 = vsel %vm1340_vm10, %v2436_v38, %v2438_v37 }
 0x9f3   : > { %v2441_v16 = vmax.f32 %v2426_v46, %v2439_v36 }
 0x9f5   : > { %v2442_v61 = vmax.f32 %v2326_v35, %v2441_v16 }
 0x9f7   : > { %v2443_v7 = vadd.f32 %v7239_v42, %v2442_v61 }
 0x9f9   : > { %v2444_v45 = vmax.f32 %v2443_v7, 0.0 }
 0x9fb   : > { %v2450_v12 = vrot.slane %v2444_v45, 2  ;;  %v2446_v13 = vrot.slane %v2444_v45, 1  ;;  %v2458_v44 = vrot.slane %v2444_v45, 4  ;;  %v2454_v47 = vrot.slane %v2444_v45, 3 }
 0x9fd   : > { %2451 = vrot.lane.b32.xlu1 %v2450_v12, %s8959_s23  ;;  %2447 = vrot.lane.b32.xlu0 %v2446_v13, %s8860_s12  ;;  %v8961_v13 = vld [vmem:[#allocation29_spill] sm:$0xff] }
 0xa01   : > { %2459 = vrot.lane.b32.xlu1 %v2458_v44, %s8861_s30  ;;  %2455 = vrot.lane.b32.xlu0 %v2454_v47, %s8960_s13  ;;  %v8963_v44 = vld [vmem:[#allocation30_spill] sm:$0xff]  ;;  %v8964_v47 = vld [vmem:[#allocation23_spill] sm:$0xff] }
 0xa6f   : > { %v2452_v16 = vpop.permute.xlu1 %2451  ;;  %v2448_v35 = vpop.permute.xlu0 %2447 }
 0xa70   : > { %v2462_v36 = vsel %vm970_vm9, %v2444_v45, %v2448_v35  ;;  %v2463_v37 = vsel %vm566_vm0, %v2448_v35, %v2452_v16  ;;  %v8962_v45 = vld [vmem:[#allocation22_spill] sm:$0xff]  ;;  %v8965_v16 = vld [vmem:[#allocation31_spill] sm:$0xff]  ;;  %v8966_v35 = vld [vmem:[#allocation24_spill] sm:$0xff] }
 0xa71   : > { %v2466_v12 = vpack.c.bf16 %v2462_v36, %v2462_v36  ;;  %v8967_v36 = vld [vmem:[#allocation32_spill] sm:$0xff] }
 0xa73   : > { %v2460_v61 = vpop.permute.xlu1 %2459  ;;  %v2456_v38 = vpop.permute.xlu0 %2455 }
 0xa74   : > { %v2469_v8 = vpack.c.bf16 %v2460_v61, %v2460_v61  ;;  %v2464_v9 = vsel %vm1487_vm11, %v2463_v37, %v2456_v38  ;;  %v2465_v46 = vsel %vm568_vm1, %v2456_v38, %v2460_v61  ;;  %v7271_v37 = vld [vmem:[%s8650_s7 + $0x18] sm:$0xff]   ;;  %v8969_v61 = vld [vmem:[#allocation33_spill] sm:$0xff] }
 0xa75   : > { %v2467_v48 = vpack.c.bf16 %v2464_v9, %v2464_v9  ;;  %v2468_v7 = vpack.c.bf16 %v2465_v46, %v2465_v46  ;;  %8968 = vst [vmem:[#allocation14_spill] sm:$0xff] %v7271_v37  ;;  %v7280_v38 = vld [vmem:[%s8650_s7 + $0x20] sm:$0xff]   ;;  %v7289_v9 = vld [vmem:[%s8650_s7 + $0x28] sm:$0xff]   ;;  %v7297_v46 = vld [vmem:[%s8650_s7 + $0x30] sm:$0xff]  }
 0xa76   : > { %4365 = vmatprep.mubr.msk.bf16.mxu0 %vm1644_vm12, %v2469_v8  ;;  %8970 = vst [vmem:[#allocation16_spill] sm:$0xff] %v7280_v38  ;;  %v8971_v8 = vld [vmem:[#allocation39_spill] sm:$0xff]  ;;  %8972 = vst [vmem:[#allocation15_spill] sm:$0xff] %v7289_v9 }
 0xa77   : > { %2505 = vmatprep.mubr.bf16.mxu1 %v2467_v48  ;;  %2546 = vmatmul.mubr.bf16.vlgmr.msra.gmra.mrb[32].mxu0 %v2468_v7  ;;  %8973 = vst [vmem:[#allocation18_spill] sm:$0xff] %v7297_v46  ;;  %v8974_v48 = vld [vmem:[#allocation25_spill] sm:$0xff]  ;;  %v4370_v7 = vld [vmem:[%s5613_s15 + $0x48] sm:$0x7f] }
 0xa78   : > { %2506 = vmatmul.mubr.bf16.vlgmr.msra.gmra.mrb[32].mxu1 %v2466_v12  ;;  %4625 = vmatpush3.bf16.msra.mxu0 %v8961_v13  ;;  %v7305_v12 = vld [vmem:[%s5613_s15 + $0x50] sm:$0x7f]  ;;  %v7308_v13 = vld [vmem:[%s5613_s15 + $0x58] sm:$0x7f] }
 0xa79   : > { %4605 = vmatpush3.bf16.msra.mxu1 %v8962_v45  ;;  %4620 = vmatprep.mubr.msk.bf16.mxu1 %vm5466_vm14, %v8955_v24  ;;  %v4898_v45 = vpack.i.bf16 %v7305_v12, %v4370_v7 }
 0xa7a   : > { %4606 = vmatprep.subr.bf16.mxu1 %v8955_v24  ;;  %4626 = vmatprep.subr.bf16.mxu0 %v8955_v24 }
 0xa7b   : > { %4636 = vmatprep.mubr.msk.bf16.mxu0 %vm5466_vm14, %v8955_v24  ;;  %4899 = vrot.lane.b32.xlu0 %v4898_v45, %s8959_s23 }
 0xa7c   : > { %4627 = vmatpush3.bf16.msra.mxu0 %v8963_v44  ;;  %v4903_v44 = vpack.i.bf16 %v7308_v13, %v7305_v12 }
 0xa7d   : > { %4607 = vmatpush3.bf16.msra.mxu1 %v8964_v47  ;;  %4628 = vmatprep.subr.bf16.mxu0 %v8955_v24  ;;  %v7314_v47 = vld [vmem:[%s5613_s15 + $0x41] sm:$0x7f] }
 0xa7e   : > { %4608 = vmatprep.subr.bf16.mxu1 %v8955_v24  ;;  %4904 = vrot.lane.b32.xlu1 %v4903_v44, %s8861_s30 }
 0xa80   : > { %4629 = vmatpush3.bf16.msra.mxu0 %v8965_v16  ;;  %v4908_v16 = vpack.i.bf16 %v7314_v47, %v7308_v13 }
 0xa81   : > { %4609 = vmatpush3.bf16.msra.mxu1 %v8966_v35  ;;  %4630 = vmatprep.subr.bf16.mxu0 %v8955_v24 }
 0xa82   : > { %4610 = vmatprep.subr.bf16.mxu1 %v8955_v24  ;;  %4909 = vrot.lane.b32.xlu0 %v4908_v16, %s8868_s29 }
 0xa83   : > { %4914 = vrot.lane.b32.xlu1 %v4908_v16, %s8959_s23 }
 0xa84   : > { %4631 = vmatpush3.bf16.msra.mxu0 %v8967_v36  ;;  %v7324_v36 = vld [vmem:[%s5613_s15 + $0x51] sm:$0x7f] }
 0xa85   : > { %4611 = vmatpush3.bf16.msra.mxu1 %v7271_v37  ;;  %4632 = vmatprep.subr.bf16.mxu0 %v8955_v24 }
 0xa86   : > { %4612 = vmatprep.subr.bf16.mxu1 %v8955_v24 }
 0xa88   : > { %4633 = vmatpush3.bf16.msra.mxu0 %v8969_v61 }
 0xa89   : > { %4613 = vmatpush3.bf16.msra.mxu1 %v7280_v38  ;;  %4634 = vmatprep.subr.bf16.mxu0 %v8955_v24 }
 0xa8a   : > { %4614 = vmatprep.subr.bf16.mxu1 %v8955_v24 }
 0xa8c   : > { %4635 = vmatpush3.bf16.msra.mxu0 %v8971_v8 }
 0xa8d   : > { %4615 = vmatpush3.bf16.msra.mxu1 %v7289_v9  ;;  %2684 = vmatprep.subr.bf16.mxu0 %v8890_v63 }
 0xa8e   : > { %4616 = vmatprep.subr.bf16.mxu1 %v8955_v24 }
 0xa91   : > { %4617 = vmatpush3.bf16.msra.mxu1 %v7297_v46 }
 0xa92   : > { %4618 = vmatprep.subr.bf16.mxu1 %v8955_v24  ;;  %v8975_v24 = vld [vmem:[#allocation34_spill] sm:$0xff] }
 0xa95   : > { %4619 = vmatpush3.bf16.msra.mxu1 %v8974_v48 }
 0xa96   : > { %2753 = vmatprep.subr.bf16.mxu1 %v8890_v63  ;;  %v4375_v63 = vld [vmem:[%s5613_s15 + $0x49] sm:$0x7f] }
 0xa97   : > { %v4918_v35 = vpack.i.bf16 %v4375_v63, %v7314_v47  ;;  %v4923_v61 = vpack.i.bf16 %v7324_v36, %v4375_v63  ;;  %v2749_v2 = vpack.c.bf16 %v4375_v63, %v4375_v63 }
 0xa99   : > { %4919 = vrot.lane.b32.xlu0 %v4918_v35, %s8861_s30  ;;  %4924 = vrot.lane.b32.xlu1 %v4923_v61, %s8868_s29 }
 0xb4a   : > { %v2547_v45 = vpop.f32.mrb[32].mxu0 }
 0xb4b   : > { %v4470_v44 = vpop.f32.mrb[32].mxu1  ;;  %v2549_v48 = vpop.f32.mrb[33].mxu0 }
 0xb4c   : > { %v4471_v46 = vpop.f32.mrb[33].mxu1  ;;  %v2550_v9 = vpop.f32.mrb[34].mxu0  ;;  %v7469_v48 = vld [vmem:[%s8644_s1 + $0x80] ss:$8 sps:$4 sm:$0xff]  }
 0xb4d   : > { %v4472_v8 = vadd.f32 %v4471_v46, %v4470_v44  ;;  %v4473_v38 = vpop.f32.mrb[34].mxu1  ;;  %v2551_v37 = vpop.f32.mrb[35].mxu0  ;;  %v7457_v9 = vld [vmem:[%s8644_s1 + $0x70] ss:$8 sps:$4 sm:$0xff]   ;;  %v7463_v46 = vld [vmem:[%s8644_s1 + $0x84] ss:$8 sps:$4 sm:$0xff]  }
 0xb4e   : > { %v4474_v42 = vpop.f32.mrb[35].mxu1  ;;  %v7439_v37 = vld [vmem:[%s8644_s1 + $0x64] ss:$8 sps:$4 sm:$0xff]   ;;  %v7445_v38 = vld [vmem:[%s8644_s1 + $0x60] ss:$8 sps:$4 sm:$0xff]  }
 0xb4f   : > { %v2508_v40 = vadd.f32 %v4472_v8, %v8975_v24  ;;  %v7427_v24 = vld [vmem:[%s8644_s1 + $0x54] ss:$8 sps:$4 sm:$0xff]   ;;  %v7433_v42 = vld [vmem:[%s8644_s1 + $0x50] ss:$8 sps:$4 sm:$0xff]  }
 0xb50   : > { %v7451_v8 = vld [vmem:[%s8644_s1 + $0x74] ss:$8 sps:$4 sm:$0xff]  }
 0xb51   : > { %v2548_v49 = vadd.f32 %v2547_v45, %v2508_v40  ;;  %v7421_v40 = vld [vmem:[%s8644_s1 + $0x40] ss:$8 sps:$4 sm:$0xff]  }
 0xb53   : > { %v2553_v16 = vpack.c.bf16 %v2548_v49, %v2548_v49  ;;  %v7415_v49 = vld [vmem:[%s8644_s1 + $0x44] ss:$8 sps:$4 sm:$0xff]  }
 0xb55   : > { %4621 = vmatmul.mubr.msk.bf16.vlgmr.msra.gmra.mrb[36].mxu1 %vm1774_vm15, %v2553_v16 }
 0xb56   : > { %2754 = vmatpush1.bf16.msra.mxu1 %v6449_v22  ;;  %4376 = vmatprep.mubr.msk.bf16.mxu1 %vm566_vm0, %v2749_v2  ;;  %v7343_v22 = vpop.permute.xlu0 %4899  ;;  %v7409_v2 = vld [vmem:[%s8644_s1 + $0x30] ss:$8 sps:$4 sm:$0xff]  }
 0xb57   : > { %2755 = vmatprep.subr.bf16.mxu1 %v6456_v58  ;;  %v4902_v58 = vunpack.i.h.bf16 %v7343_v22 }
 0xb5a   : > { %2756 = vmatpush1.bf16.msra.mxu1 %v6462_v52  ;;  %v7348_v52 = vpop.permute.xlu1 %4904 }
 0xb5b   : > { %2757 = vmatprep.subr.bf16.mxu1 %v6468_v62  ;;  %v4907_v62 = vunpack.i.h.bf16 %v7348_v52 }
 0xb5e   : > { %2758 = vmatpush1.bf16.msra.mxu1 %v6474_v17  ;;  %v7353_v17 = vpop.permute.xlu0 %4909 }
 0xb5f   : > { %2759 = vmatprep.subr.bf16.mxu1 %v6480_v18  ;;  %v2745_v18 = vsel %vm566_vm0, %v4370_v7, %v4902_v58  ;;  %v7475_v7 = vpop.permute.xlu1 %4914 }
 0xb60   : > { %v4917_v63 = vunpack.i.h.bf16 %v7475_v7 }
 0xb62   : > { %2760 = vmatpush1.bf16.msra.mxu1 %v6486_v59  ;;  %v4912_v59 = vunpack.i.h.bf16 %v7353_v17  ;;  %v2883_v35 = vsel %vm566_vm0, %v7308_v13, %v4917_v63  ;;  %v7480_v61 = vpop.permute.xlu0 %4919  ;;  %v8976_v13 = vld [vmem:[#allocation35_spill] sm:$0xff] }
 0xb63   : > { %2761 = vmatprep.subr.bf16.mxu1 %v6492_v5  ;;  %v2746_v5 = vsel %vm568_vm1, %v2745_v18, %v4907_v62  ;;  %v4922_v45 = vunpack.i.h.bf16 %v7480_v61  ;;  %v7483_v44 = vpop.permute.xlu1 %4924  ;;  %v4379_v62 = vld [vmem:[%s5613_s15 + $0x59] sm:$0x7f] }
 0xb64   : > { %v4927_v16 = vunpack.i.h.bf16 %v7483_v44  ;;  %v2887_v18 = vpack.c.bf16 %v4379_v62, %v4379_v62 }
 0xb66   : > { %2762 = vmatpush1.bf16.msra.mxu1 %v6498_v11  ;;  %v7367_v11 = vld [vmem:[%s8644_s1 + $0x4] ss:$8 sps:$4 sm:$0xff]  }
 0xb67   : > { %2763 = vmatprep.subr.bf16.mxu1 %v6504_v21  ;;  %v7379_v21 = vld [vmem:[%s8644_s1 + $0x14] ss:$8 sps:$4 sm:$0xff]  }
 0xb6a   : > { %2764 = vmatpush1.bf16.msra.mxu1 %v6512_v56  ;;  %v7385_v56 = vld [vmem:[%s8644_s1 + $0x10] ss:$8 sps:$4 sm:$0xff]  }
 0xb6b   : > { %2765 = vmatprep.subr.bf16.mxu1 %v6518_v0  ;;  %v7391_v0 = vld [vmem:[%s8644_s1 + $0x24] ss:$8 sps:$4 sm:$0xff]  }
 0xb6e   : > { %2766 = vmatpush1.bf16.msra.mxu1 %v6527_v55  ;;  %v2747_v55 = vsel %vm570_vm2, %v2746_v5, %v4912_v59  ;;  %v8977_v5 = vld [vmem:[#allocation36_spill] sm:$0xff] }
 0xb6f   : > { %2767 = vmatprep.subr.bf16.mxu1 %v6533_v60  ;;  %v2748_v60 = vpack.c.bf16 %v2747_v55, %v2747_v55  ;;  %v8978_v55 = vld [vmem:[#allocation40_spill] sm:$0xff] }
 0xb72   : > { %2768 = vmatpush1.bf16.msra.mxu1 %v6544_v57  ;;  %v7373_v57 = vld [vmem:[%s8644_s1] ss:$8 sps:$4 sm:$0xff]  }
 0xb73   : > { %2769 = vmatprep.subr.bf16.mxu1 %v8884_v39  ;;  %v7397_v39 = vld [vmem:[%s8644_s1 + $0x20] ss:$8 sps:$4 sm:$0xff]  }
 0xb76   : > { %2770 = vmatpush1.bf16.msra.mxu1 %v8885_v41  ;;  %v7403_v41 = vld [vmem:[%s8644_s1 + $0x34] ss:$8 sps:$4 sm:$0xff]  }
 0xb77   : > { %2771 = vmatprep.subr.bf16.mxu1 %v8886_v43 }
 0xb7a   : > { %2772 = vmatpush1.bf16.msra.mxu1 %v8889_v50 }
 0xb7b   : > { %2891 = vmatprep.subr.bf16.mxu1 %v7367_v11 }
 0xb7d   : > { %2786 = vmatmul.mubr.bf16.vlgmr.msra.gmra.mrb[40].mxu1 %v2748_v60 }
 0xb7e   : > { %2892 = vmatpush1.bf16.msra.mxu1 %v7373_v57  ;;  %4380 = vmatprep.mubr.msk.bf16.mxu1 %vm566_vm0, %v2887_v18  ;;  %v8981_v18 = vld [vmem:[#allocation38_spill] sm:$0xff] }
 0xb7f   : > { %2893 = vmatprep.subr.bf16.mxu1 %v7379_v21 }
 0xb82   : > { %2894 = vmatpush1.bf16.msra.mxu1 %v7385_v56 }
 0xb83   : > { %2895 = vmatprep.subr.bf16.mxu1 %v7391_v0 }
 0xb86   : > { %2896 = vmatpush1.bf16.msra.mxu1 %v7397_v39 }
 0xb87   : > { %2897 = vmatprep.subr.bf16.mxu1 %v7403_v41 }
 0xb8a   : > { %2898 = vmatpush1.bf16.msra.mxu1 %v7409_v2 }
 0xb8b   : > { %2899 = vmatprep.subr.bf16.mxu1 %v7415_v49 }
 0xb8e   : > { %2900 = vmatpush1.bf16.msra.mxu1 %v7421_v40 }
 0xb8f   : > { %2901 = vmatprep.subr.bf16.mxu1 %v7427_v24 }
 0xb92   : > { %2902 = vmatpush1.bf16.msra.mxu1 %v7433_v42 }
 0xb93   : > { %2903 = vmatprep.subr.bf16.mxu1 %v7439_v37 }
 0xb96   : > { %2904 = vmatpush1.bf16.msra.mxu1 %v7445_v38 }
 0xb97   : > { %2905 = vmatprep.subr.bf16.mxu1 %v7451_v8 }
 0xb9a   : > { %2906 = vmatpush1.bf16.msra.mxu1 %v7457_v9 }
 0xb9b   : > { %2907 = vmatprep.subr.bf16.mxu1 %v7463_v46 }
 0xb9e   : > { %2908 = vmatpush1.bf16.msra.mxu1 %v7469_v48 }
 0xb9f   : > { %2909 = vmatprep.subr.bf16.mxu1 %v8886_v43  ;;  %v2884_v43 = vsel %vm568_vm1, %v2883_v35, %v4922_v45 }
 0xba2   : > { %2910 = vmatpush1.bf16.msra.mxu1 %v8889_v50  ;;  %v2885_v50 = vsel %vm570_vm2, %v2884_v43, %v4927_v16  ;;  %v8979_v43 = vld [vmem:[#allocation37_spill] sm:$0xff] }
 0xba3   : > { %3090 = vmatprep.subr.bf16.mxu1 %v6724_v19  ;;  %v2886_v58 = vpack.c.bf16 %v2885_v50, %v2885_v50  ;;  %v2680_v50 = vpack.c.bf16 %v7314_v47, %v7314_v47  ;;  %v8984_v47 = vld [vmem:[#allocation41_spill] sm:$0xff] }
 0xba5   : > { %2924 = vmatmul.mubr.bf16.vlgmr.msra.gmra.mrb[44].mxu1 %v2886_v58  ;;  %v8980_v58 = vld [vmem:[#allocation28_spill] sm:$0xff] }
 0xba6   : > { %3091 = vmatpush1.bf16.msra.mxu1 %v6730_v20 }
 0xba7   : > { %3092 = vmatprep.subr.bf16.mxu1 %v6736_v54 }
 0xbaa   : > { %3093 = vmatpush1.bf16.msra.mxu1 %v6742_v1 }
 0xbab   : > { %3094 = vmatprep.subr.bf16.mxu1 %v6748_v53 }
 0xbae   : > { %3095 = vmatpush1.bf16.msra.mxu1 %v6754_v3 }
 0xbaf   : > { %3096 = vmatprep.subr.bf16.mxu1 %v6760_v15 }
 0xbb2   : > { %3097 = vmatpush1.bf16.msra.mxu1 %v6766_v14 }
 0xbb3   : > { %3098 = vmatprep.subr.bf16.mxu1 %v6772_v51 }
 0xbb6   : > { %3099 = vmatpush1.bf16.msra.mxu1 %v6778_v4 }
 0xbb7   : > { %3100 = vmatprep.subr.bf16.mxu1 %v6784_v6 }
 0xbba   : > { %3101 = vmatpush1.bf16.msra.mxu1 %v6790_v23 }
 0xbbb   : > { %3102 = vmatprep.subr.bf16.mxu1 %v6796_v10 }
 0xbbe   : > { %3103 = vmatpush1.bf16.msra.mxu1 %v6802_v25 }
 0xbbf   : > { %3104 = vmatprep.subr.bf16.mxu1 %v6808_v26 }
 0xbc2   : > { %3105 = vmatpush1.bf16.msra.mxu1 %v6814_v27 }
 0xbc3   : > { %3106 = vmatprep.subr.bf16.mxu1 %v6820_v28 }
 0xbc6   : > { %3107 = vmatpush1.bf16.msra.mxu1 %v6826_v29 }
 0xbc7   : > { %3108 = vmatprep.subr.bf16.mxu1 %v6832_v30 }
 0xbca   : > { %3109 = vmatpush1.bf16.msra.mxu1 %v6838_v31 }
 0xbcb   : > { %3110 = vmatprep.subr.bf16.mxu1 %v6844_v32 }
 0xbce   : > { %3111 = vmatpush1.bf16.msra.mxu1 %v6850_v33 }
 0xbcf   : > { %3112 = vmatprep.subr.bf16.mxu1 %v6856_v34 }
 0xbd2   : > { %3113 = vmatpush1.bf16.msra.mxu1 %v8976_v13 }
 0xbd3   : > { %3114 = vmatprep.subr.bf16.mxu1 %v8977_v5 }
 0xbd6   : > { %3115 = vmatpush1.bf16.msra.mxu1 %v8979_v43 }
 0xbd7   : > { %3116 = vmatprep.subr.bf16.mxu1 %v8980_v58 }
 0xbda   : > { %3117 = vmatpush1.bf16.msra.mxu1 %v8981_v18 }
 0xc28   : > { %v2591_v59 = vpop.f32.mrb[36].mxu1 }
 0xc29   : > { %v2592_v60 = vadd.f32 %v2591_v59, %v8978_v55  ;;  %v4622_v63 = vpop.f32.mrb[37].mxu1  ;;  %v8982_v59 = vld [vmem:[#allocation26_spill] sm:$0xff]  ;;  %v8983_v55 = vld [vmem:[#allocation27_spill] sm:$0xff] }
 0xc2a   : > { %v2594_v35 = vpop.f32.mrb[38].mxu1  ;;  %3118 = vmatprep.subr.bf16.mxu1 %v8982_v59  ;;  %v8986_v63 = vld [vmem:[#allocation43_spill] sm:$0xff] }
 0xc2b   : > { %v2597_v45 = vmax.f32 %v2592_v60, 0.0  ;;  %v4623_v16 = vpop.f32.mrb[39].mxu1  ;;  %3119 = vmatpush1.bf16.msra.mxu1 %v8983_v55  ;;  %v8985_v60 = vld [vmem:[#allocation42_spill] sm:$0xff]  ;;  %v4901_v35 = vunpack.i.l.bf16 %v7343_v22 }
 0xc2c   : > { %3120 = vmatprep.subr.bf16.mxu1 %v8984_v47  ;;  %v4906_v16 = vunpack.i.l.bf16 %v7348_v52  ;;  %v7556_v52 = vld [vmem:[%s8644_s1 + $0x94] ss:$8 sps:$4 sm:$0xff]  }
 0xc2d   : > { %v2598_v62 = vpack.c.bf16 %v2597_v45, %v2597_v45  ;;  %v4369_v45 = vld [vmem:[%s5613_s15 + $0x40] sm:$0x7f] }
 0xc2f   : > { %4637 = vmatmul.mubr.msk.bf16.vlgmr.msra.gmra.mrb[36].mxu0 %vm964_vm5, %v2598_v62  ;;  %3121 = vmatpush1.bf16.msra.mxu1 %v8985_v60  ;;  %v4911_v62 = vunpack.i.l.bf16 %v7353_v17 }
 0xc30   : > { %2685 = vmatpush1.bf16.msra.mxu0 %v7373_v57  ;;  %4374 = vmatprep.mubr.msk.bf16.mxu0 %vm566_vm0, %v2680_v50  ;;  %v2676_v50 = vsel %vm566_vm0, %v4369_v45, %v4901_v35 }
 0xc31   : > { %2686 = vmatprep.subr.bf16.mxu0 %v7379_v21  ;;  %3131 = vmatprep.subr.bf16.mxu1 %v8986_v63  ;;  %v2677_v63 = vsel %vm568_vm1, %v2676_v50, %v4906_v16  ;;  %v2818_v16 = vpack.c.bf16 %v7324_v36, %v7324_v36  ;;  %v7567_v50 = vld [vmem:[%s8644_s1 + $0x90] ss:$8 sps:$4 sm:$0xff]   ;;  %v4916_v36 = vunpack.i.l.bf16 %v7475_v7 }
 0xc32   : > { %v2678_v60 = vsel %vm570_vm2, %v2677_v63, %v4911_v62 }
 0xc33   : > { %v2679_v45 = vpack.c.bf16 %v2678_v60, %v2678_v60  ;;  %v4921_v60 = vunpack.i.l.bf16 %v7480_v61  ;;  %v2814_v62 = vsel %vm566_vm0, %v7305_v12, %v4916_v36 }
 0xc34   : > { %2687 = vmatpush1.bf16.msra.mxu0 %v7385_v56 }
 0xc35   : > { %2688 = vmatprep.subr.bf16.mxu0 %v7391_v0 }
 0xc38   : > { %2689 = vmatpush1.bf16.msra.mxu0 %v7397_v39 }
 0xc39   : > { %2690 = vmatprep.subr.bf16.mxu0 %v7403_v41 }
 0xc3c   : > { %2691 = vmatpush1.bf16.msra.mxu0 %v7409_v2 }
 0xc3d   : > { %2692 = vmatprep.subr.bf16.mxu0 %v7415_v49 }
 0xc40   : > { %2693 = vmatpush1.bf16.msra.mxu0 %v7421_v40 }
 0xc41   : > { %2694 = vmatprep.subr.bf16.mxu0 %v7427_v24 }
 0xc44   : > { %2695 = vmatpush1.bf16.msra.mxu0 %v7433_v42 }
 0xc45   : > { %2696 = vmatprep.subr.bf16.mxu0 %v7439_v37 }
 0xc48   : > { %2697 = vmatpush1.bf16.msra.mxu0 %v7445_v38 }
 0xc49   : > { %2698 = vmatprep.subr.bf16.mxu0 %v7451_v8 }
 0xc4c   : > { %2699 = vmatpush1.bf16.msra.mxu0 %v7457_v9 }
 0xc4d   : > { %2700 = vmatprep.subr.bf16.mxu0 %v7463_v46 }
 0xc50   : > { %2701 = vmatpush1.bf16.msra.mxu0 %v7469_v48  ;;  %v7551_v22 = vpop.f32.mrb[40].mxu1 }
 0xc51   : > { %2702 = vmatprep.subr.bf16.mxu0 %v7556_v52  ;;  %v2789_v17 = vpop.f32.mrb[41].mxu1  ;;  %2796 = vrot.lane.b32.xlu0 %v7551_v22, %s8887_s24 }
 0xc52   : > { %2798 = vrot.lane.b32.xlu1 %v2789_v17, %s8887_s24  ;;  %v2791_v35 = vpop.f32.mrb[42].mxu1  ;;  %v4926_v17 = vunpack.i.l.bf16 %v7483_v44 }
 0xc53   : > { %v2792_v63 = vpop.f32.mrb[43].mxu1  ;;  %v2815_v35 = vsel %vm568_vm1, %v2814_v62, %v4921_v60 }
 0xc54   : > { %2703 = vmatpush1.bf16.msra.mxu0 %v7567_v50  ;;  %v2816_v7 = vsel %vm570_vm2, %v2815_v35, %v4926_v17 }
 0xc55   : > { %2822 = vmatprep.subr.bf16.mxu0 %v7367_v11  ;;  %v2817_v61 = vpack.c.bf16 %v2816_v7, %v2816_v7 }
 0xc57   : > { %2717 = vmatmul.mubr.bf16.vlgmr.msra.gmra.mrb[40].mxu0 %v2679_v45 }
 0xc58   : > { %2823 = vmatpush1.bf16.msra.mxu0 %v7373_v57  ;;  %4378 = vmatprep.mubr.msk.bf16.mxu0 %vm566_vm0, %v2818_v16 }
 0xc59   : > { %2824 = vmatprep.subr.bf16.mxu0 %v7379_v21 }
 0xc5c   : > { %2825 = vmatpush1.bf16.msra.mxu0 %v7385_v56 }
 0xc5d   : > { %2826 = vmatprep.subr.bf16.mxu0 %v7391_v0 }
 0xc60   : > { %2827 = vmatpush1.bf16.msra.mxu0 %v7397_v39 }
 0xc61   : > { %2828 = vmatprep.subr.bf16.mxu0 %v7403_v41 }
 0xc64   : > { %2829 = vmatpush1.bf16.msra.mxu0 %v7409_v2 }
 0xc65   : > { %2830 = vmatprep.subr.bf16.mxu0 %v7415_v49 }
 0xc68   : > { %2831 = vmatpush1.bf16.msra.mxu0 %v7421_v40 }
 0xc69   : > { %2832 = vmatprep.subr.bf16.mxu0 %v7427_v24 }
 0xc6c   : > { %2833 = vmatpush1.bf16.msra.mxu0 %v7433_v42 }
 0xc6d   : > { %2834 = vmatprep.subr.bf16.mxu0 %v7439_v37 }
 0xc70   : > { %2835 = vmatpush1.bf16.msra.mxu0 %v7445_v38 }
 0xc71   : > { %2836 = vmatprep.subr.bf16.mxu0 %v7451_v8 }
 0xc74   : > { %2837 = vmatpush1.bf16.msra.mxu0 %v7457_v9 }
 0xc75   : > { %2838 = vmatprep.subr.bf16.mxu0 %v7463_v46 }
 0xc78   : > { %2839 = vmatpush1.bf16.msra.mxu0 %v7469_v48 }
 0xc79   : > { %2840 = vmatprep.subr.bf16.mxu0 %v7556_v52 }
 0xc7c   : > { %2841 = vmatpush1.bf16.msra.mxu0 %v7567_v50 }
 0xc7d   : > { %2975 = vmatprep.subr.bf16.mxu0 %v6724_v19  ;;  %v8987_v19 = vld [vmem:[#allocation42_spill] sm:$0xff] }
 0xc7f   : > { %2855 = vmatmul.mubr.bf16.vlgmr.msra.gmra.mrb[44].mxu0 %v2817_v61 }
 0xc80   : > { %2976 = vmatpush1.bf16.msra.mxu0 %v6730_v20  ;;  %v8988_v20 = vld [vmem:[#allocation43_spill] sm:$0xff] }
 0xc81   : > { %2977 = vmatprep.subr.bf16.mxu0 %v6736_v54  ;;  %v2925_v54 = vpop.f32.mrb[44].mxu1 }
 0xc84   : > { %2978 = vmatpush1.bf16.msra.mxu0 %v6742_v1  ;;  %v2927_v1 = vpop.f32.mrb[45].mxu1 }
 0xc85   : > { %2979 = vmatprep.subr.bf16.mxu0 %v6748_v53  ;;  %v2929_v53 = vpop.f32.mrb[46].mxu1 }
 0xc88   : > { %2980 = vmatpush1.bf16.msra.mxu0 %v6754_v3  ;;  %v2930_v3 = vpop.f32.mrb[47].mxu1 }
 0xc89   : > { %2981 = vmatprep.subr.bf16.mxu0 %v6760_v15 }
 0xc8c   : > { %2982 = vmatpush1.bf16.msra.mxu0 %v6766_v14 }
 0xc8d   : > { %2983 = vmatprep.subr.bf16.mxu0 %v6772_v51 }
 0xc90   : > { %2984 = vmatpush1.bf16.msra.mxu0 %v6778_v4 }
 0xc91   : > { %2985 = vmatprep.subr.bf16.mxu0 %v6784_v6 }
 0xc94   : > { %2986 = vmatpush1.bf16.msra.mxu0 %v6790_v23 }
 0xc95   : > { %2987 = vmatprep.subr.bf16.mxu0 %v6796_v10 }
 0xc98   : > { %2988 = vmatpush1.bf16.msra.mxu0 %v6802_v25 }
 0xc99   : > { %2989 = vmatprep.subr.bf16.mxu0 %v6808_v26 }
 0xc9c   : > { %2990 = vmatpush1.bf16.msra.mxu0 %v6814_v27 }
 0xc9d   : > { %2991 = vmatprep.subr.bf16.mxu0 %v6820_v28 }
 0xca0   : > { %2992 = vmatpush1.bf16.msra.mxu0 %v6826_v29 }
 0xca1   : > { %2993 = vmatprep.subr.bf16.mxu0 %v6832_v30 }
 0xca4   : > { %2994 = vmatpush1.bf16.msra.mxu0 %v6838_v31 }
 0xca5   : > { %2995 = vmatprep.subr.bf16.mxu0 %v6844_v32 }
 0xca8   : > { %2996 = vmatpush1.bf16.msra.mxu0 %v6850_v33 }
 0xca9   : > { %2997 = vmatprep.subr.bf16.mxu0 %v6856_v34 }
 0xcac   : > { %2998 = vmatpush1.bf16.msra.mxu0 %v8976_v13 }
 0xcad   : > { %2999 = vmatprep.subr.bf16.mxu0 %v8977_v5 }
 0xcb0   : > { %3000 = vmatpush1.bf16.msra.mxu0 %v8979_v43 }
 0xcb1   : > { %3001 = vmatprep.subr.bf16.mxu0 %v8980_v58 }
 0xcb4   : > { %3002 = vmatpush1.bf16.msra.mxu0 %v8981_v18 }
 0xcb5   : > { %3003 = vmatprep.subr.bf16.mxu0 %v8982_v59 }
 0xcb8   : > { %3004 = vmatpush1.bf16.msra.mxu0 %v8983_v55  ;;  %v8990_v55 = vld [vmem:[#allocation45_spill] sm:$0xff] }
 0xcb9   : > { %3005 = vmatprep.subr.bf16.mxu0 %v8984_v47 }
 0xcbc   : > { %3006 = vmatpush1.bf16.msra.mxu0 %v8987_v19 }
 0xcbd   : > { %3016 = vmatprep.subr.bf16.mxu0 %v8988_v20 }
 0xcc3   : > { %v2797_v30 = vpop.permute.xlu0 %2796 }
 0xcc4   : > { %v2799_v31 = vpop.permute.xlu1 %2798 }
 0xcc5   : > { %v2800_v32 = vsel %vm724_vm3, %v2797_v30, %v2799_v31 }
 0xcc6   : > { %v2802_v44 = vmax.f32 %v7551_v22, %v2800_v32 }
 0xd02   : > { %v7631_v15 = vpop.f32.mrb[36].mxu0 }
 0xd03   : > { %8989 = vst [vmem:[#allocation19_spill] sm:$0xff] %v7631_v15  ;;  %v4638_v14 = vpop.f32.mrb[37].mxu0  ;;  %v5336_v15 = vld [vmem:[%s8644_s1 + $0x44] ss:$8 sps:$4 sm:$0xff]  }
 0xd04   : > { %v2639_v51 = vpop.f32.mrb[38].mxu0 }
 0xd05   : > { %v4639_v4 = vpop.f32.mrb[39].mxu0 }
 0xd2a   : > { %v2718_v6 = vpop.f32.mrb[40].mxu0 }
 0xd2b   : > { %v2720_v23 = vpop.f32.mrb[41].mxu0  ;;  %2727 = vrot.lane.b32.xlu0 %v2718_v6, %s8887_s24 }
 0xd2c   : > { %v2722_v10 = vpop.f32.mrb[42].mxu0  ;;  %2729 = vrot.lane.b32.xlu1 %v2720_v23, %s8887_s24 }
 0xd2d   : > { %v2723_v25 = vpop.f32.mrb[43].mxu0 }
 0xd52   : > { %v2856_v26 = vpop.f32.mrb[44].mxu0 }
 0xd53   : > { %v2858_v27 = vpop.f32.mrb[45].mxu0  ;;  %2865 = vrot.lane.b32.xlu0 %v2856_v26, %s8887_s24 }
 0xd54   : > { %v2860_v28 = vpop.f32.mrb[46].mxu0  ;;  %2867 = vrot.lane.b32.xlu1 %v2858_v27, %s8887_s24 }
 0xd55   : > { %v2861_v29 = vpop.f32.mrb[47].mxu0 }
 0xd57   : > { %2934 = vrot.lane.b32.xlu0 %v2925_v54, %s8887_s24 }
 0xd58   : > { %2936 = vrot.lane.b32.xlu1 %v2927_v1, %s8887_s24 }
 0xd9d   : > { %v2728_v33 = vpop.permute.xlu0 %2727 }
 0xd9e   : > { %v2730_v34 = vpop.permute.xlu1 %2729 }
 0xd9f   : > { %v2731_v12 = vsel %vm724_vm3, %v2728_v33, %v2730_v34 }
 0xda0   : > { %v2733_v13 = vmax.f32 %v2718_v6, %v2731_v12 }
 0xda2   : > { %v2941_v5 = vmax.f32 %v2733_v13, %v2802_v44 }
 0xda4   : > { %v2942_v47 = vadd.f32 %v8990_v55, %v2941_v5 }
 0xda6   : > { %v2943_v60 = vmax.f32 %v2942_v47, 0.0  ;;  %v8993_v47 = vld [vmem:[#allocation48_spill] sm:$0xff] }
 0xda8   : > { %v2952_v22 = vrot.slane %v2943_v60, 1  ;;  %v2960_v20 = vrot.slane %v2943_v60, 2 }
 0xdc5   : > { %v2866_v43 = vpop.permute.xlu0 %2865 }
 0xdc6   : > { %v2868_v58 = vpop.permute.xlu1 %2867 }
 0xdc7   : > { %v2869_v18 = vsel %vm724_vm3, %v2866_v43, %v2868_v58 }
 0xdc8   : > { %v2871_v16 = vmax.f32 %v2856_v26, %v2869_v18 }
 0xdc9   : > { %v2935_v59 = vpop.permute.xlu0 %2934 }
 0xdca   : > { %v2937_v45 = vpop.permute.xlu1 %2936 }
 0xdcb   : > { %v2938_v63 = vsel %vm724_vm3, %v2935_v59, %v2937_v45  ;;  %v8991_v59 = vld [vmem:[#allocation46_spill] sm:$0xff]  ;;  %v8994_v45 = vld [vmem:[#allocation49_spill] sm:$0xff] }
 0xdcc   : > { %v2940_v36 = vmax.f32 %v2925_v54, %v2938_v63  ;;  %v8995_v63 = vld [vmem:[#allocation50_spill] sm:$0xff] }
 0xdce   : > { %v2944_v62 = vmax.f32 %v2871_v16, %v2940_v36  ;;  %v8996_v16 = vld [vmem:[#allocation51_spill] sm:$0xff]  ;;  %v8997_v36 = vld [vmem:[#allocation52_spill] sm:$0xff] }
 0xdd0   : > { %v2945_v17 = vadd.f32 %v8990_v55, %v2944_v62  ;;  %v8992_v55 = vld [vmem:[#allocation47_spill] sm:$0xff]  ;;  %v8999_v62 = vld [vmem:[#allocation54_spill] sm:$0xff] }
 0xdd2   : > { %v2946_v35 = vmax.f32 %v2945_v17, 0.0  ;;  %v9000_v17 = vld [vmem:[#allocation55_spill] sm:$0xff] }
 0xdd4   : > { %v4928_v7 = vpack.i.bf16 %v2952_v22, %v2946_v35  ;;  %v2956_v61 = vrot.slane %v2946_v35, 1  ;;  %v3075_v1 = vrot.slane %v2946_v35, 2 }
 0xdd6   : > { %4929 = vrot.lane.b32.xlu0 %v4928_v7, %s8904_s25  ;;  %v4933_v19 = vpack.i.bf16 %v2956_v61, %v2952_v22  ;;  %v4938_v53 = vpack.i.bf16 %v2960_v20, %v2956_v61  ;;  %v4943_v3 = vpack.i.bf16 %v3075_v1, %v2960_v20  ;;  %v9002_v22 = vld [vmem:[#allocation57_spill] sm:$0xff]  ;;  %v9003_v7 = vld [vmem:[#allocation58_spill] sm:$0xff]  ;;  %v9004_v61 = vld [vmem:[#allocation59_spill] sm:$0xff] }
 0xdd7   : > { %v9006_v20 = vld [vmem:[#allocation61_spill] sm:$0xff]  ;;  %v9007_v1 = vld [vmem:[#allocation62_spill] sm:$0xff] }
 0xdd8   : > { %4934 = vrot.lane.b32.xlu1 %v4933_v19, %s8905_s22  ;;  %v9005_v19 = vld [vmem:[#allocation60_spill] sm:$0xff] }
 0xdda   : > { %4939 = vrot.lane.b32.xlu0 %v4938_v53, %s8906_s14  ;;  %v9008_v53 = vld [vmem:[#allocation63_spill] sm:$0xff] }
 0xddc   : > { %4944 = vrot.lane.b32.xlu1 %v4943_v3, %s8860_s12  ;;  %v9009_v3 = vld [vmem:[#allocation64_spill] sm:$0xff] }
 0xe48   : > { %v4930_v54 = vpop.permute.xlu0 %4929 }
 0xe49   : > { %v4932_v14 = vunpack.i.h.bf16 %v4930_v54  ;;  %v4931_v51 = vunpack.i.l.bf16 %v4930_v54  ;;  %v9010_v54 = vld [vmem:[#allocation11_spill] sm:$0xff] }
 0xe4a   : > { %v4935_v4 = vpop.permute.xlu1 %4934 }
 0xe4b   : > { %v4937_v6 = vunpack.i.h.bf16 %v4935_v4  ;;  %v4936_v23 = vunpack.i.l.bf16 %v4935_v4  ;;  %v3079_v29 = vsel %vm964_vm5, %v2946_v35, %v4932_v14  ;;  %v2964_v30 = vsel %vm964_vm5, %v2943_v60, %v4931_v51  ;;  %v8998_v60 = vld [vmem:[#allocation53_spill] sm:$0xff]  ;;  %v9001_v35 = vld [vmem:[#allocation56_spill] sm:$0xff] }
 0xe4c   : > { %v7650_v10 = vpop.permute.xlu0 %4939  ;;  %v3083_v5 = vpack.c.bf16 %v3079_v29, %v3079_v29  ;;  %v2968_v43 = vpack.c.bf16 %v2964_v30, %v2964_v30  ;;  %v9011_v4 = vld [vmem:[#allocation12_spill] sm:$0xff]  ;;  %v9015_v29 = vld [vmem:[#allocation67_spill] sm:$0xff]  ;;  %v9018_v30 = vld [vmem:[#allocation70_spill] sm:$0xff] }
 0xe4d   : > { %v3080_v25 = vsel %vm966_vm4, %v4932_v14, %v4937_v6  ;;  %v2965_v26 = vsel %vm966_vm4, %v4931_v51, %v4936_v23  ;;  %v4942_v27 = vunpack.i.h.bf16 %v7650_v10  ;;  %v4941_v28 = vunpack.i.l.bf16 %v7650_v10 }
 0xe4e   : > { %v4945_v31 = vpop.permute.xlu1 %4944  ;;  %v9012_v10 = vmov 0  }
 0xe4f   : > { %v4947_v32 = vunpack.i.h.bf16 %v4945_v31  ;;  %v4946_v33 = vunpack.i.l.bf16 %v4945_v31  ;;  %v2966_v34 = vsel %vm968_vm6, %v2965_v26, %v4941_v28  ;;  %v3081_v12 = vsel %vm968_vm6, %v3080_v25, %v4942_v27  ;;  %v9013_v25 = vld [vmem:[#allocation65_spill] sm:$0xff]  ;;  %v9014_v26 = vld [vmem:[#allocation66_spill] sm:$0xff]  ;;  %v9019_v31 = vld [vmem:[#allocation71_spill] sm:$0xff] }
 0xe50   : > { %v2969_v44 = vpack.c.bf16 %v2966_v34, %v2966_v34  ;;  %v3084_v13 = vpack.c.bf16 %v3081_v12, %v3081_v12  ;;  %v9022_v34 = vld [vmem:[#allocation74_spill] sm:$0xff]  ;;  %v9023_v12 = vld [vmem:[#allocation75_spill] sm:$0xff] }
 0xe51   : > { %v3086_v58 = vpack.c.bf16 %v4947_v32, %v4947_v32  ;;  %v2971_v18 = vpack.c.bf16 %v4946_v33, %v4946_v33  ;;  %v3082_v14 = vsel %vm970_vm9, %v4942_v27, %v4947_v32  ;;  %v2967_v51 = vsel %vm970_vm9, %v4941_v28, %v4946_v33  ;;  %v9016_v27 = vld [vmem:[#allocation68_spill] sm:$0xff]  ;;  %v9017_v28 = vld [vmem:[#allocation69_spill] sm:$0xff] }
 0xe52   : > { %3007 = vmatprep.mubr.bf16.mxu0 %v2969_v44  ;;  %3122 = vmatprep.mubr.bf16.mxu1 %v3084_v13  ;;  %v3085_v6 = vpack.c.bf16 %v3082_v14, %v3082_v14  ;;  %v2970_v23 = vpack.c.bf16 %v2967_v51, %v2967_v51  ;;  %v9020_v32 = vld [vmem:[#allocation72_spill] sm:$0xff]  ;;  %v9021_v33 = vld [vmem:[#allocation73_spill] sm:$0xff] }
 0xe53   : > { %3008 = vmatmul.mubr.bf16.vlgmr.msra.gmra.mrb[48].mxu0 %v2968_v43  ;;  %3123 = vmatmul.mubr.bf16.vlgmr.msra.gmra.mrb[48].mxu1 %v3083_v5  ;;  %v9024_v44 = vld [vmem:[#allocation76_spill] sm:$0xff]  ;;  %v9025_v13 = vld [vmem:[#allocation77_spill] sm:$0xff]  ;;  %v9026_v5 = vld [vmem:[#allocation78_spill] sm:$0xff] }
 0xe54   : > { %3017 = vmatpush1.bf16.msra.mxu0 %v8991_v59  ;;  %3132 = vmatpush1.bf16.msra.mxu1 %v8991_v59  ;;  %v9027_v43 = vld [vmem:[#allocation79_spill] sm:$0xff]  ;;  %v7739_v59 = vld [vmem:[%s8648_s5 + $0x28] sm:$0xff]  }
 0xe55   : > { %4382 = vmatprep.mubr.msk.bf16.mxu0 %vm1241_vm7, %v2971_v18  ;;  %4384 = vmatprep.mubr.msk.bf16.mxu1 %vm1241_vm7, %v3086_v58  ;;  %v9028_v58 = vld [vmem:[#allocation80_spill] sm:$0xff]  ;;  %v7733_v18 = vld [vmem:[%s8648_s5 + $0xa8] sm:$0xff]   ;;  %9030 = vst [vmem:[#allocation21_spill] sm:$0xff] %v7739_v59 }
 0xe56   : > { %3018 = vmatprep.subr.bf16.mxu0 %v8992_v55  ;;  %3133 = vmatprep.subr.bf16.mxu1 %v8992_v55  ;;  %9029 = vst [vmem:[#allocation17_spill] sm:$0xff] %v7733_v18  ;;  %v7746_v55 = vld [vmem:[%s8648_s5 + $0x70] sm:$0xff]  }
 0xe57   : > { %9031 = vst [vmem:[#allocation20_spill] sm:$0xff] %v7746_v55 }
 0xe58   : > { %3019 = vmatpush1.bf16.msra.mxu0 %v8993_v47  ;;  %3134 = vmatpush1.bf16.msra.mxu1 %v8993_v47  ;;  %v7752_v47 = vld [vmem:[%s8648_s5 + $0xb0] sm:$0xff]  }
 0xe59   : > { %3020 = vmatprep.subr.bf16.mxu0 %v8994_v45  ;;  %3135 = vmatprep.subr.bf16.mxu1 %v8994_v45  ;;  %9032 = vst [vmem:[#allocation29_spill] sm:$0xff] %v7752_v47  ;;  %v7758_v45 = vld [vmem:[%s8648_s5 + $0x30] sm:$0xff]  }
 0xe5a   : > { %9033 = vst [vmem:[#allocation22_spill] sm:$0xff] %v7758_v45 }
 0xe5c   : > { %3021 = vmatpush1.bf16.msra.mxu0 %v8995_v63  ;;  %3136 = vmatpush1.bf16.msra.mxu1 %v8995_v63  ;;  %v7765_v63 = vld [vmem:[%s8648_s5 + $0x78] sm:$0xff]  }
 0xe5d   : > { %3022 = vmatprep.subr.bf16.mxu0 %v8996_v16  ;;  %3137 = vmatprep.subr.bf16.mxu1 %v8996_v16  ;;  %9034 = vst [vmem:[#allocation30_spill] sm:$0xff] %v7765_v63  ;;  %v7771_v16 = vld [vmem:[%s8648_s5 + $0xb8] sm:$0xff]  }
 0xe5e   : > { %9035 = vst [vmem:[#allocation23_spill] sm:$0xff] %v7771_v16 }
 0xe60   : > { %3023 = vmatpush1.bf16.msra.mxu0 %v8997_v36  ;;  %3138 = vmatpush1.bf16.msra.mxu1 %v8997_v36  ;;  %v7777_v36 = vld [vmem:[%s8648_s5 + $0x38] sm:$0xff]  }
 0xe61   : > { %3024 = vmatprep.subr.bf16.mxu0 %v8998_v60  ;;  %3139 = vmatprep.subr.bf16.mxu1 %v8998_v60  ;;  %9036 = vst [vmem:[#allocation31_spill] sm:$0xff] %v7777_v36  ;;  %v9037_v60 = vmov 0.0  }
 0xe64   : > { %3025 = vmatpush1.bf16.msra.mxu0 %v8999_v62  ;;  %3140 = vmatpush1.bf16.msra.mxu1 %v8999_v62  ;;  %v7785_v62 = vld [vmem:[%s8648_s5 + $0xc0] sm:$0xff]  }
 0xe65   : > { %3026 = vmatprep.subr.bf16.mxu0 %v9000_v17  ;;  %3141 = vmatprep.subr.bf16.mxu1 %v9000_v17  ;;  %9038 = vst [vmem:[#allocation24_spill] sm:$0xff] %v7785_v62 }
 0xe68   : > { %3027 = vmatpush1.bf16.msra.mxu0 %v9001_v35  ;;  %3142 = vmatpush1.bf16.msra.mxu1 %v9001_v35 }
 0xe69   : > { %3028 = vmatprep.subr.bf16.mxu0 %v9002_v22  ;;  %3143 = vmatprep.subr.bf16.mxu1 %v9002_v22 }
 0xe6c   : > { %3029 = vmatpush1.bf16.msra.mxu0 %v9003_v7  ;;  %3144 = vmatpush1.bf16.msra.mxu1 %v9003_v7 }
 0xe6d   : > { %3030 = vmatprep.subr.bf16.mxu0 %v9004_v61  ;;  %3145 = vmatprep.subr.bf16.mxu1 %v9004_v61 }
 0xe70   : > { %3031 = vmatpush1.bf16.msra.mxu0 %v9005_v19  ;;  %3146 = vmatpush1.bf16.msra.mxu1 %v9005_v19 }
 0xe71   : > { %3032 = vmatprep.subr.bf16.mxu0 %v9006_v20  ;;  %3147 = vmatprep.subr.bf16.mxu1 %v9006_v20 }
 0xe74   : > { %3033 = vmatpush1.bf16.msra.mxu0 %v9007_v1  ;;  %3148 = vmatpush1.bf16.msra.mxu1 %v9007_v1 }
 0xe75   : > { %3034 = vmatprep.subr.bf16.mxu0 %v9008_v53  ;;  %3149 = vmatprep.subr.bf16.mxu1 %v9008_v53 }
 0xe78   : > { %3035 = vmatpush1.bf16.msra.mxu0 %v9009_v3  ;;  %3150 = vmatpush1.bf16.msra.mxu1 %v9009_v3 }
 0xe79   : > { %4381 = vmatprep.subr.msk.bf16.mxu0 %vm1245_vm8, %v9010_v54  ;;  %4383 = vmatprep.subr.msk.bf16.mxu1 %vm1245_vm8, %v9010_v54 }
 0xe7c   : > { %3037 = vmatpush1.bf16.msra.mxu0 %v9011_v4  ;;  %3152 = vmatpush1.bf16.msra.mxu1 %v9011_v4 }
 0xe7d   : > { %3252 = vmatprep.subr.bf16.mxu1 %v9012_v10  ;;  %4492 = vmatprep.subr.bf16.mxu0 %v9013_v25 }
 0xe7f   : > { %3049 = vmatmul.mubr.bf16.vlgmr.msra.gmra.mrb[48].mxu0 %v2970_v23  ;;  %3164 = vmatmul.mubr.bf16.vlgmr.msra.gmra.mrb[48].mxu1 %v3085_v6 }
 0xe80   : > { %3253 = vmatpush1.bf16.msra.mxu1 %v9014_v26  ;;  %4493 = vmatpush3.bf16.msra.mxu0 %v9015_v29 }
 0xe81   : > { %3254 = vmatprep.subr.bf16.mxu1 %v9012_v10  ;;  %4494 = vmatprep.subr.bf16.mxu0 %v9016_v27  ;;  %v9039_v27 = vld [vmem:[#allocation13_spill] sm:$0xff] }
 0xe84   : > { %3255 = vmatpush1.bf16.msra.mxu1 %v9017_v28  ;;  %4495 = vmatpush3.bf16.msra.mxu0 %v9018_v30 }
 0xe85   : > { %3256 = vmatprep.subr.bf16.mxu1 %v9012_v10  ;;  %4496 = vmatprep.subr.bf16.mxu0 %v9019_v31 }
 0xe88   : > { %3257 = vmatpush1.bf16.msra.mxu1 %v9020_v32  ;;  %4497 = vmatpush3.bf16.msra.mxu0 %v9021_v33 }
 0xe89   : > { %3258 = vmatprep.subr.bf16.mxu1 %v9012_v10  ;;  %4498 = vmatprep.subr.bf16.mxu0 %v9022_v34 }
 0xe8c   : > { %3259 = vmatpush1.bf16.msra.mxu1 %v9023_v12  ;;  %4499 = vmatpush3.bf16.msra.mxu0 %v9024_v44 }
 0xe8d   : > { %3260 = vmatprep.subr.bf16.mxu1 %v9012_v10  ;;  %4500 = vmatprep.subr.bf16.mxu0 %v9025_v13 }
 0xe90   : > { %3261 = vmatpush1.bf16.msra.mxu1 %v9026_v5  ;;  %4501 = vmatpush3.bf16.msra.mxu0 %v9027_v43 }
 0xe91   : > { %3262 = vmatprep.subr.bf16.mxu1 %v9012_v10  ;;  %4502 = vmatprep.subr.bf16.mxu0 %v9028_v58 }
 0xe94   : > { %3263 = vmatpush1.bf16.msra.mxu1 %v7733_v18  ;;  %4503 = vmatpush3.bf16.msra.mxu0 %v7739_v59  ;;  %v5342_v59 = vld [vmem:[%s8644_s1 + $0x74] ss:$8 sps:$4 sm:$0xff]  }
 0xe95   : > { %3264 = vmatprep.subr.bf16.mxu1 %v9012_v10  ;;  %4504 = vmatprep.subr.bf16.mxu0 %v7746_v55 }
 0xe98   : > { %3265 = vmatpush1.bf16.msra.mxu1 %v7752_v47  ;;  %4505 = vmatpush3.bf16.msra.mxu0 %v7758_v45  ;;  %v4389_v45 = vld [vmem:[%s5613_s15 + $0x60] sm:$0x7f] }
 0xe99   : > { %3266 = vmatprep.subr.bf16.mxu1 %v9012_v10  ;;  %4506 = vmatprep.subr.bf16.mxu0 %v7765_v63  ;;  %v5341_v47 = vld [vmem:[%s8644_s1 + $0x60] ss:$8 sps:$4 sm:$0xff]  }
 0xe9c   : > { %3267 = vmatpush1.bf16.msra.mxu1 %v7771_v16  ;;  %4507 = vmatpush3.bf16.msra.mxu0 %v7777_v36  ;;  %v5339_v36 = vld [vmem:[%s8644_s1 + $0x50] ss:$8 sps:$4 sm:$0xff]   ;;  %v5340_v16 = vld [vmem:[%s8644_s1 + $0x64] ss:$8 sps:$4 sm:$0xff]  }
 0xe9d   : > { %3268 = vmatprep.subr.bf16.mxu1 %v9012_v10  ;;  %4640 = vmatprep.subr.bf16.mxu0 %v9037_v60 }
 0xea0   : > { %3269 = vmatpush1.bf16.msra.mxu1 %v7785_v62  ;;  %v5337_v62 = vld [vmem:[%s8644_s1 + $0x40] ss:$8 sps:$4 sm:$0xff]  }
 0xea1   : > { %4660 = vmatprep.subr.bf16.mxu1 %v9037_v60 }
 0xf52   : > { %v3050_v17 = vpop.f32.mrb[48].mxu0  ;;  %v3165_v35 = vpop.f32.mrb[48].mxu1 }
 0xf53   : > { %3059 = vrot.lane.b32.xlu0 %v3050_v17, %s8957_s0  ;;  %v3052_v22 = vpop.f32.mrb[49].mxu0  ;;  %v3167_v7 = vpop.f32.mrb[49].mxu1 }
 0xf54   : > { %3061 = vrot.lane.b32.xlu1 %v3052_v22, %s8957_s0  ;;  %v3054_v61 = vpop.f32.mrb[50].mxu0  ;;  %v3169_v19 = vpop.f32.mrb[50].mxu1 }
 0xf55   : > { %v3055_v20 = vpop.f32.mrb[51].mxu0  ;;  %v3170_v1 = vpop.f32.mrb[51].mxu1 }
 0xf56   : > { %v7808_v20 = vld [vmem:[%s8652_s9] sm:$0xff]  }
 0xf57   : > { %3174 = vrot.lane.b32.xlu0 %v3165_v35, %s8957_s0  ;;  %9040 = vst [vmem:[#allocation32_spill] sm:$0xff] %v7808_v20  ;;  %v7814_v1 = vld [vmem:[%s8650_s7] sm:$0xff]  }
 0xf58   : > { %3176 = vrot.lane.b32.xlu1 %v3167_v7, %s8957_s0  ;;  %9041 = vst [vmem:[#allocation33_spill] sm:$0xff] %v7814_v1 }
 0xfc5   : > { %v3060_v53 = vpop.permute.xlu0 %3059 }
 0xfc6   : > { %v3062_v3 = vpop.permute.xlu1 %3061 }
 0xfc7   : > { %v3063_v14 = vsel %vm1340_vm10, %v3060_v53, %v3062_v3  ;;  %v7826_v53 = vld [vmem:[%s8652_s9 + $0x8] sm:$0xff]  }
 0xfc8   : > { %v3065_v25 = vmax.f32 %v3050_v17, %v3063_v14  ;;  %9042 = vst [vmem:[#allocation34_spill] sm:$0xff] %v7826_v53  ;;  %v7832_v3 = vld [vmem:[%s8650_s7 + $0x8] sm:$0xff]   ;;  %v7840_v14 = vld [vmem:[%s8652_s9 + $0x10] sm:$0xff]  }
 0xfc9   : > { %v3175_v51 = vpop.permute.xlu0 %3174  ;;  %9043 = vst [vmem:[#allocation35_spill] sm:$0xff] %v7832_v3  ;;  %9044 = vst [vmem:[#allocation36_spill] sm:$0xff] %v7840_v14 }
 0xfca   : > { %v3177_v6 = vpop.permute.xlu1 %3176 }
 0xfcb   : > { %v3178_v23 = vsel %vm1340_vm10, %v3175_v51, %v3177_v6  ;;  %v7846_v51 = vld [vmem:[%s8650_s7 + $0x10] sm:$0xff]   ;;  %v7854_v6 = vld [vmem:[%s8652_s9 + $0x18] sm:$0xff]  }
 0xfcc   : > { %v3180_v26 = vmax.f32 %v3165_v35, %v3178_v23  ;;  %9045 = vst [vmem:[#allocation40_spill] sm:$0xff] %v7846_v51  ;;  %9046 = vst [vmem:[#allocation37_spill] sm:$0xff] %v7854_v6  ;;  %v9047_v23 = vld [vmem:[#allocation14_spill] sm:$0xff] }
 0xfce   : > { %v3181_v29 = vmax.f32 %v3065_v25, %v3180_v26  ;;  %v7863_v25 = vld [vmem:[%s8652_s9 + $0x20] sm:$0xff]   ;;  %v9049_v26 = vld [vmem:[#allocation16_spill] sm:$0xff] }
 0xfcf   : > { %9048 = vst [vmem:[#allocation28_spill] sm:$0xff] %v7863_v25 }
 0xfd0   : > { %v3182_v28 = vadd.f32 %v9039_v27, %v3181_v29  ;;  %v9050_v29 = vld [vmem:[#allocation39_spill] sm:$0xff] }
 0xfd1   : > { %v9051_v27 = vld [vmem:[#allocation15_spill] sm:$0xff] }
 0xfd2   : > { %v3183_v30 = vmax.f32 %v3182_v28, 0.0  ;;  %v9052_v28 = vld [vmem:[#allocation18_spill] sm:$0xff] }
 0xfd4   : > { %v3189_v31 = vrot.slane %v3183_v30, 2  ;;  %v3185_v32 = vrot.slane %v3183_v30, 1  ;;  %v3197_v33 = vrot.slane %v3183_v30, 4  ;;  %v3193_v34 = vrot.slane %v3183_v30, 3 }
 0xfd6   : > { %3190 = vrot.lane.b32.xlu1 %v3189_v31, %s8959_s23  ;;  %3186 = vrot.lane.b32.xlu0 %v3185_v32, %s8860_s12  ;;  %v4390_v31 = vld [vmem:[%s5613_s15 + $0x68] sm:$0x7f]  ;;  %v7879_v32 = vld [vmem:[%s5613_s15 + $0x70] sm:$0x7f] }
 0xfda   : > { %3198 = vrot.lane.b32.xlu1 %v3197_v33, %s8861_s30  ;;  %3194 = vrot.lane.b32.xlu0 %v3193_v34, %s8960_s13  ;;  %v7882_v33 = vld [vmem:[%s5613_s15 + $0x78] sm:$0x7f]  ;;  %v4948_v34 = vpack.i.bf16 %v7879_v32, %v4390_v31 }
 0xfde   : > { %4949 = vrot.lane.b32.xlu0 %v4948_v34, %s8959_s23  ;;  %v7907_v34 = vld [vmem:[%s8875_s6] sm:$0x1]  ;;  %s8594_s6 = scalar_lea.hbm %s9085_s11, %s4415_s20 }
 0xfdf   : > { %9054 = vst [vmem:[#allocation38_spill] sm:$0xff] %v7907_v34 }
0x1048   : > { %v3191_v12 = vpop.permute.xlu1 %3190  ;;  %v3187_v44 = vpop.permute.xlu0 %3186 }
0x1049   : > { %v3201_v13 = vsel %vm970_vm9, %v3183_v30, %v3187_v44  ;;  %v3202_v5 = vsel %vm566_vm0, %v3187_v44, %v3191_v12  ;;  %v9053_v30 = vld [vmem:[#allocation25_spill] sm:$0xff]  ;;  %v4953_v12 = vpack.i.bf16 %v7882_v33, %v7879_v32 }
0x104a   : > { %v3205_v19 = vpack.c.bf16 %v3201_v13, %v3201_v13  ;;  %v7888_v44 = vld [vmem:[%s5613_s15 + $0x61] sm:$0x7f] }
0x104b   : > { %4954 = vrot.lane.b32.xlu1 %v4953_v12, %s8861_s30  ;;  %v4958_v13 = vpack.i.bf16 %v7888_v44, %v7882_v33 }
0x104c   : > { %v3199_v43 = vpop.permute.xlu1 %3198  ;;  %v3195_v58 = vpop.permute.xlu0 %3194 }
0x104d   : > { %v3208_v17 = vpack.c.bf16 %v3199_v43, %v3199_v43  ;;  %v3203_v35 = vsel %vm1487_vm11, %v3202_v5, %v3195_v58  ;;  %v3204_v22 = vsel %vm568_vm1, %v3195_v58, %v3199_v43  ;;  %4959 = vrot.lane.b32.xlu0 %v4958_v13, %s8868_s29  ;;  %v4395_v5 = vld [vmem:[%s5613_s15 + $0x69] sm:$0x7f]  ;;  %v7898_v58 = vld [vmem:[%s5613_s15 + $0x71] sm:$0x7f] }
0x104e   : > { %v3206_v7 = vpack.c.bf16 %v3203_v35, %v3203_v35  ;;  %v3207_v61 = vpack.c.bf16 %v3204_v22, %v3204_v22  ;;  %v4968_v43 = vpack.i.bf16 %v4395_v5, %v7888_v44 }
0x104f   : > { %4385 = vmatprep.mubr.msk.bf16.mxu1 %vm1644_vm12, %v3208_v17  ;;  %4964 = vrot.lane.b32.xlu1 %v4958_v13, %s8959_s23  ;;  %v4973_v17 = vpack.i.bf16 %v7898_v58, %v4395_v5 }
0x1050   : > { %3244 = vmatprep.mubr.bf16.mxu0 %v3206_v7  ;;  %3285 = vmatmul.mubr.bf16.vlgmr.msra.gmra.mrb[52].mxu1 %v3207_v61 }
0x1051   : > { %3245 = vmatmul.mubr.bf16.vlgmr.msra.gmra.mrb[52].mxu0 %v3205_v19  ;;  %4661 = vmatpush3.bf16.msra.mxu1 %v7808_v20  ;;  %v5335_v20 = vld [vmem:[%s8644_s1 + $0x30] ss:$8 sps:$4 sm:$0xff]  }
0x1052   : > { %4641 = vmatpush3.bf16.msra.mxu0 %v7814_v1  ;;  %4656 = vmatprep.mubr.msk.bf16.mxu0 %vm5466_vm14, %v9037_v60  ;;  %v5334_v1 = vld [vmem:[%s8644_s1 + $0x34] ss:$8 sps:$4 sm:$0xff]  }
0x1053   : > { %4642 = vmatprep.subr.bf16.mxu0 %v9037_v60  ;;  %4662 = vmatprep.subr.bf16.mxu1 %v9037_v60 }
0x1054   : > { %4672 = vmatprep.mubr.msk.bf16.mxu1 %vm5466_vm14, %v9037_v60  ;;  %4969 = vrot.lane.b32.xlu0 %v4968_v43, %s8861_s30  ;;  %v3488_v43 = vpack.c.bf16 %v4395_v5, %v4395_v5 }
0x1055   : > { %4663 = vmatpush3.bf16.msra.mxu1 %v7826_v53  ;;  %4974 = vrot.lane.b32.xlu1 %v4973_v17, %s8868_s29  ;;  %v8204_v53 = vld [vmem:[%s8646_s3 + $0x104] ss:$8 sps:$4 sm:$0xff]  }
0x1056   : > { %4643 = vmatpush3.bf16.msra.mxu0 %v7832_v3  ;;  %4664 = vmatprep.subr.bf16.mxu1 %v9037_v60  ;;  %v5332_v3 = vld [vmem:[%s8644_s1 + $0x20] ss:$8 sps:$4 sm:$0xff]   ;;  %9056 = vst [vmem:[#allocation27_spill] sm:$0xff] %v8204_v53 }
0x1057   : > { %4644 = vmatprep.subr.bf16.mxu0 %v9037_v60 }
0x1059   : > { %4665 = vmatpush3.bf16.msra.mxu1 %v7840_v14  ;;  %v8145_v14 = vld [vmem:[%s8646_s3 + $0xd4] ss:$8 sps:$4 sm:$0xff]  }
0x105a   : > { %4645 = vmatpush3.bf16.msra.mxu0 %v7846_v51  ;;  %4666 = vmatprep.subr.bf16.mxu1 %v9037_v60  ;;  %v3419_v51 = vpack.c.bf16 %v7888_v44, %v7888_v44  ;;  %v8158_v44 = vld [vmem:[%s8644_s1] ss:$8 sps:$4 sm:$0xff]  }
0x105b   : > { %4646 = vmatprep.subr.bf16.mxu0 %v9037_v60 }
0x105d   : > { %4667 = vmatpush3.bf16.msra.mxu1 %v7854_v6  ;;  %v8137_v6 = vld [vmem:[%s8646_s3 + $0xc0] ss:$8 sps:$4 sm:$0xff]  }
0x105e   : > { %4647 = vmatpush3.bf16.msra.mxu0 %v9047_v23  ;;  %4668 = vmatprep.subr.bf16.mxu1 %v9037_v60 }
0x105f   : > { %4648 = vmatprep.subr.bf16.mxu0 %v9037_v60 }
0x1061   : > { %4669 = vmatpush3.bf16.msra.mxu1 %v7863_v25 }
0x1062   : > { %4649 = vmatpush3.bf16.msra.mxu0 %v9049_v26  ;;  %4670 = vmatprep.subr.bf16.mxu1 %v9037_v60 }
0x1063   : > { %4650 = vmatprep.subr.bf16.mxu0 %v9037_v60 }
0x1065   : > { %4671 = vmatpush3.bf16.msra.mxu1 %v9050_v29 }
0x1066   : > { %4651 = vmatpush3.bf16.msra.mxu0 %v9051_v27  ;;  %3423 = vmatprep.subr.bf16.mxu1 %v7367_v11 }
0x1067   : > { %4652 = vmatprep.subr.bf16.mxu0 %v9037_v60 }
0x106a   : > { %4653 = vmatpush3.bf16.msra.mxu0 %v9052_v28 }
0x106b   : > { %4654 = vmatprep.subr.bf16.mxu0 %v9037_v60  ;;  %v5338_v60 = vld [vmem:[%s8644_s1 + $0x54] ss:$8 sps:$4 sm:$0xff]  }
0x106e   : > { %4655 = vmatpush3.bf16.msra.mxu0 %v9053_v30 }
0x106f   : > { %3492 = vmatprep.subr.bf16.mxu0 %v7367_v11 }
0x10bd   : > { %v7927_v17 = vpop.permute.xlu1 %4954 }
0x10be   : > { %v4956_v55 = vunpack.i.l.bf16 %v7927_v17 }
0x1123   : > { %v3286_v35 = vpop.f32.mrb[52].mxu1 }
0x1124   : > { %v4508_v22 = vpop.f32.mrb[52].mxu0  ;;  %v3288_v7 = vpop.f32.mrb[53].mxu1 }
0x1125   : > { %v4509_v61 = vpop.f32.mrb[53].mxu0  ;;  %v3289_v19 = vpop.f32.mrb[54].mxu1 }
0x1126   : > { %v4510_v23 = vadd.f32 %v4509_v61, %v4508_v22  ;;  %v4511_v26 = vpop.f32.mrb[54].mxu0  ;;  %v3290_v27 = vpop.f32.mrb[55].mxu1 }
0x1127   : > { %v4512_v28 = vpop.f32.mrb[55].mxu0  ;;  %v8029_v27 = vld [vmem:[%s8646_s3 + $0x44] ss:$8 sps:$4 sm:$0xff]  }
0x1128   : > { %v3247_v12 = vadd.f32 %v7907_v34, %v4510_v23  ;;  %v8035_v28 = vld [vmem:[%s8646_s3 + $0x40] ss:$8 sps:$4 sm:$0xff]  }
0x112a   : > { %v3287_v13 = vadd.f32 %v3286_v35, %v3247_v12  ;;  %v4957_v35 = vunpack.i.h.bf16 %v7927_v17  ;;  %v8041_v12 = vld [vmem:[%s8646_s3 + $0x54] ss:$8 sps:$4 sm:$0xff]   ;;  %v5344_v17 = vld [vmem:[%s8644_s1 + $0x84] ss:$8 sps:$4 sm:$0xff]  }
0x112c   : > { %v3292_v30 = vpack.c.bf16 %v3287_v13, %v3287_v13  ;;  %v8047_v13 = vld [vmem:[%s8646_s3 + $0x50] ss:$8 sps:$4 sm:$0xff]  }
0x112e   : > { %4657 = vmatmul.mubr.msk.bf16.vlgmr.msra.gmra.mrb[56].mxu0 %vm1774_vm15, %v3292_v30  ;;  %v7922_v30 = vpop.permute.xlu0 %4949 }
0x112f   : > { %3493 = vmatpush1.bf16.msra.mxu0 %v7373_v57  ;;  %4396 = vmatprep.mubr.msk.bf16.mxu0 %vm566_vm0, %v3488_v43  ;;  %v4952_v5 = vunpack.i.h.bf16 %v7922_v30  ;;  %v8053_v43 = vld [vmem:[%s8646_s3 + $0x64] ss:$8 sps:$4 sm:$0xff]   ;;  %v4951_v63 = vunpack.i.l.bf16 %v7922_v30  ;;  %v5343_v30 = vld [vmem:[%s8644_s1 + $0x70] ss:$8 sps:$4 sm:$0xff]  }
0x1130   : > { %3494 = vmatprep.subr.bf16.mxu0 %v7379_v21 }
0x1131   : > { %v3484_v7 = vsel %vm566_vm0, %v4390_v31, %v4952_v5  ;;  %v8017_v31 = vld [vmem:[%s8646_s3 + $0x34] ss:$8 sps:$4 sm:$0xff]   ;;  %v8059_v5 = vld [vmem:[%s8646_s3 + $0x60] ss:$8 sps:$4 sm:$0xff]   ;;  %v3415_v18 = vsel %vm566_vm0, %v4389_v45, %v4951_v63 }
0x1132   : > { %v7932_v22 = vpop.permute.xlu0 %4959  ;;  %v3485_v19 = vsel %vm568_vm1, %v3484_v7, %v4957_v35  ;;  %v8065_v35 = vld [vmem:[%s8646_s3 + $0x74] ss:$8 sps:$4 sm:$0xff]   ;;  %v8071_v7 = vld [vmem:[%s8646_s3 + $0x70] ss:$8 sps:$4 sm:$0xff]   ;;  %v3416_v4 = vsel %vm568_vm1, %v3415_v18, %v4956_v55  ;;  %v5345_v45 = vld [vmem:[%s8644_s1 + $0x80] ss:$8 sps:$4 sm:$0xff]  }
0x1133   : > { %3495 = vmatpush1.bf16.msra.mxu0 %v7385_v56  ;;  %v4962_v61 = vunpack.i.h.bf16 %v7932_v22  ;;  %v4961_v10 = vunpack.i.l.bf16 %v7932_v22 }
0x1134   : > { %3496 = vmatprep.subr.bf16.mxu0 %v7391_v0 }
0x1135   : > { %v3486_v23 = vsel %vm570_vm2, %v3485_v19, %v4962_v61  ;;  %v8077_v61 = vld [vmem:[%s8646_s3 + $0x84] ss:$8 sps:$4 sm:$0xff]   ;;  %v8083_v19 = vld [vmem:[%s8646_s3 + $0x80] ss:$8 sps:$4 sm:$0xff]   ;;  %v3417_v54 = vsel %vm570_vm2, %v3416_v4, %v4961_v10  ;;  %v3557_v4 = vpack.c.bf16 %v7898_v58, %v7898_v58 }
0x1136   : > { %v3487_v26 = vpack.c.bf16 %v3486_v23, %v3486_v23  ;;  %v8089_v23 = vld [vmem:[%s8646_s3 + $0x94] ss:$8 sps:$4 sm:$0xff]   ;;  %v3418_v55 = vpack.c.bf16 %v3417_v54, %v3417_v54  ;;  %v5346_v10 = vld [vmem:[%s8644_s1 + $0x4] ss:$8 sps:$4 sm:$0xff]  }
0x1137   : > { %3497 = vmatpush1.bf16.msra.mxu0 %v7397_v39 }
0x1138   : > { %3498 = vmatprep.subr.bf16.mxu0 %v7403_v41 }
0x113b   : > { %3499 = vmatpush1.bf16.msra.mxu0 %v7409_v2 }
0x113c   : > { %3500 = vmatprep.subr.bf16.mxu0 %v7415_v49 }
0x113f   : > { %3501 = vmatpush1.bf16.msra.mxu0 %v7421_v40 }
0x1140   : > { %3502 = vmatprep.subr.bf16.mxu0 %v7427_v24 }
0x1143   : > { %3503 = vmatpush1.bf16.msra.mxu0 %v7433_v42 }
0x1144   : > { %3504 = vmatprep.subr.bf16.mxu0 %v7439_v37 }
0x1147   : > { %3505 = vmatpush1.bf16.msra.mxu0 %v7445_v38 }
0x1148   : > { %3506 = vmatprep.subr.bf16.mxu0 %v7451_v8 }
0x114b   : > { %3507 = vmatpush1.bf16.msra.mxu0 %v7457_v9 }
0x114c   : > { %3508 = vmatprep.subr.bf16.mxu0 %v7463_v46 }
0x114f   : > { %3509 = vmatpush1.bf16.msra.mxu0 %v7469_v48 }
0x1150   : > { %3510 = vmatprep.subr.bf16.mxu0 %v7556_v52 }
0x1153   : > { %3511 = vmatpush1.bf16.msra.mxu0 %v7567_v50 }
0x1154   : > { %3630 = vmatprep.subr.bf16.mxu0 %v7367_v11  ;;  %v7966_v11 = vld [vmem:[%s8646_s3 + $0x4] ss:$8 sps:$4 sm:$0xff]  }
0x1156   : > { %3525 = vmatmul.mubr.bf16.vlgmr.msra.gmra.mrb[60].mxu0 %v3487_v26  ;;  %v8095_v26 = vld [vmem:[%s8646_s3 + $0x90] ss:$8 sps:$4 sm:$0xff]  }
0x1157   : > { %3631 = vmatpush1.bf16.msra.mxu0 %v7373_v57  ;;  %v7969_v57 = vpop.permute.xlu1 %4964 }
0x1158   : > { %3632 = vmatprep.subr.bf16.mxu0 %v7379_v21  ;;  %v4967_v21 = vunpack.i.h.bf16 %v7969_v57 }
0x115b   : > { %3633 = vmatpush1.bf16.msra.mxu0 %v7385_v56  ;;  %v3622_v56 = vsel %vm566_vm0, %v7882_v33, %v4967_v21  ;;  %v8023_v33 = vld [vmem:[%s8646_s3 + $0x30] ss:$8 sps:$4 sm:$0xff]   ;;  %v8101_v21 = vld [vmem:[%s8646_s3 + $0xa4] ss:$8 sps:$4 sm:$0xff]  }
0x115c   : > { %3634 = vmatprep.subr.bf16.mxu0 %v7391_v0  ;;  %v7974_v0 = vpop.permute.xlu0 %4969 }
0x115f   : > { %3635 = vmatpush1.bf16.msra.mxu0 %v7397_v39  ;;  %v4972_v39 = vunpack.i.h.bf16 %v7974_v0 }
0x1160   : > { %3636 = vmatprep.subr.bf16.mxu0 %v7403_v41  ;;  %v7977_v41 = vpop.permute.xlu1 %4974 }
0x1163   : > { %3637 = vmatpush1.bf16.msra.mxu0 %v7409_v2  ;;  %v4977_v2 = vunpack.i.h.bf16 %v7977_v41 }
0x1164   : > { %3638 = vmatprep.subr.bf16.mxu0 %v7415_v49  ;;  %v3623_v49 = vsel %vm568_vm1, %v3622_v56, %v4972_v39  ;;  %v8107_v56 = vld [vmem:[%s8646_s3 + $0xa0] ss:$8 sps:$4 sm:$0xff]   ;;  %v8113_v39 = vld [vmem:[%s8646_s3 + $0xb4] ss:$8 sps:$4 sm:$0xff]  }
0x1167   : > { %3639 = vmatpush1.bf16.msra.mxu0 %v7421_v40  ;;  %v3624_v40 = vsel %vm570_vm2, %v3623_v49, %v4977_v2  ;;  %v8119_v2 = vld [vmem:[%s8646_s3 + $0xb0] ss:$8 sps:$4 sm:$0xff]  }
0x1168   : > { %3640 = vmatprep.subr.bf16.mxu0 %v7427_v24  ;;  %v3625_v24 = vpack.c.bf16 %v3624_v40, %v3624_v40  ;;  %v8125_v40 = vld [vmem:[%s8646_s3 + $0xc4] ss:$8 sps:$4 sm:$0xff]  }
0x116b   : > { %3641 = vmatpush1.bf16.msra.mxu0 %v7433_v42  ;;  %v4399_v42 = vld [vmem:[%s5613_s15 + $0x79] sm:$0x7f] }
0x116c   : > { %3642 = vmatprep.subr.bf16.mxu0 %v7439_v37  ;;  %v3626_v37 = vpack.c.bf16 %v4399_v42, %v4399_v42 }
0x116e   : > { %4400 = vmatprep.mubr.msk.bf16.mxu0 %vm566_vm0, %v3626_v37 }
0x116f   : > { %3643 = vmatpush1.bf16.msra.mxu0 %v7445_v38  ;;  %v7987_v38 = vld [vmem:[%s8646_s3] ss:$8 sps:$4 sm:$0xff]  }
0x1170   : > { %3644 = vmatprep.subr.bf16.mxu0 %v7451_v8  ;;  %v7993_v8 = vld [vmem:[%s8646_s3 + $0x14] ss:$8 sps:$4 sm:$0xff]  }
0x1173   : > { %3645 = vmatpush1.bf16.msra.mxu0 %v7457_v9  ;;  %v7999_v9 = vld [vmem:[%s8646_s3 + $0x10] ss:$8 sps:$4 sm:$0xff]  }
0x1174   : > { %3646 = vmatprep.subr.bf16.mxu0 %v7463_v46  ;;  %v8005_v46 = vld [vmem:[%s8646_s3 + $0x24] ss:$8 sps:$4 sm:$0xff]  }
0x1177   : > { %3647 = vmatpush1.bf16.msra.mxu0 %v7469_v48  ;;  %v8011_v48 = vld [vmem:[%s8646_s3 + $0x20] ss:$8 sps:$4 sm:$0xff]  }
0x1178   : > { %3648 = vmatprep.subr.bf16.mxu0 %v7556_v52 }
0x117b   : > { %3649 = vmatpush1.bf16.msra.mxu0 %v7567_v50 }
0x117c   : > { %3829 = vmatprep.subr.bf16.mxu0 %v7966_v11 }
0x117e   : > { %3663 = vmatmul.mubr.bf16.vlgmr.msra.gmra.mrb[64].mxu0 %v3625_v24  ;;  %v8131_v24 = vld [vmem:[%s8882_s8] sm:$0x1]  ;;  %s5394_s8 = sshll.u32 %s5467_s21, 4  ;;  %s5395_s8 = int_to_ptr.vmem [resolvable:$false] %s5394_s8 }
0x117f   : > { %3830 = vmatpush1.bf16.msra.mxu0 %v7987_v38  ;;  %9055 = vst [vmem:[#allocation26_spill] sm:$0xff] %v8131_v24 }
0x1180   : > { %3831 = vmatprep.subr.bf16.mxu0 %v7993_v8 }
0x1183   : > { %3832 = vmatpush1.bf16.msra.mxu0 %v7999_v9 }
0x1184   : > { %3833 = vmatprep.subr.bf16.mxu0 %v8005_v46 }
0x1187   : > { %3834 = vmatpush1.bf16.msra.mxu0 %v8011_v48 }
0x1188   : > { %3835 = vmatprep.subr.bf16.mxu0 %v8017_v31 }
0x118b   : > { %3836 = vmatpush1.bf16.msra.mxu0 %v8023_v33 }
0x118c   : > { %3837 = vmatprep.subr.bf16.mxu0 %v8029_v27 }
0x118f   : > { %3838 = vmatpush1.bf16.msra.mxu0 %v8035_v28 }
0x1190   : > { %3839 = vmatprep.subr.bf16.mxu0 %v8041_v12 }
0x1193   : > { %3840 = vmatpush1.bf16.msra.mxu0 %v8047_v13 }
0x1194   : > { %3841 = vmatprep.subr.bf16.mxu0 %v8053_v43 }
0x1197   : > { %3842 = vmatpush1.bf16.msra.mxu0 %v8059_v5 }
0x1198   : > { %3843 = vmatprep.subr.bf16.mxu0 %v8065_v35 }
0x119b   : > { %3844 = vmatpush1.bf16.msra.mxu0 %v8071_v7 }
0x119c   : > { %3845 = vmatprep.subr.bf16.mxu0 %v8077_v61 }
0x119f   : > { %3846 = vmatpush1.bf16.msra.mxu0 %v8083_v19 }
0x11a0   : > { %3847 = vmatprep.subr.bf16.mxu0 %v8089_v23 }
0x11a3   : > { %3848 = vmatpush1.bf16.msra.mxu0 %v8095_v26 }
0x11a4   : > { %3849 = vmatprep.subr.bf16.mxu0 %v8101_v21 }
0x11a7   : > { %3850 = vmatpush1.bf16.msra.mxu0 %v8107_v56 }
0x11a8   : > { %3851 = vmatprep.subr.bf16.mxu0 %v8113_v39 }
0x11ab   : > { %3852 = vmatpush1.bf16.msra.mxu0 %v8119_v2 }
0x11ac   : > { %3853 = vmatprep.subr.bf16.mxu0 %v8125_v40 }
0x11af   : > { %3854 = vmatpush1.bf16.msra.mxu0 %v8137_v6 }
0x11b0   : > { %3855 = vmatprep.subr.bf16.mxu0 %v8145_v14 }
0x1201   : > { %v3330_v49 = vpop.f32.mrb[56].mxu0 }
0x1202   : > { %v3331_v42 = vadd.f32 %v8131_v24, %v3330_v49  ;;  %v4658_v37 = vpop.f32.mrb[57].mxu0  ;;  %v8171_v49 = vld [vmem:[%s8646_s3 + $0xe4] ss:$8 sps:$4 sm:$0xff]   ;;  %v8195_v24 = vld [vmem:[%s8646_s3 + $0xf0] ss:$8 sps:$4 sm:$0xff]  }
0x1203   : > { %v3333_v34 = vpop.f32.mrb[58].mxu0  ;;  %v8186_v37 = vld [vmem:[%s8646_s3 + $0xf4] ss:$8 sps:$4 sm:$0xff]  }
0x1204   : > { %v3336_v29 = vmax.f32 %v3331_v42, 0.0  ;;  %v4659_v25 = vpop.f32.mrb[59].mxu0  ;;  %v8177_v42 = vld [vmem:[%s8646_s3 + $0xe0] ss:$8 sps:$4 sm:$0xff]  }
0x1205   : > { %v8152_v25 = vld [vmem:[%s8646_s3 + $0xd0] ss:$8 sps:$4 sm:$0xff]  }
0x1206   : > { %v3337_v34 = vpack.c.bf16 %v3336_v29, %v3336_v29  ;;  %3856 = vmatpush1.bf16.msra.mxu0 %v8152_v25  ;;  %v8165_v29 = vld [vmem:[%s8644_s1 + $0x14] ss:$8 sps:$4 sm:$0xff]  }
0x1207   : > { %3857 = vmatprep.subr.bf16.mxu0 %v8171_v49 }
0x1208   : > { %4673 = vmatmul.mubr.msk.bf16.vlgmr.msra.gmra.mrb[56].mxu1 %vm964_vm5, %v3337_v34  ;;  %v5330_v34 = vld [vmem:[%s8644_s1 + $0x24] ss:$8 sps:$4 sm:$0xff]  }
0x1209   : > { %3424 = vmatpush1.bf16.msra.mxu1 %v8158_v44  ;;  %4394 = vmatprep.mubr.msk.bf16.mxu1 %vm566_vm0, %v3419_v51  ;;  %v5328_v51 = vld [vmem:[%s8644_s1 + $0x10] ss:$8 sps:$4 sm:$0xff]  }
0x120a   : > { %3425 = vmatprep.subr.bf16.mxu1 %v8165_v29  ;;  %3858 = vmatpush1.bf16.msra.mxu0 %v8177_v42 }
0x120b   : > { %3859 = vmatprep.subr.bf16.mxu0 %v8186_v37 }
0x120d   : > { %3426 = vmatpush1.bf16.msra.mxu1 %v5328_v51 }
0x120e   : > { %3427 = vmatprep.subr.bf16.mxu1 %v5330_v34  ;;  %3860 = vmatpush1.bf16.msra.mxu0 %v8195_v24 }
0x120f   : > { %3870 = vmatprep.subr.bf16.mxu0 %v8204_v53 }
0x1211   : > { %3428 = vmatpush1.bf16.msra.mxu1 %v5332_v3 }
0x1212   : > { %3429 = vmatprep.subr.bf16.mxu1 %v5334_v1 }
0x1215   : > { %3430 = vmatpush1.bf16.msra.mxu1 %v5335_v20 }
0x1216   : > { %3431 = vmatprep.subr.bf16.mxu1 %v5336_v15 }
0x1219   : > { %3432 = vmatpush1.bf16.msra.mxu1 %v5337_v62 }
0x121a   : > { %3433 = vmatprep.subr.bf16.mxu1 %v5338_v60 }
0x121d   : > { %3434 = vmatpush1.bf16.msra.mxu1 %v5339_v36 }
0x121e   : > { %3435 = vmatprep.subr.bf16.mxu1 %v5340_v16 }
0x1221   : > { %3436 = vmatpush1.bf16.msra.mxu1 %v5341_v47 }
0x1222   : > { %3437 = vmatprep.subr.bf16.mxu1 %v5342_v59 }
0x1225   : > { %3438 = vmatpush1.bf16.msra.mxu1 %v5343_v30 }
0x1226   : > { %3439 = vmatprep.subr.bf16.mxu1 %v5344_v17 }
0x1229   : > { %3440 = vmatpush1.bf16.msra.mxu1 %v5345_v45  ;;  %v8250_v63 = vpop.f32.mrb[60].mxu0 }
0x122a   : > { %3441 = vmatprep.subr.bf16.mxu1 %v7556_v52  ;;  %v3528_v22 = vpop.f32.mrb[61].mxu0  ;;  %3535 = vrot.lane.b32.xlu0 %v8250_v63, %s8887_s24  ;;  %v4966_v52 = vunpack.i.l.bf16 %v7969_v57 }
0x122b   : > { %3537 = vrot.lane.b32.xlu1 %v3528_v22, %s8887_s24  ;;  %v3530_v18 = vpop.f32.mrb[62].mxu0 }
0x122c   : > { %v3531_v53 = vpop.f32.mrb[63].mxu0  ;;  %v3553_v54 = vsel %vm566_vm0, %v7879_v32, %v4966_v52 }
0x122d   : > { %3442 = vmatpush1.bf16.msra.mxu1 %v7567_v50  ;;  %v4971_v50 = vunpack.i.l.bf16 %v7974_v0  ;;  %v4976_v53 = vunpack.i.l.bf16 %v7977_v41 }
0x122e   : > { %3561 = vmatprep.subr.bf16.mxu1 %v5346_v10 }
0x1230   : > { %3456 = vmatmul.mubr.bf16.vlgmr.msra.gmra.mrb[60].mxu1 %v3418_v55 }
0x1231   : > { %3562 = vmatpush1.bf16.msra.mxu1 %v8158_v44  ;;  %4398 = vmatprep.mubr.msk.bf16.mxu1 %vm566_vm0, %v3557_v4 }
0x1232   : > { %3563 = vmatprep.subr.bf16.mxu1 %v8165_v29 }
0x1235   : > { %3564 = vmatpush1.bf16.msra.mxu1 %v5328_v51 }
0x1236   : > { %3565 = vmatprep.subr.bf16.mxu1 %v5330_v34 }
0x1239   : > { %3566 = vmatpush1.bf16.msra.mxu1 %v5332_v3 }
0x123a   : > { %3567 = vmatprep.subr.bf16.mxu1 %v5334_v1 }
0x123d   : > { %3568 = vmatpush1.bf16.msra.mxu1 %v5335_v20  ;;  %v3554_v20 = vsel %vm568_vm1, %v3553_v54, %v4971_v50 }
0x123e   : > { %3569 = vmatprep.subr.bf16.mxu1 %v5336_v15  ;;  %v5347_v15 = vld [vmem:[%s8644_s1 + $0x94] ss:$8 sps:$4 sm:$0xff]  }
0x1241   : > { %3570 = vmatpush1.bf16.msra.mxu1 %v5337_v62 }
0x1242   : > { %3571 = vmatprep.subr.bf16.mxu1 %v5338_v60 }
0x1245   : > { %3572 = vmatpush1.bf16.msra.mxu1 %v5339_v36  ;;  %v9057_v36 = vld [vmem:[#allocation27_spill] sm:$0xff] }
0x1246   : > { %3573 = vmatprep.subr.bf16.mxu1 %v5340_v16 }
0x1249   : > { %3574 = vmatpush1.bf16.msra.mxu1 %v5341_v47  ;;  %v3555_v47 = vsel %vm570_vm2, %v3554_v20, %v4976_v53  ;;  %vm1903_vm2 = vcmask 73728  }
0x124a   : > { %3575 = vmatprep.subr.bf16.mxu1 %v5342_v59  ;;  %v5348_v59 = vld [vmem:[%s8644_s1 + $0x90] ss:$8 sps:$4 sm:$0xff]   ;;  %v3556_v16 = vpack.c.bf16 %v3555_v47, %v3555_v47 }
0x124d   : > { %3576 = vmatpush1.bf16.msra.mxu1 %v5343_v30 }
0x124e   : > { %3577 = vmatprep.subr.bf16.mxu1 %v5344_v17 }
0x1251   : > { %3578 = vmatpush1.bf16.msra.mxu1 %v5345_v45  ;;  %v3664_v60 = vpop.f32.mrb[64].mxu0 }
0x1252   : > { %3579 = vmatprep.subr.bf16.mxu1 %v5347_v15  ;;  %v3666_v62 = vpop.f32.mrb[65].mxu0 }
0x1253   : > { %v3668_v1 = vpop.f32.mrb[66].mxu0 }
0x1254   : > { %v3669_v3 = vpop.f32.mrb[67].mxu0 }
0x1255   : > { %3580 = vmatpush1.bf16.msra.mxu1 %v5348_v59 }
0x1256   : > { %3714 = vmatprep.subr.bf16.mxu1 %v7966_v11 }
0x1258   : > { %3594 = vmatmul.mubr.bf16.vlgmr.msra.gmra.mrb[64].mxu1 %v3556_v16 }
0x1259   : > { %3715 = vmatpush1.bf16.msra.mxu1 %v7987_v38 }
0x125a   : > { %3716 = vmatprep.subr.bf16.mxu1 %v7993_v8 }
0x125d   : > { %3717 = vmatpush1.bf16.msra.mxu1 %v7999_v9 }
0x125e   : > { %3718 = vmatprep.subr.bf16.mxu1 %v8005_v46 }
0x1261   : > { %3719 = vmatpush1.bf16.msra.mxu1 %v8011_v48 }
0x1262   : > { %3720 = vmatprep.subr.bf16.mxu1 %v8017_v31 }
0x1265   : > { %3721 = vmatpush1.bf16.msra.mxu1 %v8023_v33 }
0x1266   : > { %3722 = vmatprep.subr.bf16.mxu1 %v8029_v27 }
0x1269   : > { %3723 = vmatpush1.bf16.msra.mxu1 %v8035_v28 }
0x126a   : > { %3724 = vmatprep.subr.bf16.mxu1 %v8041_v12 }
0x126d   : > { %3725 = vmatpush1.bf16.msra.mxu1 %v8047_v13 }
0x126e   : > { %3726 = vmatprep.subr.bf16.mxu1 %v8053_v43 }
0x1271   : > { %3727 = vmatpush1.bf16.msra.mxu1 %v8059_v5 }
0x1272   : > { %3728 = vmatprep.subr.bf16.mxu1 %v8065_v35 }
0x1275   : > { %3729 = vmatpush1.bf16.msra.mxu1 %v8071_v7 }
0x1276   : > { %3730 = vmatprep.subr.bf16.mxu1 %v8077_v61 }
0x1279   : > { %3731 = vmatpush1.bf16.msra.mxu1 %v8083_v19 }
0x127a   : > { %3732 = vmatprep.subr.bf16.mxu1 %v8089_v23  ;;  %v5349_v23 = vld [vmem:[%s8645_s2] ss:$0 sm:$0xff] }
0x127d   : > { %3733 = vmatpush1.bf16.msra.mxu1 %v8095_v26 }
0x127e   : > { %3734 = vmatprep.subr.bf16.mxu1 %v8101_v21 }
0x1281   : > { %3735 = vmatpush1.bf16.msra.mxu1 %v8107_v56 }
0x1282   : > { %3736 = vmatprep.subr.bf16.mxu1 %v8113_v39 }
0x1285   : > { %3737 = vmatpush1.bf16.msra.mxu1 %v8119_v2 }
0x1286   : > { %3738 = vmatprep.subr.bf16.mxu1 %v8125_v40 }
0x1289   : > { %3739 = vmatpush1.bf16.msra.mxu1 %v8137_v6 }
0x128a   : > { %3740 = vmatprep.subr.bf16.mxu1 %v8145_v14 }
0x128d   : > { %3741 = vmatpush1.bf16.msra.mxu1 %v8152_v25 }
0x128e   : > { %3742 = vmatprep.subr.bf16.mxu1 %v8171_v49 }
0x1291   : > { %3743 = vmatpush1.bf16.msra.mxu1 %v8177_v42 }
0x1292   : > { %3744 = vmatprep.subr.bf16.mxu1 %v8186_v37 }
0x1295   : > { %3745 = vmatpush1.bf16.msra.mxu1 %v8195_v24 }
0x1296   : > { %3755 = vmatprep.subr.bf16.mxu1 %v9057_v36 }
0x129c   : > { %v3536_v48 = vpop.permute.xlu0 %3535 }
0x129d   : > { %v3538_v31 = vpop.permute.xlu1 %3537 }
0x129e   : > { %v3539_v33 = vsel %vm724_vm3, %v3536_v48, %v3538_v31  ;;  %v5358_v48 = vld [vmem:[%s8646_s3 + $0x140] ss:$8 sps:$4 sm:$0xff]   ;;  %v5359_v31 = vld [vmem:[%s8646_s3 + $0x154] ss:$8 sps:$4 sm:$0xff]  }
0x129f   : > { %v3541_v13 = vmax.f32 %v8250_v63, %v3539_v33  ;;  %v5360_v33 = vld [vmem:[%s8646_s3 + $0x150] ss:$8 sps:$4 sm:$0xff]  }
0x12db   : > { %v8311_v32 = vpop.f32.mrb[56].mxu1 }
0x12dc   : > { %v4674_v6 = vpop.f32.mrb[57].mxu1 }
0x12dd   : > { %v3378_v14 = vpop.f32.mrb[58].mxu1 }
0x12de   : > { %v4675_v58 = vpop.f32.mrb[59].mxu1 }
0x1303   : > { %v3457_v11 = vpop.f32.mrb[60].mxu1 }
0x1304   : > { %v3459_v57 = vpop.f32.mrb[61].mxu1  ;;  %3466 = vrot.lane.b32.xlu0 %v3457_v11, %s8887_s24 }
0x1305   : > { %v3461_v0 = vpop.f32.mrb[62].mxu1  ;;  %3468 = vrot.lane.b32.xlu1 %v3459_v57, %s8887_s24  ;;  %v5351_v57 = vld [vmem:[%s8646_s3 + $0x114] ss:$8 sps:$4 sm:$0xff]  }
0x1306   : > { %v3462_v41 = vpop.f32.mrb[63].mxu1  ;;  %v5352_v0 = vld [vmem:[%s8646_s3 + $0x110] ss:$8 sps:$4 sm:$0xff]  }
0x1307   : > { %v5353_v41 = vld [vmem:[%s8646_s3 + $0x124] ss:$8 sps:$4 sm:$0xff]  }
0x132b   : > { %v3595_v38 = vpop.f32.mrb[64].mxu1 }
0x132c   : > { %v3597_v8 = vpop.f32.mrb[65].mxu1  ;;  %3604 = vrot.lane.b32.xlu0 %v3595_v38, %s8887_s24 }
0x132d   : > { %v3599_v9 = vpop.f32.mrb[66].mxu1  ;;  %3606 = vrot.lane.b32.xlu1 %v3597_v8, %s8887_s24  ;;  %v5355_v8 = vld [vmem:[%s8646_s3 + $0x134] ss:$8 sps:$4 sm:$0xff]  }
0x132e   : > { %v3600_v46 = vpop.f32.mrb[67].mxu1  ;;  %v5356_v9 = vld [vmem:[%s8646_s3 + $0x130] ss:$8 sps:$4 sm:$0xff]  }
0x132f   : > { %v5357_v46 = vld [vmem:[%s8646_s3 + $0x144] ss:$8 sps:$4 sm:$0xff]  }
0x1330   : > { %3673 = vrot.lane.b32.xlu0 %v3664_v60, %s8887_s24 }
0x1331   : > { %3675 = vrot.lane.b32.xlu1 %v3666_v62, %s8887_s24 }
0x1376   : > { %v3467_v27 = vpop.permute.xlu0 %3466 }
0x1377   : > { %v3469_v28 = vpop.permute.xlu1 %3468 }
0x1378   : > { %v3470_v12 = vsel %vm724_vm3, %v3467_v27, %v3469_v28  ;;  %v5361_v27 = vld [vmem:[%s8646_s3 + $0x164] ss:$8 sps:$4 sm:$0xff]   ;;  %v5362_v28 = vld [vmem:[%s8646_s3 + $0x160] ss:$8 sps:$4 sm:$0xff]  }
0x1379   : > { %v3472_v43 = vmax.f32 %v3457_v11, %v3470_v12  ;;  %v5350_v11 = vld [vmem:[%s8646_s3 + $0x100] ss:$8 sps:$4 sm:$0xff]   ;;  %v5363_v12 = vld [vmem:[%s8646_s3 + $0x174] ss:$8 sps:$4 sm:$0xff]  }
0x137b   : > { %v3680_v5 = vmax.f32 %v3472_v43, %v3541_v13  ;;  %v5364_v13 = vld [vmem:[%s8646_s3 + $0x170] ss:$8 sps:$4 sm:$0xff]   ;;  %v5365_v43 = vld [vmem:[%s8646_s3 + $0x184] ss:$8 sps:$4 sm:$0xff]  }
0x137d   : > { %v3681_v26 = vadd.f32 %v5349_v23, %v3680_v5  ;;  %v5366_v5 = vld [vmem:[%s8646_s3 + $0x180] ss:$8 sps:$4 sm:$0xff]  }
0x137f   : > { %v3682_v40 = vmax.f32 %v3681_v26, 0.0  ;;  %v9059_v26 = vld [vmem:[#allocation12_spill] sm:$0xff] }
0x1381   : > { %v3691_v29 = vrot.slane %v3682_v40, 1  ;;  %v3699_v37 = vrot.slane %v3682_v40, 2 }
0x139e   : > { %v3605_v35 = vpop.permute.xlu0 %3604 }
0x139f   : > { %v3607_v7 = vpop.permute.xlu1 %3606 }
0x13a0   : > { %v3608_v61 = vsel %vm724_vm3, %v3605_v35, %v3607_v7  ;;  %v5367_v35 = vld [vmem:[%s8646_s3 + $0x194] ss:$8 sps:$4 sm:$0xff]   ;;  %v5368_v7 = vld [vmem:[%s8646_s3 + $0x190] ss:$8 sps:$4 sm:$0xff]  }
0x13a1   : > { %v3610_v39 = vmax.f32 %v3595_v38, %v3608_v61  ;;  %v5354_v38 = vld [vmem:[%s8646_s3 + $0x120] ss:$8 sps:$4 sm:$0xff]   ;;  %v9058_v61 = vld [vmem:[#allocation11_spill] sm:$0xff] }
0x13a2   : > { %v3674_v19 = vpop.permute.xlu0 %3673 }
0x13a3   : > { %v3676_v21 = vpop.permute.xlu1 %3675 }
0x13a4   : > { %v3677_v56 = vsel %vm724_vm3, %v3674_v19, %v3676_v21 }
0x13a5   : > { %v3679_v2 = vmax.f32 %v3664_v60, %v3677_v56 }
0x13a7   : > { %v3683_v24 = vmax.f32 %v3610_v39, %v3679_v2  ;;  %v9060_v39 = vmov 0   ;;  %v5369_v2 = vld [vmem:[%s8648_s5 + $0x40] sm:$0xff]  }
0x13a9   : > { %v3684_v25 = vadd.f32 %v5349_v23, %v3683_v24  ;;  %v5371_v24 = vld [vmem:[%s8648_s5] sm:$0xff]  }
0x13ab   : > { %v3685_v44 = vmax.f32 %v3684_v25, 0.0  ;;  %v5372_v25 = vld [vmem:[%s8648_s5 + $0x48] sm:$0xff]  }
0x13ad   : > { %v4978_v49 = vpack.i.bf16 %v3691_v29, %v3685_v44  ;;  %v3695_v42 = vrot.slane %v3685_v44, 1  ;;  %v3814_v34 = vrot.slane %v3685_v44, 2 }
0x13af   : > { %4979 = vrot.lane.b32.xlu0 %v4978_v49, %s8904_s25  ;;  %v4983_v51 = vpack.i.bf16 %v3695_v42, %v3691_v29  ;;  %v4988_v30 = vpack.i.bf16 %v3699_v37, %v3695_v42  ;;  %v4993_v17 = vpack.i.bf16 %v3814_v34, %v3699_v37  ;;  %v5374_v29 = vld [vmem:[%s8648_s5 + $0x8] sm:$0xff]   ;;  %v5375_v49 = vld [vmem:[%s8648_s5 + $0x50] sm:$0xff]   ;;  %v5378_v37 = vld [vmem:[%s8648_s5 + $0x58] sm:$0xff]  }
0x13b0   : > { %v5376_v42 = vld [vmem:[%s8648_s5 + $0x90] sm:$0xff]   ;;  %v5379_v34 = vld [vmem:[%s8648_s5 + $0x98] sm:$0xff]  }
0x13b1   : > { %4984 = vrot.lane.b32.xlu1 %v4983_v51, %s8905_s22  ;;  %v5377_v51 = vld [vmem:[%s8648_s5 + $0x10] sm:$0xff]   ;;  %s380_s22 = sand.u32 1, %s5444_s18  }
0x13b2   : > { %s8602_s28 = scalar_lea.sflag [#allocation3], %s380_s22 }
0x13b3   : > { %4989 = vrot.lane.b32.xlu0 %v4988_v30, %s8906_s14  ;;  %v5380_v30 = vld [vmem:[%s8648_s5 + $0x18] sm:$0xff]   ;;  %s4213_s14 = sshll.u32 %s380_s22, 2 }
0x13b4   : > { %s8574_s17 = scalar_lea.vmem [#allocation2], %s4213_s14 }
0x13b5   : > { %4994 = vrot.lane.b32.xlu1 %v4993_v17, %s8860_s12  ;;  %v5381_v17 = vld [vmem:[%s8648_s5 + $0x60] sm:$0xff]   ;;  %s4147_s29 = sshll.u32 %s8574_s17, 4  ;;  %s8596_s29 = int_to_ptr.vmem [resolvable:$true] %s4147_s29 }
0x13b6   : > { %p5397_p0 = scmp.lt.s32.totalorder %s8596_s29, %s5395_s8 }
0x1421   : > { %v4980_v45 = vpop.permute.xlu0 %4979 }
0x1422   : > { %v4982_v63 = vunpack.i.h.bf16 %v4980_v45  ;;  %v4981_v22 = vunpack.i.l.bf16 %v4980_v45  ;;  %v5382_v45 = vld [vmem:[%s8648_s5 + $0xa0] sm:$0xff]  }
0x1423   : > { %v4985_v18 = vpop.permute.xlu1 %4984 }
0x1424   : > { %v4987_v55 = vunpack.i.h.bf16 %v4985_v18  ;;  %v4986_v4 = vunpack.i.l.bf16 %v4985_v18  ;;  %v3818_v20 = vsel %vm964_vm5, %v3685_v44, %v4982_v63  ;;  %v3703_v15 = vsel %vm964_vm5, %v3682_v40, %v4981_v22  ;;  %v5370_v40 = vld [vmem:[%s8648_s5 + $0x80] sm:$0xff]   ;;  %v5373_v44 = vld [vmem:[%s8648_s5 + $0x88] sm:$0xff]  }
0x1425   : > { %v8331_v10 = vpop.permute.xlu0 %4989  ;;  %v3822_v3 = vpack.c.bf16 %v3818_v20, %v3818_v20  ;;  %v3707_v6 = vpack.c.bf16 %v3703_v15, %v3703_v15  ;;  %v9061_v18 = vld [vmem:[#allocation17_spill] sm:$0xff]  ;;  %v9069_v20 = vmov 0.0   ;;  %v9070_v15 = vld [vmem:[#allocation24_spill] sm:$0xff] }
0x1426   : > { %v3819_v52 = vsel %vm966_vm4, %v4982_v63, %v4987_v55  ;;  %v3704_v50 = vsel %vm966_vm4, %v4981_v22, %v4986_v4  ;;  %v4992_v54 = vunpack.i.h.bf16 %v8331_v10  ;;  %v4991_v53 = vunpack.i.l.bf16 %v8331_v10  ;;  %v5383_v63 = vld [vmem:[%s8648_s5 + $0x20] sm:$0xff]   ;;  %v5384_v22 = vld [vmem:[%s8648_s5 + $0x68] sm:$0xff]   ;;  %v9063_v4 = vld [vmem:[#allocation20_spill] sm:$0xff] }
0x1427   : > { %v4995_v47 = vpop.permute.xlu1 %4994  ;;  %v9062_v55 = vld [vmem:[#allocation21_spill] sm:$0xff] }
0x1428   : > { %v8339_v59 = vunpack.i.h.bf16 %v4995_v47  ;;  %v8341_v16 = vunpack.i.l.bf16 %v4995_v47  ;;  %v3705_v36 = vsel %vm968_vm6, %v3704_v50, %v4991_v53  ;;  %v3820_v60 = vsel %vm968_vm6, %v3819_v52, %v4992_v54  ;;  %v9064_v10 = vld [vmem:[#allocation29_spill] sm:$0xff]  ;;  %v9065_v52 = vld [vmem:[#allocation22_spill] sm:$0xff] }
0x1429   : > { %v3708_v62 = vpack.c.bf16 %v3705_v36, %v3705_v36  ;;  %v3823_v1 = vpack.c.bf16 %v3820_v60, %v3820_v60  ;;  %v9066_v50 = vld [vmem:[#allocation30_spill] sm:$0xff] }
0x142a   : > { %v3825_v14 = vpack.c.bf16 %v8339_v59, %v8339_v59  ;;  %v3710_v58 = vpack.c.bf16 %v8341_v16, %v8341_v16  ;;  %v3821_v19 = vsel %vm970_vm9, %v4992_v54, %v8339_v59  ;;  %v3706_v23 = vsel %vm970_vm9, %v4991_v53, %v8341_v16  ;;  %v9067_v54 = vld [vmem:[#allocation23_spill] sm:$0xff] }
0x142b   : > { %3746 = vmatprep.mubr.bf16.mxu1 %v3708_v62  ;;  %3861 = vmatprep.mubr.bf16.mxu0 %v3823_v1  ;;  %v3824_v21 = vpack.c.bf16 %v3821_v19, %v3821_v19  ;;  %v3709_v56 = vpack.c.bf16 %v3706_v23, %v3706_v23  ;;  %v9068_v53 = vld [vmem:[#allocation31_spill] sm:$0xff] }
0x142c   : > { %3747 = vmatmul.mubr.bf16.vlgmr.msra.gmra.mrb[68].mxu1 %v3707_v6  ;;  %3862 = vmatmul.mubr.bf16.vlgmr.msra.gmra.mrb[68].mxu0 %v3822_v3 }
0x142d   : > { %3756 = vmatpush1.bf16.msra.mxu1 %v5350_v11  ;;  %3871 = vmatpush1.bf16.msra.mxu0 %v5350_v11 }
0x142e   : > { %4402 = vmatprep.mubr.msk.bf16.mxu1 %vm1241_vm7, %v3710_v58  ;;  %4404 = vmatprep.mubr.msk.bf16.mxu0 %vm1241_vm7, %v3825_v14 }
0x142f   : > { %3757 = vmatprep.subr.bf16.mxu1 %v5351_v57  ;;  %3872 = vmatprep.subr.bf16.mxu0 %v5351_v57 }
0x1431   : > { %3758 = vmatpush1.bf16.msra.mxu1 %v5352_v0  ;;  %3873 = vmatpush1.bf16.msra.mxu0 %v5352_v0 }
0x1432   : > { %3759 = vmatprep.subr.bf16.mxu1 %v5353_v41  ;;  %3874 = vmatprep.subr.bf16.mxu0 %v5353_v41 }
0x1435   : > { %3760 = vmatpush1.bf16.msra.mxu1 %v5354_v38  ;;  %3875 = vmatpush1.bf16.msra.mxu0 %v5354_v38 }
0x1436   : > { %3761 = vmatprep.subr.bf16.mxu1 %v5355_v8  ;;  %3876 = vmatprep.subr.bf16.mxu0 %v5355_v8 }
0x1439   : > { %3762 = vmatpush1.bf16.msra.mxu1 %v5356_v9  ;;  %3877 = vmatpush1.bf16.msra.mxu0 %v5356_v9  ;;  %v5385_v9 = vld [vmem:[%s8647_s4] ss:$0 sm:$0xff] }
0x143a   : > { %3763 = vmatprep.subr.bf16.mxu1 %v5357_v46  ;;  %3878 = vmatprep.subr.bf16.mxu0 %v5357_v46 }
0x143d   : > { %3764 = vmatpush1.bf16.msra.mxu1 %v5358_v48  ;;  %3879 = vmatpush1.bf16.msra.mxu0 %v5358_v48 }
0x143e   : > { %3765 = vmatprep.subr.bf16.mxu1 %v5359_v31  ;;  %3880 = vmatprep.subr.bf16.mxu0 %v5359_v31 }
0x1441   : > { %3766 = vmatpush1.bf16.msra.mxu1 %v5360_v33  ;;  %3881 = vmatpush1.bf16.msra.mxu0 %v5360_v33 }
0x1442   : > { %3767 = vmatprep.subr.bf16.mxu1 %v5361_v27  ;;  %3882 = vmatprep.subr.bf16.mxu0 %v5361_v27 }
0x1445   : > { %3768 = vmatpush1.bf16.msra.mxu1 %v5362_v28  ;;  %3883 = vmatpush1.bf16.msra.mxu0 %v5362_v28 }
0x1446   : > { %3769 = vmatprep.subr.bf16.mxu1 %v5363_v12  ;;  %3884 = vmatprep.subr.bf16.mxu0 %v5363_v12  ;;  %v8510_v12 = vld [vmem:[%s8653_s10] sm:$0x1] }
0x1449   : > { %3770 = vmatpush1.bf16.msra.mxu1 %v5364_v13  ;;  %3885 = vmatpush1.bf16.msra.mxu0 %v5364_v13  ;;  %v9071_v13 = vld [vmem:[#allocation44_spill] sm:$0xff] }
0x144a   : > { %3771 = vmatprep.subr.bf16.mxu1 %v5365_v43  ;;  %3886 = vmatprep.subr.bf16.mxu0 %v5365_v43  ;;  %v1898_v43 = vadd.f32 %v9071_v13, %v8510_v12 }
0x144d   : > { %3772 = vmatpush1.bf16.msra.mxu1 %v5366_v5  ;;  %3887 = vmatpush1.bf16.msra.mxu0 %v5366_v5  ;;  %v3376_v5 = vadd.f32 %v8311_v32, %v8510_v12 }
0x144e   : > { %3773 = vmatprep.subr.bf16.mxu1 %v5367_v35  ;;  %3888 = vmatprep.subr.bf16.mxu0 %v5367_v35  ;;  %v1904_v35 = vsel %vm1903_vm2, %v1898_v43, -inf }
0x144f   : > { %v3381_v19 = vsel %vm1903_vm2, %v3376_v5, -inf }
0x1451   : > { %3774 = vmatpush1.bf16.msra.mxu1 %v5368_v7  ;;  %3889 = vmatpush1.bf16.msra.mxu0 %v5368_v7  ;;  %v9072_v7 = vld [vmem:[#allocation19_spill] sm:$0xff] }
0x1452   : > { %4401 = vmatprep.subr.msk.bf16.mxu1 %vm1245_vm8, %v9058_v61  ;;  %4403 = vmatprep.subr.msk.bf16.mxu0 %vm1245_vm8, %v9058_v61  ;;  %v8519_v61 = vadd.f32 %v9072_v7, %v8510_v12 }
0x1454   : > { %v2642_v23 = vsel %vm1903_vm2, %v8519_v61, -inf }
0x1455   : > { %3776 = vmatpush1.bf16.msra.mxu1 %v9059_v26  ;;  %3891 = vmatpush1.bf16.msra.mxu0 %v9059_v26 }
0x1456   : > { %3991 = vmatprep.subr.bf16.mxu0 %v9060_v39  ;;  %4530 = vmatprep.subr.bf16.mxu1 %v5369_v2 }
0x1458   : > { %3788 = vmatmul.mubr.bf16.vlgmr.msra.gmra.mrb[68].mxu1 %v3709_v56  ;;  %3903 = vmatmul.mubr.bf16.vlgmr.msra.gmra.mrb[68].mxu0 %v3824_v21 }
0x1459   : > { %3992 = vmatpush1.bf16.msra.mxu0 %v5370_v40  ;;  %4531 = vmatpush3.bf16.msra.mxu1 %v5371_v24 }
0x145a   : > { %3993 = vmatprep.subr.bf16.mxu0 %v9060_v39  ;;  %4532 = vmatprep.subr.bf16.mxu1 %v5372_v25 }
0x145d   : > { %3994 = vmatpush1.bf16.msra.mxu0 %v5373_v44  ;;  %4533 = vmatpush3.bf16.msra.mxu1 %v5374_v29 }
0x145e   : > { %3995 = vmatprep.subr.bf16.mxu0 %v9060_v39  ;;  %4534 = vmatprep.subr.bf16.mxu1 %v5375_v49 }
0x1461   : > { %3996 = vmatpush1.bf16.msra.mxu0 %v5376_v42  ;;  %4535 = vmatpush3.bf16.msra.mxu1 %v5377_v51  ;;  %v9073_v42 = vld [vmem:[#allocation32_spill] sm:$0xff]  ;;  %v9074_v51 = vld [vmem:[#allocation33_spill] sm:$0xff] }
0x1462   : > { %3997 = vmatprep.subr.bf16.mxu0 %v9060_v39  ;;  %4536 = vmatprep.subr.bf16.mxu1 %v5378_v37  ;;  %v9075_v37 = vld [vmem:[#allocation34_spill] sm:$0xff] }
0x1465   : > { %3998 = vmatpush1.bf16.msra.mxu0 %v5379_v34  ;;  %4537 = vmatpush3.bf16.msra.mxu1 %v5380_v30  ;;  %v9076_v34 = vld [vmem:[#allocation35_spill] sm:$0xff]  ;;  %v9077_v30 = vld [vmem:[#allocation36_spill] sm:$0xff] }
0x1466   : > { %3999 = vmatprep.subr.bf16.mxu0 %v9060_v39  ;;  %4538 = vmatprep.subr.bf16.mxu1 %v5381_v17  ;;  %v9078_v17 = vld [vmem:[#allocation40_spill] sm:$0xff] }
0x1469   : > { %4000 = vmatpush1.bf16.msra.mxu0 %v5382_v45  ;;  %4539 = vmatpush3.bf16.msra.mxu1 %v5383_v63  ;;  %v9079_v45 = vld [vmem:[#allocation37_spill] sm:$0xff]  ;;  %v5386_v63 = vld [vmem:[%s8650_s7 + $0x18] sm:$0xff]  }
0x146a   : > { %4001 = vmatprep.subr.bf16.mxu0 %v9060_v39  ;;  %4540 = vmatprep.subr.bf16.mxu1 %v5384_v22  ;;  %v9080_v22 = vld [vmem:[#allocation28_spill] sm:$0xff] }
0x146d   : > { %4002 = vmatpush1.bf16.msra.mxu0 %v9061_v18  ;;  %4541 = vmatpush3.bf16.msra.mxu1 %v9062_v55  ;;  %v5387_v18 = vld [vmem:[%s8650_s7 + $0x20] sm:$0xff]   ;;  %v9081_v55 = vld [vmem:[#allocation39_spill] sm:$0xff] }
0x146e   : > { %4003 = vmatprep.subr.bf16.mxu0 %v9060_v39  ;;  %4542 = vmatprep.subr.bf16.mxu1 %v9063_v4  ;;  %v5388_v4 = vld [vmem:[%s8650_s7 + $0x28] sm:$0xff]  }
0x1471   : > { %4004 = vmatpush1.bf16.msra.mxu0 %v9064_v10  ;;  %4543 = vmatpush3.bf16.msra.mxu1 %v9065_v52  ;;  %v5389_v10 = vld [vmem:[%s8650_s7 + $0x30] sm:$0xff]   ;;  %v9082_v52 = vld [vmem:[#allocation25_spill] sm:$0xff] }
0x1472   : > { %4005 = vmatprep.subr.bf16.mxu0 %v9060_v39  ;;  %4544 = vmatprep.subr.bf16.mxu1 %v9066_v50 }
0x1475   : > { %4006 = vmatpush1.bf16.msra.mxu0 %v9067_v54  ;;  %4545 = vmatpush3.bf16.msra.mxu1 %v9068_v53 }
0x1476   : > { %4007 = vmatprep.subr.bf16.mxu0 %v9060_v39  ;;  %4676 = vmatprep.subr.bf16.mxu1 %v9069_v20 }
0x1479   : > { %4008 = vmatpush1.bf16.msra.mxu0 %v9070_v15 }
0x147a   : > { %4696 = vmatprep.subr.bf16.mxu0 %v9069_v20 }
0x152b   : > { %v3789_v47 = vpop.f32.mrb[68].mxu1  ;;  %v3904_v59 = vpop.f32.mrb[68].mxu0 }
0x152c   : > { %3798 = vrot.lane.b32.xlu0 %v3789_v47, %s8957_s0  ;;  %v3791_v16 = vpop.f32.mrb[69].mxu1  ;;  %v3906_v36 = vpop.f32.mrb[69].mxu0 }
0x152d   : > { %3800 = vrot.lane.b32.xlu1 %v3791_v16, %s8957_s0  ;;  %v3793_v60 = vpop.f32.mrb[70].mxu1  ;;  %v3908_v62 = vpop.f32.mrb[70].mxu0 }
0x152e   : > { %v3794_v1 = vpop.f32.mrb[71].mxu1  ;;  %v3909_v3 = vpop.f32.mrb[71].mxu0 }
0x1530   : > { %3913 = vrot.lane.b32.xlu0 %v3904_v59, %s8957_s0 }
0x1531   : > { %3915 = vrot.lane.b32.xlu1 %v3906_v36, %s8957_s0  ;;  %s5390_s0 = scalar_lea.vmem %s8596_s29, 64 }
0x1532   : > { %p5391_p11 = scmp.ne.s32.totalorder %s8596_s29, %s5390_s0 }
0x1534   : > { %p5392_p12 = pnand %p5391_p11, %p5568_p5 }
0x1536   : > { %p5393_p13 = pneg %p5392_p12 }
0x159e   : > { %v3799_v6 = vpop.permute.xlu0 %3798 }
0x159f   : > { %v3801_v14 = vpop.permute.xlu1 %3800 }
0x15a0   : > { %v3802_v58 = vsel %vm1340_vm10, %v3799_v6, %v3801_v14 }
0x15a1   : > { %v3804_v41 = vmax.f32 %v3789_v47, %v3802_v58 }
0x15a2   : > { %v3914_v11 = vpop.permute.xlu0 %3913 }
0x15a3   : > { %v3916_v57 = vpop.permute.xlu1 %3915 }
0x15a4   : > { %v3917_v0 = vsel %vm1340_vm10, %v3914_v11, %v3916_v57 }
0x15a5   : > { %v3919_v38 = vmax.f32 %v3904_v59, %v3917_v0 }
0x15a7   : > { %v3920_v8 = vmax.f32 %v3804_v41, %v3919_v38 }
0x15a9   : > { %v3921_v46 = vadd.f32 %v5385_v9, %v3920_v8  ;;  %v9083_v8 = vld [vmem:[#allocation38_spill] sm:$0xff] }
0x15ab   : > { %v3922_v48 = vmax.f32 %v3921_v46, 0.0 }
0x15ad   : > { %v3928_v31 = vrot.slane %v3922_v48, 2  ;;  %v3924_v33 = vrot.slane %v3922_v48, 1  ;;  %v3936_v27 = vrot.slane %v3922_v48, 4  ;;  %v3932_v28 = vrot.slane %v3922_v48, 3 }
0x15af   : > { %3929 = vrot.lane.b32.xlu1 %v3928_v31, %s8959_s23  ;;  %3925 = vrot.lane.b32.xlu0 %v3924_v33, %s8860_s12  ;;  %s5396_s12 = scalar_lea.vmem %s5395_s8, 128 }
0x15b0   : > { %p5398_p1 = scmp.lt.s32.totalorder %s5396_s12, %s5390_s0 }
0x15b2   : > { %p5399_p2 = por %p5398_p1, %p5397_p0 }
0x15b3   : > { %3937 = vrot.lane.b32.xlu1 %v3936_v27, %s8861_s30  ;;  %3933 = vrot.lane.b32.xlu0 %v3932_v28, %s8960_s13 }
0x15b4   : > { %p5400_p3 = pnand %p5399_p2, %p5393_p13 }
0x15d2   : > { %1905 = vmax.xlane.f32.xlu0 %v1904_v35 }
0x15d6   : > { %3382 = vmax.xlane.f32.xlu0 %v3381_v19 }
0x15d7   : > { %2643 = vmax.xlane.f32.xlu1 %v2642_v23 }
0x1621   : > { %v3930_v26 = vpop.permute.xlu1 %3929  ;;  %v3926_v21 = vpop.permute.xlu0 %3925 }
0x1622   : > { %v3940_v56 = vsel %vm970_vm9, %v3922_v48, %v3926_v21  ;;  %v3941_v32 = vsel %vm566_vm0, %v3926_v21, %v3930_v26 }
0x1623   : > { %v3944_v49 = vpack.c.bf16 %v3940_v56, %v3940_v56 }
0x1625   : > { %v3938_v39 = vpop.permute.xlu1 %3937  ;;  %v3934_v2 = vpop.permute.xlu0 %3933 }
0x1626   : > { %v3947_v40 = vpack.c.bf16 %v3938_v39, %v3938_v39  ;;  %v3942_v24 = vsel %vm1487_vm11, %v3941_v32, %v3934_v2  ;;  %v3943_v25 = vsel %vm568_vm1, %v3934_v2, %v3938_v39 }
0x1627   : > { %v3945_v44 = vpack.c.bf16 %v3942_v24, %v3942_v24  ;;  %v3946_v29 = vpack.c.bf16 %v3943_v25, %v3943_v25 }
0x1628   : > { %4405 = vmatprep.mubr.msk.bf16.mxu0 %vm1644_vm12, %v3947_v40 }
0x1629   : > { %3983 = vmatprep.mubr.bf16.mxu1 %v3945_v44  ;;  %4024 = vmatmul.mubr.bf16.vlgmr.msra.gmra.mrb[72].mxu0 %v3946_v29 }
0x162a   : > { %3984 = vmatmul.mubr.bf16.vlgmr.msra.gmra.mrb[72].mxu1 %v3944_v49  ;;  %4697 = vmatpush3.bf16.msra.mxu0 %v9073_v42 }
0x162b   : > { %4677 = vmatpush3.bf16.msra.mxu1 %v9074_v51  ;;  %4692 = vmatprep.mubr.msk.bf16.mxu1 %vm5466_vm14, %v9069_v20 }
0x162c   : > { %4678 = vmatprep.subr.bf16.mxu1 %v9069_v20  ;;  %4698 = vmatprep.subr.bf16.mxu0 %v9069_v20 }
0x162d   : > { %4708 = vmatprep.mubr.msk.bf16.mxu0 %vm5466_vm14, %v9069_v20 }
0x162e   : > { %4699 = vmatpush3.bf16.msra.mxu0 %v9075_v37 }
0x162f   : > { %4679 = vmatpush3.bf16.msra.mxu1 %v9076_v34  ;;  %4700 = vmatprep.subr.bf16.mxu0 %v9069_v20 }
0x1630   : > { %4680 = vmatprep.subr.bf16.mxu1 %v9069_v20 }
0x1632   : > { %4701 = vmatpush3.bf16.msra.mxu0 %v9077_v30 }
0x1633   : > { %4681 = vmatpush3.bf16.msra.mxu1 %v9078_v17  ;;  %4702 = vmatprep.subr.bf16.mxu0 %v9069_v20 }
0x1634   : > { %4682 = vmatprep.subr.bf16.mxu1 %v9069_v20 }
0x1636   : > { %4703 = vmatpush3.bf16.msra.mxu0 %v9079_v45 }
0x1637   : > { %4683 = vmatpush3.bf16.msra.mxu1 %v5386_v63  ;;  %4704 = vmatprep.subr.bf16.mxu0 %v9069_v20 }
0x1638   : > { %4684 = vmatprep.subr.bf16.mxu1 %v9069_v20 }
0x163a   : > { %4705 = vmatpush3.bf16.msra.mxu0 %v9080_v22 }
0x163b   : > { %4685 = vmatpush3.bf16.msra.mxu1 %v5387_v18  ;;  %4706 = vmatprep.subr.bf16.mxu0 %v9069_v20 }
0x163c   : > { %4686 = vmatprep.subr.bf16.mxu1 %v9069_v20 }
0x163e   : > { %4707 = vmatpush3.bf16.msra.mxu0 %v9081_v55 }
0x163f   : > { %4687 = vmatpush3.bf16.msra.mxu1 %v5388_v4 }
0x1640   : > { %4688 = vmatprep.subr.bf16.mxu1 %v9069_v20 }
0x1643   : > { %4689 = vmatpush3.bf16.msra.mxu1 %v5389_v10 }
0x1644   : > { %4690 = vmatprep.subr.bf16.mxu1 %v9069_v20 }
0x1647   : > { %4691 = vmatpush3.bf16.msra.mxu1 %v9082_v52 }
0x165f   : > { %v1906_v50 = vpop.xlane.xlu0 %1905 }
0x1660   : > { %v1907_v54 = vsub.f32 %v1898_v43, %v1906_v50 }
0x1662   : > { %v1908_v53 = vmul.f32 1.442695, %v1907_v54 }
0x1663   : > { %v3383_v15 = vpop.xlane.xlu0 %3382 }
0x1664   : > { %5147 = vpow2.f32 %v1908_v53  ;;  %v3384_v47 = vsub.f32 %v3376_v5, %v3383_v15  ;;  %v2644_v20 = vpop.xlane.xlu1 %2643  ;;  %v9084_v5 = vld [vmem:[#allocation26_spill] sm:$0xff] }
0x1665   : > { %v2645_v56 = vsub.f32 %v8519_v61, %v2644_v20 }
0x1666   : > { %v3385_v59 = vmul.f32 1.442695, %v3384_v47 }
0x1667   : > { %v2646_v32 = vmul.f32 1.442695, %v2645_v56 }
0x1668   : > { %5149 = vpow2.f32 %v3385_v59 }
0x166e   : > { %v5148_v16 = vpop.eup %5147 }
0x166f   : > { %v1910_v36 = vsel %vm1903_vm2, %v5148_v16, 0.0 }
0x1670   : > { %1911 = vadd.xlane.f32.xlu1 %v1910_v36 }
0x1672   : > { %v5150_v60 = vpop.eup %5149 }
0x1673   : > { %v3387_v62 = vsel %vm1903_vm2, %v5150_v60, 0.0 }
0x1674   : > { %3388 = vadd.xlane.f32.xlu1 %v3387_v62 }
0x16fc   : > { %v4025_v1 = vpop.f32.mrb[72].mxu0 }
0x16fd   : > { %v4546_v3 = vpop.f32.mrb[72].mxu1  ;;  %v1912_v6 = vpop.xlane.xlu1 %1911 }
0x16fe   : > { %5151 = vrcp.f32 %v1912_v6  ;;  %v4027_v14 = vpop.f32.mrb[73].mxu0  ;;  %v4547_v58 = vpop.f32.mrb[73].mxu1 }
0x16ff   : > { %v4548_v11 = vadd.f32 %v4547_v58, %v4546_v3  ;;  %v4028_v57 = vpop.f32.mrb[74].mxu0  ;;  %v4549_v0 = vpop.f32.mrb[74].mxu1 }
0x1700   : > { %v4029_v41 = vpop.f32.mrb[75].mxu0  ;;  %v4550_v38 = vpop.f32.mrb[75].mxu1 }
0x1701   : > { %v3986_v9 = vadd.f32 %v9083_v8, %v4548_v11  ;;  %v3389_v46 = vpop.xlane.xlu1 %3388 }
0x1702   : > { %5153 = vrcp.f32 %v3389_v46 }
0x1703   : > { %v4026_v48 = vadd.f32 %v4025_v1, %v3986_v9  ;;  %5155 = vpow2.f32 %v2646_v32 }
0x1705   : > { %v4031_v31 = vpack.c.bf16 %v4026_v48, %v4026_v48 }
0x1707   : > { %4693 = vmatmul.mubr.msk.bf16.vlgmr.msra.gmra.mrb[76].mxu1 %vm1774_vm15, %v4031_v31 }
0x1708   : > { %v5152_v33 = vpop.eup %5151 }
0x1709   : > { %v1914_v27 = vmul.f32 %v5152_v33, %v5148_v16 }
0x170b   : > { %1915 = vst.msk [vmem:[%s8574_s17] sm:$0x1] %vm1903_vm2, %v1914_v27 }
0x170c   : > { %v5154_v28 = vpop.eup %5153 }
0x170d   : > { %v3391_v13 = vmul.f32 %v5154_v28, %v5150_v60  ;;  %v5156_v29 = vpop.eup %5155 }
0x170e   : > { %v2648_v49 = vsel %vm1903_vm2, %v5156_v29, 0.0 }
0x170f   : > { %4388 = vst.msk [vmem:[%s8574_s17 + $0x2] sm:$0x1] %vm1903_vm2, %v3391_v13 }
0x17da   : > { %v4069_v43 = vpop.f32.mrb[76].mxu1 }
0x17db   : > { %v4070_v35 = vadd.f32 %v9084_v5, %v4069_v43  ;;  %v4694_v7 = vpop.f32.mrb[77].mxu1 }
0x17dc   : > { %v4072_v19 = vpop.f32.mrb[78].mxu1 }
0x17dd   : > { %v4075_v23 = vmax.f32 %v4070_v35, 0.0  ;;  %v4695_v26 = vpop.f32.mrb[79].mxu1 }
0x17df   : > { %v4076_v21 = vpack.c.bf16 %v4075_v23, %v4075_v23 }
0x17e1   : > { %4709 = vmatmul.mubr.msk.bf16.vlgmr.msra.gmra.mrb[76].mxu0 %vm964_vm5, %v4076_v21 }
0x18b4   : > { %v4114_v39 = vpop.f32.mrb[76].mxu0 }
0x18b5   : > { %v4115_v2 = vadd.f32 %v4114_v39, %v8510_v12  ;;  %v4710_v40 = vpop.f32.mrb[77].mxu0 }
0x18b6   : > { %v4117_v24 = vpop.f32.mrb[78].mxu0 }
0x18b7   : > { %v4711_v25 = vpop.f32.mrb[79].mxu0  ;;  %v4120_v44 = vsel %vm1903_vm2, %v4115_v2, -inf }
0x18b8   : > { %4121 = vmax.xlane.f32.xlu0 %v4120_v44 }
0x18bc   : > { %2649 = vadd.xlane.f32.xlu0 %v2648_v49 }
0x1945   : > { %v4122_v42 = vpop.xlane.xlu0 %4121 }
0x1946   : > { %v4123_v61 = vsub.f32 %v4115_v2, %v4122_v42 }
0x1948   : > { %v4124_v51 = vmul.f32 1.442695, %v4123_v61 }
0x1949   : > { %v2650_v37 = vpop.xlane.xlu0 %2649 }
0x194a   : > { %5157 = vpow2.f32 %v4124_v51 }
0x194b   : > { %5159 = vrcp.f32 %v2650_v37 }
0x1954   : > { %v5158_v12 = vpop.eup %5157 }
0x1955   : > { %v5160_v34 = vpop.eup %5159  ;;  %v4126_v30 = vsel %vm1903_vm2, %v5158_v12, 0.0 }
0x1956   : > { %v2652_v17 = vmul.f32 %v5160_v34, %v5156_v29  ;;  %4127 = vadd.xlane.f32.xlu0 %v4126_v30 }
0x1958   : > { %4368 = vst.msk [vmem:[%s8574_s17 + $0x1] sm:$0x1] %vm1903_vm2, %v2652_v17 }
0x19e3   : > { %v4128_v45 = vpop.xlane.xlu0 %4127 }
0x19e4   : > { %5161 = vrcp.f32 %v4128_v45 }
0x19ee   : > { %v5162_v63 = vpop.eup %5161 }
0x19ef   : > { %v4130_v22 = vmul.f32 %v5162_v63, %v5158_v12 }
0x19f1   : > { %4408 = vst.msk [vmem:[%s8574_s17 + $0x3] sm:$0x1] %vm1903_vm2, %v4130_v22 }
0x19f2   : > { %5403 = shalt.err (!%p5400_p3)
}
0x19f3   : > { %s5404_s30 = scalar_lea.hbm %s8594_s6, 64  ;;  %s5408_s19 = scalar_lea.hbm %s9085_s11, 128 }
0x19f4   : > { %p5405_p4 = scmp.ne.s32.totalorder %s8594_s6, %s5404_s30  ;;  %p5409_p9 = scmp.lt.u32.totalorder %s8594_s6, %s9085_s11 }
0x19f5   : > { %p5410_p10 = scmp.lt.u32.totalorder %s5408_s19, %s5404_s30  ;;  %p5412_p12 = scmp.lt.u32.totalorder %s5404_s30, %s8594_s6 }
0x19f6   : > { %p5406_p7 = pnand %p5405_p4, %p5568_p5 }
0x19f7   : > { %p5411_p11 = por %p5410_p10, %p5409_p9 }
0x19f8   : > { %p5407_p8 = pneg %p5406_p7 }
0x19f9   : > { %p5413_p13 = por %p5412_p12, %p5411_p11 }
0x19fb   : > { %p5414_p0 = pnand %p5413_p13, %p5407_p8 }
0x19fd   : > { %5417 = shalt.err (!%p5414_p0)
}
0x19fe   : > { %s5468_s25 = smov 16   ;;  %s5469_s22 = smov 1  }
0x19ff   : > { %4744 = dma.vmem_to_hbm [thread:$0]  (%p5568_p5), %s8596_s29, 64, %s8594_s6, %s8602_s28, %s5468_s25, %s5468_s25, %s5469_s22  }
0x1a00 PF: > { %s9086_s14 = sld [smem:[#allocation7_spill]]  ;;  %s9087_s17 = sld [smem:[#allocation5_spill]] }
0x1a06   : > { %p4750_p1 = scmp.ge.s32.totalorder %s9086_s14, 2  ;;  %s4162_s26 = sand.u32 1, %s9087_s17  }
0x1a07   : > { %s4163_s16 = scalar_lea.sflag [#allocation3], %s4162_s26 }
0x1a08   : > { %p4747_p2 = pnand %p4750_p1, %p5572_p6 }
0x1a0a   : > { %5435 = dma.done.wait (!%p4747_p2), %s4163_s16, 64  }
0x1a0b   : > { %5437 = vsyncadd (!%p4747_p2), %s4163_s16, 4294967232  ;;  %s9089_s20 = sld [smem:[#allocation8_spill]]  ;;  %s9090_s0 = sld [smem:[#allocation6_spill]] }
0x1a0c   : > { %s9091_s19 = sld [smem:[#allocation9_spill]]  ;;  %s9092_s17 = smov %s5444_s18 }
0x1a11   : > { %p21_p3 = scmp.ge.s32.totalorder %s9089_s20, 4   ;;  %s9093_s18 = smov %s9090_s0 }
0x1a13   :  { %23 = sbr.rel (!%p21_p3) target bundleno = 8 (0x8), region = 117 }
0x1a1a   :  { %4168 = vsyncpa [#allocation3], 1 }
0x1a1b   :  { %4170 = vsyncpa [#allocation3 + $0x1], 1 }

</bundles_post_ra>
